<compile_context>
chip_gen: v7x
topology: tpu7x:2x2x1
jax: 0.10.0
libtpu: 0.0.40
codegen_flags: <defaults>
</compile_context>

<pallas_src>
import functools
import math

import jax
import jax.numpy as jnp
import numpy as np
from jax.experimental import pallas as pl
from jax.experimental.pallas import tpu as pltpu


def _round_up(n, m):
    return ((n + m - 1) // m) * m


# ----------------------------------------------------------------------------
# DCT helpers (torch_dct semantics with norm=None):
#   dct(x)[k] = 2 * sum_n x[n] * cos(pi * k * (2n+1) / (2N)); idct is its exact inverse.
# A 2-D DCT over a (ts, ts) tile flattened to P = ts*ts pixels is one left-matmul with
# kron(D, D); the inverse uses kron(D^-1, D^-1).  To pack Bblk batch elements into one
# MXU call we use the block-diagonal kron(I_Bblk, kron(D, D)).
# ----------------------------------------------------------------------------
@functools.lru_cache(maxsize=None)
def _dct_mats_np(ts):
    n = np.arange(ts)[None, :]
    k = np.arange(ts)[:, None]
    D = 2.0 * np.cos(np.pi * k * (2 * n + 1) / (2 * ts))
    Dinv = np.linalg.inv(D)
    return (np.kron(D, D).astype(np.float32),
            np.kron(Dinv, Dinv).astype(np.float32))


def _blockdiag_dct(ts, bblk):
    M2, M2i = _dct_mats_np(ts)
    eye = np.eye(bblk, dtype=np.float32)
    return (jnp.asarray(np.kron(eye, M2), jnp.bfloat16),
            jnp.asarray(np.kron(eye, M2i), jnp.bfloat16))


def _vmem_limit_bytes():
    # Per-generation VMEM limit with ~20% headroom (v7x has only 64 MiB physical
    # VMEM per TensorCore; v5e/v6e have 128 MiB).
    try:
        cap = pltpu.get_tpu_info().vmem_capacity_bytes
    except Exception:
        cap = 64 * 1024 * 1024
    return int(cap * 0.8)


# ----------------------------------------------------------------------------
# nn.Unfold / nn.Fold equivalents (pure index glue, stays in plain JAX).
# ----------------------------------------------------------------------------
def _patch_indices(H, W, ts, s):
    nH = (H - ts) // s + 1
    nW = (W - ts) // s + 1
    rows = (jnp.arange(nH) * s)[:, None] + jnp.arange(ts)[None, :]   # (nH, ts)
    cols = (jnp.arange(nW) * s)[:, None] + jnp.arange(ts)[None, :]   # (nW, ts)
    return nH, nW, rows, cols


def extract_patches(x, ts, s):
    """x: (B, C, H, W) -> patches (B, C, nH, ts, nW, ts)."""
    B, C, H, W = x.shape
    nH, nW, rows, cols = _patch_indices(H, W, ts, s)
    p = x[:, :, rows[:, :, None, None], cols[None, None, :, :]]
    return p, nH, nW


def fold_add(p6, H, W, ts, s):
    """p6: (B, C, nH, ts, nW, ts) -> overlap-added (B, C, H, W) (nn.Fold)."""
    B, C = p6.shape[:2]
    _, _, rows, cols = _patch_indices(H, W, ts, s)
    out = jnp.zeros((B, C, H, W), jnp.float32)
    return out.at[:, :, rows[:, :, None, None], cols[None, None, :, :]].add(p6)


@functools.lru_cache(maxsize=None)
def _coverage_count(H, W, ts, s):
    # fold(unfold(ones)): per-pixel patch-coverage count.  Pure constant of
    # (H, W, ts, s) -> built once in numpy instead of per-call XLA scatter-adds.
    nH = (H - ts) // s + 1
    nW = (W - ts) // s + 1
    cnt = np.zeros((H, W), np.float32)
    for i in range(nH):
        for j in range(nW):
            cnt[i * s:i * s + ts, j * s:j * s + ts] += 1.0
    return cnt


def _pick_bblk(B, P, target_rows=256):
    # Pack several batch elements per grid step so the row dim of the CNN matmuls
    # fills the MXU (important for small ts, where P = ts*ts is tiny).
    best = 1
    for d in range(1, B + 1):
        if B % d == 0 and d * P <= target_rows:
            best = d
    return best


# ----------------------------------------------------------------------------
# Pallas kernel: fused denoise core of denoiseNet_adaptive_thre6 for a block of
# Bblk batch elements:
#   2-D DCT -> CNN3 (four 1x1 convs == row-wise matmuls, ReLU x3) -> sigmoid mask
#   -> mask * dct -> inverse 2-D DCT.
# The 1/ts^2 pre-scale of the reference is folded into w1 at init.
# ----------------------------------------------------------------------------
def _denoise_kernel(x_ref, m2_ref, m2i_ref,
                    w1_ref, b1_ref, w2_ref, b2_ref,
                    w3_ref, b3_ref, w4_ref, b4_ref,
                    o_ref):
    f32, bf16 = jnp.float32, jnp.bfloat16
    bblk, P, Cp = x_ref.shape
    rows = bblk * P

    # Block-diagonal 2-D DCT over the patch-pixel axis (bf16 MXU, f32 accumulate).
    x = x_ref[...].reshape(rows, Cp).astype(bf16)
    d = jnp.dot(m2_ref[...], x, preferred_element_type=f32)            # (rows, Cp) f32

    # CNN3: MXU operands bf16, f32 accumulation; bias/ReLU/sigmoid in f32
    # (v5e has no bf16 VPU/EUP).
    h = jnp.maximum(jnp.dot(d.astype(bf16), w1_ref[...],
                            preferred_element_type=f32) + b1_ref[...], 0.0)
    h = jnp.maximum(jnp.dot(h.astype(bf16), w2_ref[...],
                            preferred_element_type=f32) + b2_ref[...], 0.0)
    h = jnp.maximum(jnp.dot(h.astype(bf16), w3_ref[...],
                            preferred_element_type=f32) + b3_ref[...], 0.0)
    logits = jnp.dot(h.astype(bf16), w4_ref[...],
                     preferred_element_type=f32) + b4_ref[...]
    mask = jax.nn.sigmoid(logits)
    clean = (mask * d).astype(bf16)

    # Block-diagonal inverse 2-D DCT; lane-dense (Cp multiple of 128) f32 store.
    o_ref[...] = jnp.dot(m2i_ref[...], clean,
                         preferred_element_type=f32).reshape(bblk, P, Cp)


def denoise_core(X, cnn_params, ts, bblk):
    """X: (B, P, Cp) with P = ts*ts, Cp = pad128(3*L). Returns clean tiles, same layout."""
    B, P, Cp = X.shape
    assert B % bblk == 0
    nblk = B // bblk

    m2b, m2ib = _blockdiag_dct(ts, bblk)
    consts = [m2b, m2ib]
    for w, b in cnn_params:
        consts += [w, b]

    vmem_limit = _vmem_limit_bytes()
    const_bytes = sum(int(np.prod(c.shape)) * c.dtype.itemsize for c in consts)
    block_bytes = bblk * P * Cp * 4
    if 2 * const_bytes + 6 * block_bytes > vmem_limit:
        # TODO(synk): for the 224x224 production config, stream w1/w4 from HBM
        # (memory_space=pl.ANY + pltpu.emit_pipeline over C-tiles with batch-inner
        # reuse) instead of keeping every weight resident in VMEM.
        raise ValueError(
            f"resident-weight denoise kernel needs ~{2 * const_bytes + 6 * block_bytes} B "
            f"of VMEM but the limit is {vmem_limit} B; stream w1/w4 from HBM")

    hp1 = cnn_params[0][0].shape[1]
    hp2 = cnn_params[1][0].shape[1]
    rows = bblk * P
    flops = nblk * 2 * rows * (2 * rows * Cp
                               + Cp * hp1 + hp1 * hp2 + hp2 * hp1 + hp1 * Cp)
    cost = pl.CostEstimate(flops=int(flops),
                           transcendentals=int(B * P * Cp),
                           bytes_accessed=int(2 * B * P * Cp * 4 + const_bytes))

    const_specs = [pl.BlockSpec(c.shape, lambda i: (0, 0)) for c in consts]
    return pl.pallas_call(
        _denoise_kernel,
        out_shape=jax.ShapeDtypeStruct((B, P, Cp), jnp.float32),
        grid=(nblk,),
        in_specs=[pl.BlockSpec((bblk, P, Cp), lambda i: (i, 0, 0))] + const_specs,
        out_specs=pl.BlockSpec((bblk, P, Cp), lambda i: (i, 0, 0)),
        input_output_aliases={0: 0},        # reuse X's HBM buffer for the output
        cost_estimate=cost,
        compiler_params=pltpu.CompilerParams(
            dimension_semantics=("parallel",),
            vmem_limit_bytes=vmem_limit),
    )(X, *consts)


# ----------------------------------------------------------------------------
# denoiseNet_adaptive_thre6 forward.
# ----------------------------------------------------------------------------
def denoise_forward(cnn_params, x, ts, s):
    B, C, H, W = x.shape
    assert C == 3 and (H - ts) % s == 0 and (W - ts) % s == 0
    patches, nH, nW = extract_patches(x, ts, s)          # (B, 3, nH, ts, nW, ts)
    L = nH * nW
    C3L = 3 * L
    P = ts * ts
    Cp = cnn_params[0][0].shape[0]                       # padded 3L (conv1 fan-in)

    # Kernel layout: X[b, ki*ts+kj, (pi*nW+pj)*3 + c]  (matches the PyTorch
    # unfold(...).permute(0,2,1).reshape(b, 3L, ts, ts) channel convention),
    # zero-padded on the channel axis to a multiple of 128 lanes.
    X = patches.transpose(0, 3, 5, 2, 4, 1).reshape(B, P, C3L)
    if Cp > C3L:
        X = jnp.pad(X, ((0, 0), (0, 0), (0, Cp - C3L)))

    bblk = _pick_bblk(B, P)
    Y = denoise_core(X, cnn_params, ts, bblk)[:, :, :C3L]   # drop zero-pad channels

    # Back to (B, c, pi, ki, pj, kj) for nn.Fold overlap-add.
    p6 = Y.reshape(B, ts, ts, nH, nW, 3).transpose(0, 5, 3, 1, 4, 2)
    clean = fold_add(p6, H, W, ts, s)
    scale = jnp.asarray(_coverage_count(H, W, ts, s))[None, None, :, :]
    return clean / scale


# ----------------------------------------------------------------------------
# Laplacian pyramid + reconstruct.
# TODO(synk): build_laplacian_pyramid / reconstruct were not provided in the
# reference; a standard bilinear-resize Laplacian pyramid is used here.
# ----------------------------------------------------------------------------
def build_laplacian_pyramid(x, max_level=3):
    current = x
    laps = []
    for _ in range(max_level):
        B, C, H, W = current.shape
        down = jax.image.resize(current, (B, C, H // 2, W // 2), method="bilinear")
        up = jax.image.resize(down, (B, C, H, W), method="bilinear")
        laps.append(current - up)
        current = down
    # base (coarsest gaussian), x3 (quarter-res lap), x2 (half-res lap), x1 (full-res lap)
    return current, laps[2], laps[1], laps[0]


def reconstruct(pyr):
    img = pyr[0]
    for lap in pyr[1:]:
        B, C, H, W = lap.shape
        img = jax.image.resize(img, (B, C, H, W), method="bilinear") + lap
    return img


# ----------------------------------------------------------------------------
# Parameter init (deterministic, PyTorch Conv2d-default-like uniform bounds).
# Weights are stored pre-transposed as (C_in_pad, C_out_pad) bf16 (zero-padded to
# 128-lane multiples) with the 1/ts^2 DCT scale folded into conv1; biases are
# (1, C_out_pad) f32.
# ----------------------------------------------------------------------------
def init_cnn3_params(key, channels, inv_scale_first):
    params = []
    padded = [_round_up(c, 128) for c in channels]
    for idx in range(len(channels) - 1):
        cin, cout = channels[idx], channels[idx + 1]
        cin_p, cout_p = padded[idx], padded[idx + 1]
        key, kw, kb = jax.random.split(key, 3)
        bound = 1.0 / math.sqrt(cin)
        w = jax.random.uniform(kw, (cin, cout), jnp.float32, -bound, bound)
        b = jax.random.uniform(kb, (1, cout), jnp.float32, -bound, bound)
        if idx == 0:
            w = w * inv_scale_first       # fold dct_tiles / ts^2 into conv1's weight
        w_p = jnp.zeros((cin_p, cout_p), jnp.float32).at[:cin, :cout].set(w)
        b_p = jnp.zeros((1, cout_p), jnp.float32).at[:, :cout].set(b)
        params.append((w_p.astype(jnp.bfloat16), b_p))
    return params, key


def init_tfdl_params(key, in_size, ts, s):
    inv = 1.0 / float(ts * ts)

    def channels_for(size):
        L = ((size - ts) // s + 1) ** 2
        return [3 * L, 3 * L // 4, 3 * L // 16, 3 * L // 4, 3 * L]

    p1, key = init_cnn3_params(key, channels_for(in_size), inv)
    p2, key = init_cnn3_params(key, channels_for(in_size // 2), inv)
    p3, key = init_cnn3_params(key, channels_for(in_size // 4), inv)
    return {"scale1": p1, "scale2": p2, "scale3": p3}


# ----------------------------------------------------------------------------
# TFDL forward.
# ----------------------------------------------------------------------------
def tfdl_forward(params, x, *, ts, s):
    base_in, x3_in, x2_in, x1_in = build_laplacian_pyramid(x, max_level=3)
    # TODO(synk): CSRNet definition was not provided; enhance/enhance1/2/3 treated as identity.
    base = base_in
    x3 = denoise_forward(params["scale3"], x3_in, ts, s)
    x2 = denoise_forward(params["scale2"], x2_in, ts, s)
    x1 = denoise_forward(params["scale1"], x1_in, ts, s)
    return reconstruct([base, x3, x2, x1])


if __name__ == "__main__":
    # Small configuration consistent with the module's structure:
    # original uses in_size=224, tsize=16, stride=4; here in_size=40, tsize=4, stride=2
    # (pyramid scales 40 / 20 / 10, base 5) to keep the demo small.
    B, IN_SIZE, TSIZE, STRIDE = 2, 40, 4, 2

    key = jax.random.PRNGKey(0)
    kx, kp = jax.random.split(key)
    x = jax.random.uniform(kx, (B, 3, IN_SIZE, IN_SIZE), jnp.float32)
    params = init_tfdl_params(kp, IN_SIZE, TSIZE, STRIDE)

    fwd = jax.jit(functools.partial(tfdl_forward, ts=TSIZE, s=STRIDE))
    y = fwd(params, x)
    y = jax.block_until_ready(y)
    assert y.shape == x.shape and y.dtype == jnp.float32
    print("KERNEL_OK")
</pallas_src>

<mosaic_0001>
module attributes {stable_mosaic.version = 11 : i64} {
  func.func @_denoise_kernel(%arg0: i32, %arg1: memref<2x16x128xf32, #tpu.memory_space<vmem>>, %arg2: memref<32x32xbf16, #tpu.memory_space<vmem>>, %arg3: memref<32x32xbf16, #tpu.memory_space<vmem>>, %arg4: memref<128x128xbf16, #tpu.memory_space<vmem>>, %arg5: memref<1x128xf32, #tpu.memory_space<vmem>>, %arg6: memref<128x128xbf16, #tpu.memory_space<vmem>>, %arg7: memref<1x128xf32, #tpu.memory_space<vmem>>, %arg8: memref<128x128xbf16, #tpu.memory_space<vmem>>, %arg9: memref<1x128xf32, #tpu.memory_space<vmem>>, %arg10: memref<128x128xbf16, #tpu.memory_space<vmem>>, %arg11: memref<1x128xf32, #tpu.memory_space<vmem>>, %arg12: memref<2x16x128xf32, #tpu.memory_space<vmem>>) attributes {dimension_semantics = [#tpu.dimension_semantics<parallel>], iteration_bounds = array<i64: 1>, scalar_prefetch = 0 : i64, scratch_operands = 0 : i64, tpu.core_type = #tpu.core_type<tc>, window_params = [{transform_indices = @transform_0, window_bounds = array<i64: 2, 16, 128>}, {pipeline_mode = #tpu.pipeline_mode<synchronous>, transform_indices = @transform_1, window_bounds = array<i64: 32, 32>}, {pipeline_mode = #tpu.pipeline_mode<synchronous>, transform_indices = @transform_2, window_bounds = array<i64: 32, 32>}, {pipeline_mode = #tpu.pipeline_mode<synchronous>, transform_indices = @transform_3, window_bounds = array<i64: 128, 128>}, {pipeline_mode = #tpu.pipeline_mode<synchronous>, transform_indices = @transform_4, window_bounds = array<i64: 1, 128>}, {pipeline_mode = #tpu.pipeline_mode<synchronous>, transform_indices = @transform_5, window_bounds = array<i64: 128, 128>}, {pipeline_mode = #tpu.pipeline_mode<synchronous>, transform_indices = @transform_6, window_bounds = array<i64: 1, 128>}, {pipeline_mode = #tpu.pipeline_mode<synchronous>, transform_indices = @transform_7, window_bounds = array<i64: 128, 128>}, {pipeline_mode = #tpu.pipeline_mode<synchronous>, transform_indices = @transform_8, window_bounds = array<i64: 1, 128>}, {pipeline_mode = #tpu.pipeline_mode<synchronous>, transform_indices = @transform_9, window_bounds = array<i64: 128, 128>}, {pipeline_mode = #tpu.pipeline_mode<synchronous>, transform_indices = @transform_10, window_bounds = array<i64: 1, 128>}, {transform_indices = @transform_11, window_bounds = array<i64: 2, 16, 128>}]} {
    %c0 = arith.constant 0 : index
    %c0_0 = arith.constant 0 : index
    %c0_1 = arith.constant 0 : index
    %0 = vector.load %arg1[%c0, %c0_0, %c0_1] : memref<2x16x128xf32, #tpu.memory_space<vmem>>, vector<2x16x128xf32>
    %1 = vector.shape_cast %0 : vector<2x16x128xf32> to vector<32x128xf32>
    %2 = arith.truncf %1 : vector<32x128xf32> to vector<32x128xbf16>
    %c0_2 = arith.constant 0 : index
    %c0_3 = arith.constant 0 : index
    %3 = vector.load %arg2[%c0_2, %c0_3] : memref<32x32xbf16, #tpu.memory_space<vmem>>, vector<32x32xbf16>
    %cst = arith.constant dense<0.000000e+00> : vector<32x128xf32>
    %4 = tpu.matmul %3, %2, %cst {dimension_numbers = #tpu.dot_dimension_numbers<[1], [0], [0], [1], [0, 0, 1, 1], [], []>} : vector<32x32xbf16>, vector<32x128xbf16>, vector<32x128xf32> -> vector<32x128xf32>
    %5 = arith.truncf %4 : vector<32x128xf32> to vector<32x128xbf16>
    %c0_4 = arith.constant 0 : index
    %c0_5 = arith.constant 0 : index
    %6 = vector.load %arg4[%c0_4, %c0_5] : memref<128x128xbf16, #tpu.memory_space<vmem>>, vector<128x128xbf16>
    %cst_6 = arith.constant dense<0.000000e+00> : vector<32x128xf32>
    %7 = tpu.matmul %5, %6, %cst_6 {dimension_numbers = #tpu.dot_dimension_numbers<[1], [0], [0], [1], [0, 0, 1, 1], [], []>} : vector<32x128xbf16>, vector<128x128xbf16>, vector<32x128xf32> -> vector<32x128xf32>
    %c0_7 = arith.constant 0 : index
    %c0_8 = arith.constant 0 : index
    %8 = vector.load %arg5[%c0_7, %c0_8] : memref<1x128xf32, #tpu.memory_space<vmem>>, vector<1x128xf32>
    %9 = vector.broadcast %8 : vector<1x128xf32> to vector<32x128xf32>
    %10 = arith.addf %7, %9 : vector<32x128xf32>
    %cst_9 = arith.constant 0.000000e+00 : f32
    %11 = vector.broadcast %cst_9 : f32 to vector<32x128xf32>
    %12 = arith.maximumf %10, %11 : vector<32x128xf32>
    %13 = arith.truncf %12 : vector<32x128xf32> to vector<32x128xbf16>
    %c0_10 = arith.constant 0 : index
    %c0_11 = arith.constant 0 : index
    %14 = vector.load %arg6[%c0_10, %c0_11] : memref<128x128xbf16, #tpu.memory_space<vmem>>, vector<128x128xbf16>
    %cst_12 = arith.constant dense<0.000000e+00> : vector<32x128xf32>
    %15 = tpu.matmul %13, %14, %cst_12 {dimension_numbers = #tpu.dot_dimension_numbers<[1], [0], [0], [1], [0, 0, 1, 1], [], []>} : vector<32x128xbf16>, vector<128x128xbf16>, vector<32x128xf32> -> vector<32x128xf32>
    %c0_13 = arith.constant 0 : index
    %c0_14 = arith.constant 0 : index
    %16 = vector.load %arg7[%c0_13, %c0_14] : memref<1x128xf32, #tpu.memory_space<vmem>>, vector<1x128xf32>
    %17 = vector.broadcast %16 : vector<1x128xf32> to vector<32x128xf32>
    %18 = arith.addf %15, %17 : vector<32x128xf32>
    %cst_15 = arith.constant 0.000000e+00 : f32
    %19 = vector.broadcast %cst_15 : f32 to vector<32x128xf32>
    %20 = arith.maximumf %18, %19 : vector<32x128xf32>
    %21 = arith.truncf %20 : vector<32x128xf32> to vector<32x128xbf16>
    %c0_16 = arith.constant 0 : index
    %c0_17 = arith.constant 0 : index
    %22 = vector.load %arg8[%c0_16, %c0_17] : memref<128x128xbf16, #tpu.memory_space<vmem>>, vector<128x128xbf16>
    %cst_18 = arith.constant dense<0.000000e+00> : vector<32x128xf32>
    %23 = tpu.matmul %21, %22, %cst_18 {dimension_numbers = #tpu.dot_dimension_numbers<[1], [0], [0], [1], [0, 0, 1, 1], [], []>} : vector<32x128xbf16>, vector<128x128xbf16>, vector<32x128xf32> -> vector<32x128xf32>
    %c0_19 = arith.constant 0 : index
    %c0_20 = arith.constant 0 : index
    %24 = vector.load %arg9[%c0_19, %c0_20] : memref<1x128xf32, #tpu.memory_space<vmem>>, vector<1x128xf32>
    %25 = vector.broadcast %24 : vector<1x128xf32> to vector<32x128xf32>
    %26 = arith.addf %23, %25 : vector<32x128xf32>
    %cst_21 = arith.constant 0.000000e+00 : f32
    %27 = vector.broadcast %cst_21 : f32 to vector<32x128xf32>
    %28 = arith.maximumf %26, %27 : vector<32x128xf32>
    %29 = arith.truncf %28 : vector<32x128xf32> to vector<32x128xbf16>
    %c0_22 = arith.constant 0 : index
    %c0_23 = arith.constant 0 : index
    %30 = vector.load %arg10[%c0_22, %c0_23] : memref<128x128xbf16, #tpu.memory_space<vmem>>, vector<128x128xbf16>
    %cst_24 = arith.constant dense<0.000000e+00> : vector<32x128xf32>
    %31 = tpu.matmul %29, %30, %cst_24 {dimension_numbers = #tpu.dot_dimension_numbers<[1], [0], [0], [1], [0, 0, 1, 1], [], []>} : vector<32x128xbf16>, vector<128x128xbf16>, vector<32x128xf32> -> vector<32x128xf32>
    %c0_25 = arith.constant 0 : index
    %c0_26 = arith.constant 0 : index
    %32 = vector.load %arg11[%c0_25, %c0_26] : memref<1x128xf32, #tpu.memory_space<vmem>>, vector<1x128xf32>
    %33 = vector.broadcast %32 : vector<1x128xf32> to vector<32x128xf32>
    %34 = arith.addf %31, %33 : vector<32x128xf32>
    %35 = arith.negf %34 : vector<32x128xf32>
    %36 = math.exp %35 : vector<32x128xf32>
    %cst_27 = arith.constant 1.000000e+00 : f32
    %37 = vector.broadcast %cst_27 : f32 to vector<32x128xf32>
    %38 = arith.addf %37, %36 : vector<32x128xf32>
    %39 = arith.divf %37, %38 : vector<32x128xf32>
    %40 = arith.mulf %39, %4 : vector<32x128xf32>
    %41 = arith.truncf %40 : vector<32x128xf32> to vector<32x128xbf16>
    %c0_28 = arith.constant 0 : index
    %c0_29 = arith.constant 0 : index
    %42 = vector.load %arg3[%c0_28, %c0_29] : memref<32x32xbf16, #tpu.memory_space<vmem>>, vector<32x32xbf16>
    %cst_30 = arith.constant dense<0.000000e+00> : vector<32x128xf32>
    %43 = tpu.matmul %42, %41, %cst_30 {dimension_numbers = #tpu.dot_dimension_numbers<[1], [0], [0], [1], [0, 0, 1, 1], [], []>} : vector<32x32xbf16>, vector<32x128xbf16>, vector<32x128xf32> -> vector<32x128xf32>
    %44 = vector.shape_cast %43 : vector<32x128xf32> to vector<2x16x128xf32>
    %c0_31 = arith.constant 0 : index
    %c0_32 = arith.constant 0 : index
    %c0_33 = arith.constant 0 : index
    %45 = vector.load %arg12[%c0_31, %c0_32, %c0_33] : memref<2x16x128xf32, #tpu.memory_space<vmem>>, vector<2x16x128xf32>
    tpu.vector_store %arg12[%c0_31, %c0_32, %c0_33], %44 {strides = array<i32>} : memref<2x16x128xf32, #tpu.memory_space<vmem>>, vector<2x16x128xf32>,
    return
  }
  func.func @transform_0(%arg0: i32) -> (i32, i32, i32) {
    %c0_i32 = arith.constant 0 : i32
    %c0_i32_0 = arith.constant 0 : i32
    %c0_i32_1 = arith.constant 0 : i32
    return %arg0, %c0_i32, %c0_i32_0 : i32, i32, i32
  }
  func.func @transform_1(%arg0: i32) -> (i32, i32) {
    %c0_i32 = arith.constant 0 : i32
    %c0_i32_0 = arith.constant 0 : i32
    %c0_i32_1 = arith.constant 0 : i32
    return %c0_i32, %c0_i32_0 : i32, i32
  }
  func.func @transform_2(%arg0: i32) -> (i32, i32) {
    %c0_i32 = arith.constant 0 : i32
    %c0_i32_0 = arith.constant 0 : i32
    %c0_i32_1 = arith.constant 0 : i32
    return %c0_i32, %c0_i32_0 : i32, i32
  }
  func.func @transform_3(%arg0: i32) -> (i32, i32) {
    %c0_i32 = arith.constant 0 : i32
    %c0_i32_0 = arith.constant 0 : i32
    %c0_i32_1 = arith.constant 0 : i32
    return %c0_i32, %c0_i32_0 : i32, i32
  }
  func.func @transform_4(%arg0: i32) -> (i32, i32) {
    %c0_i32 = arith.constant 0 : i32
    %c0_i32_0 = arith.constant 0 : i32
    %c0_i32_1 = arith.constant 0 : i32
    return %c0_i32, %c0_i32_0 : i32, i32
  }
  func.func @transform_5(%arg0: i32) -> (i32, i32) {
    %c0_i32 = arith.constant 0 : i32
    %c0_i32_0 = arith.constant 0 : i32
    %c0_i32_1 = arith.constant 0 : i32
    return %c0_i32, %c0_i32_0 : i32, i32
  }
  func.func @transform_6(%arg0: i32) -> (i32, i32) {
    %c0_i32 = arith.constant 0 : i32
    %c0_i32_0 = arith.constant 0 : i32
    %c0_i32_1 = arith.constant 0 : i32
    return %c0_i32, %c0_i32_0 : i32, i32
  }
  func.func @transform_7(%arg0: i32) -> (i32, i32) {
    %c0_i32 = arith.constant 0 : i32
    %c0_i32_0 = arith.constant 0 : i32
    %c0_i32_1 = arith.constant 0 : i32
    return %c0_i32, %c0_i32_0 : i32, i32
  }
  func.func @transform_8(%arg0: i32) -> (i32, i32) {
    %c0_i32 = arith.constant 0 : i32
    %c0_i32_0 = arith.constant 0 : i32
    %c0_i32_1 = arith.constant 0 : i32
    return %c0_i32, %c0_i32_0 : i32, i32
  }
  func.func @transform_9(%arg0: i32) -> (i32, i32) {
    %c0_i32 = arith.constant 0 : i32
    %c0_i32_0 = arith.constant 0 : i32
    %c0_i32_1 = arith.constant 0 : i32
    return %c0_i32, %c0_i32_0 : i32, i32
  }
  func.func @transform_10(%arg0: i32) -> (i32, i32) {
    %c0_i32 = arith.constant 0 : i32
    %c0_i32_0 = arith.constant 0 : i32
    %c0_i32_1 = arith.constant 0 : i32
    return %c0_i32, %c0_i32_0 : i32, i32
  }
  func.func @transform_11(%arg0: i32) -> (i32, i32, i32) {
    %c0_i32 = arith.constant 0 : i32
    %c0_i32_0 = arith.constant 0 : i32
    %c0_i32_1 = arith.constant 0 : i32
    return %arg0, %c0_i32, %c0_i32_0 : i32, i32, i32
  }
}

module attributes {stable_mosaic.version = 11 : i64} {
  func.func @_denoise_kernel(%arg0: i32, %arg1: memref<2x16x256xf32, #tpu.memory_space<vmem>>, %arg2: memref<32x32xbf16, #tpu.memory_space<vmem>>, %arg3: memref<32x32xbf16, #tpu.memory_space<vmem>>, %arg4: memref<256x128xbf16, #tpu.memory_space<vmem>>, %arg5: memref<1x128xf32, #tpu.memory_space<vmem>>, %arg6: memref<128x128xbf16, #tpu.memory_space<vmem>>, %arg7: memref<1x128xf32, #tpu.memory_space<vmem>>, %arg8: memref<128x128xbf16, #tpu.memory_space<vmem>>, %arg9: memref<1x128xf32, #tpu.memory_space<vmem>>, %arg10: memref<128x256xbf16, #tpu.memory_space<vmem>>, %arg11: memref<1x256xf32, #tpu.memory_space<vmem>>, %arg12: memref<2x16x256xf32, #tpu.memory_space<vmem>>) attributes {dimension_semantics = [#tpu.dimension_semantics<parallel>], iteration_bounds = array<i64: 1>, scalar_prefetch = 0 : i64, scratch_operands = 0 : i64, tpu.core_type = #tpu.core_type<tc>, window_params = [{transform_indices = @transform_0, window_bounds = array<i64: 2, 16, 256>}, {pipeline_mode = #tpu.pipeline_mode<synchronous>, transform_indices = @transform_1, window_bounds = array<i64: 32, 32>}, {pipeline_mode = #tpu.pipeline_mode<synchronous>, transform_indices = @transform_2, window_bounds = array<i64: 32, 32>}, {pipeline_mode = #tpu.pipeline_mode<synchronous>, transform_indices = @transform_3, window_bounds = array<i64: 256, 128>}, {pipeline_mode = #tpu.pipeline_mode<synchronous>, transform_indices = @transform_4, window_bounds = array<i64: 1, 128>}, {pipeline_mode = #tpu.pipeline_mode<synchronous>, transform_indices = @transform_5, window_bounds = array<i64: 128, 128>}, {pipeline_mode = #tpu.pipeline_mode<synchronous>, transform_indices = @transform_6, window_bounds = array<i64: 1, 128>}, {pipeline_mode = #tpu.pipeline_mode<synchronous>, transform_indices = @transform_7, window_bounds = array<i64: 128, 128>}, {pipeline_mode = #tpu.pipeline_mode<synchronous>, transform_indices = @transform_8, window_bounds = array<i64: 1, 128>}, {pipeline_mode = #tpu.pipeline_mode<synchronous>, transform_indices = @transform_9, window_bounds = array<i64: 128, 256>}, {pipeline_mode = #tpu.pipeline_mode<synchronous>, transform_indices = @transform_10, window_bounds = array<i64: 1, 256>}, {transform_indices = @transform_11, window_bounds = array<i64: 2, 16, 256>}]} {
    %c0 = arith.constant 0 : index
    %c0_0 = arith.constant 0 : index
    %c0_1 = arith.constant 0 : index
    %0 = vector.load %arg1[%c0, %c0_0, %c0_1] : memref<2x16x256xf32, #tpu.memory_space<vmem>>, vector<2x16x256xf32>
    %1 = vector.shape_cast %0 : vector<2x16x256xf32> to vector<32x256xf32>
    %2 = arith.truncf %1 : vector<32x256xf32> to vector<32x256xbf16>
    %c0_2 = arith.constant 0 : index
    %c0_3 = arith.constant 0 : index
    %3 = vector.load %arg2[%c0_2, %c0_3] : memref<32x32xbf16, #tpu.memory_space<vmem>>, vector<32x32xbf16>
    %cst = arith.constant dense<0.000000e+00> : vector<32x256xf32>
    %4 = tpu.matmul %3, %2, %cst {dimension_numbers = #tpu.dot_dimension_numbers<[1], [0], [0], [1], [0, 0, 1, 1], [], []>} : vector<32x32xbf16>, vector<32x256xbf16>, vector<32x256xf32> -> vector<32x256xf32>
    %5 = arith.truncf %4 : vector<32x256xf32> to vector<32x256xbf16>
    %c0_4 = arith.constant 0 : index
    %c0_5 = arith.constant 0 : index
    %6 = vector.load %arg4[%c0_4, %c0_5] : memref<256x128xbf16, #tpu.memory_space<vmem>>, vector<256x128xbf16>
    %cst_6 = arith.constant dense<0.000000e+00> : vector<32x128xf32>
    %7 = tpu.matmul %5, %6, %cst_6 {dimension_numbers = #tpu.dot_dimension_numbers<[1], [0], [0], [1], [0, 0, 1, 1], [], []>} : vector<32x256xbf16>, vector<256x128xbf16>, vector<32x128xf32> -> vector<32x128xf32>
    %c0_7 = arith.constant 0 : index
    %c0_8 = arith.constant 0 : index
    %8 = vector.load %arg5[%c0_7, %c0_8] : memref<1x128xf32, #tpu.memory_space<vmem>>, vector<1x128xf32>
    %9 = vector.broadcast %8 : vector<1x128xf32> to vector<32x128xf32>
    %10 = arith.addf %7, %9 : vector<32x128xf32>
    %cst_9 = arith.constant 0.000000e+00 : f32
    %11 = vector.broadcast %cst_9 : f32 to vector<32x128xf32>
    %12 = arith.maximumf %10, %11 : vector<32x128xf32>
    %13 = arith.truncf %12 : vector<32x128xf32> to vector<32x128xbf16>
    %c0_10 = arith.constant 0 : index
    %c0_11 = arith.constant 0 : index
    %14 = vector.load %arg6[%c0_10, %c0_11] : memref<128x128xbf16, #tpu.memory_space<vmem>>, vector<128x128xbf16>
    %cst_12 = arith.constant dense<0.000000e+00> : vector<32x128xf32>
    %15 = tpu.matmul %13, %14, %cst_12 {dimension_numbers = #tpu.dot_dimension_numbers<[1], [0], [0], [1], [0, 0, 1, 1], [], []>} : vector<32x128xbf16>, vector<128x128xbf16>, vector<32x128xf32> -> vector<32x128xf32>
    %c0_13 = arith.constant 0 : index
    %c0_14 = arith.constant 0 : index
    %16 = vector.load %arg7[%c0_13, %c0_14] : memref<1x128xf32, #tpu.memory_space<vmem>>, vector<1x128xf32>
    %17 = vector.broadcast %16 : vector<1x128xf32> to vector<32x128xf32>
    %18 = arith.addf %15, %17 : vector<32x128xf32>
    %cst_15 = arith.constant 0.000000e+00 : f32
    %19 = vector.broadcast %cst_15 : f32 to vector<32x128xf32>
    %20 = arith.maximumf %18, %19 : vector<32x128xf32>
    %21 = arith.truncf %20 : vector<32x128xf32> to vector<32x128xbf16>
    %c0_16 = arith.constant 0 : index
    %c0_17 = arith.constant 0 : index
    %22 = vector.load %arg8[%c0_16, %c0_17] : memref<128x128xbf16, #tpu.memory_space<vmem>>, vector<128x128xbf16>
    %cst_18 = arith.constant dense<0.000000e+00> : vector<32x128xf32>
    %23 = tpu.matmul %21, %22, %cst_18 {dimension_numbers = #tpu.dot_dimension_numbers<[1], [0], [0], [1], [0, 0, 1, 1], [], []>} : vector<32x128xbf16>, vector<128x128xbf16>, vector<32x128xf32> -> vector<32x128xf32>
    %c0_19 = arith.constant 0 : index
    %c0_20 = arith.constant 0 : index
    %24 = vector.load %arg9[%c0_19, %c0_20] : memref<1x128xf32, #tpu.memory_space<vmem>>, vector<1x128xf32>
    %25 = vector.broadcast %24 : vector<1x128xf32> to vector<32x128xf32>
    %26 = arith.addf %23, %25 : vector<32x128xf32>
    %cst_21 = arith.constant 0.000000e+00 : f32
    %27 = vector.broadcast %cst_21 : f32 to vector<32x128xf32>
    %28 = arith.maximumf %26, %27 : vector<32x128xf32>
    %29 = arith.truncf %28 : vector<32x128xf32> to vector<32x128xbf16>
    %c0_22 = arith.constant 0 : index
    %c0_23 = arith.constant 0 : index
    %30 = vector.load %arg10[%c0_22, %c0_23] : memref<128x256xbf16, #tpu.memory_space<vmem>>, vector<128x256xbf16>
    %cst_24 = arith.constant dense<0.000000e+00> : vector<32x256xf32>
    %31 = tpu.matmul %29, %30, %cst_24 {dimension_numbers = #tpu.dot_dimension_numbers<[1], [0], [0], [1], [0, 0, 1, 1], [], []>} : vector<32x128xbf16>, vector<128x256xbf16>, vector<32x256xf32> -> vector<32x256xf32>
    %c0_25 = arith.constant 0 : index
    %c0_26 = arith.constant 0 : index
    %32 = vector.load %arg11[%c0_25, %c0_26] : memref<1x256xf32, #tpu.memory_space<vmem>>, vector<1x256xf32>
    %33 = vector.broadcast %32 : vector<1x256xf32> to vector<32x256xf32>
    %34 = arith.addf %31, %33 : vector<32x256xf32>
    %35 = arith.negf %34 : vector<32x256xf32>
    %36 = math.exp %35 : vector<32x256xf32>
    %cst_27 = arith.constant 1.000000e+00 : f32
    %37 = vector.broadcast %cst_27 : f32 to vector<32x256xf32>
    %38 = arith.addf %37, %36 : vector<32x256xf32>
    %39 = arith.divf %37, %38 : vector<32x256xf32>
    %40 = arith.mulf %39, %4 : vector<32x256xf32>
    %41 = arith.truncf %40 : vector<32x256xf32> to vector<32x256xbf16>
    %c0_28 = arith.constant 0 : index
    %c0_29 = arith.constant 0 : index
    %42 = vector.load %arg3[%c0_28, %c0_29] : memref<32x32xbf16, #tpu.memory_space<vmem>>, vector<32x32xbf16>
    %cst_30 = arith.constant dense<0.000000e+00> : vector<32x256xf32>
    %43 = tpu.matmul %42, %41, %cst_30 {dimension_numbers = #tpu.dot_dimension_numbers<[1], [0], [0], [1], [0, 0, 1, 1], [], []>} : vector<32x32xbf16>, vector<32x256xbf16>, vector<32x256xf32> -> vector<32x256xf32>
    %44 = vector.shape_cast %43 : vector<32x256xf32> to vector<2x16x256xf32>
    %c0_31 = arith.constant 0 : index
    %c0_32 = arith.constant 0 : index
    %c0_33 = arith.constant 0 : index
    %45 = vector.load %arg12[%c0_31, %c0_32, %c0_33] : memref<2x16x256xf32, #tpu.memory_space<vmem>>, vector<2x16x256xf32>
    tpu.vector_store %arg12[%c0_31, %c0_32, %c0_33], %44 {strides = array<i32>} : memref<2x16x256xf32, #tpu.memory_space<vmem>>, vector<2x16x256xf32>,
    return
  }
  func.func @transform_0(%arg0: i32) -> (i32, i32, i32) {
    %c0_i32 = arith.constant 0 : i32
    %c0_i32_0 = arith.constant 0 : i32
    %c0_i32_1 = arith.constant 0 : i32
    return %arg0, %c0_i32, %c0_i32_0 : i32, i32, i32
  }
  func.func @transform_1(%arg0: i32) -> (i32, i32) {
    %c0_i32 = arith.constant 0 : i32
    %c0_i32_0 = arith.constant 0 : i32
    %c0_i32_1 = arith.constant 0 : i32
    return %c0_i32, %c0_i32_0 : i32, i32
  }
  func.func @transform_2(%arg0: i32) -> (i32, i32) {
    %c0_i32 = arith.constant 0 : i32
    %c0_i32_0 = arith.constant 0 : i32
    %c0_i32_1 = arith.constant 0 : i32
    return %c0_i32, %c0_i32_0 : i32, i32
  }
  func.func @transform_3(%arg0: i32) -> (i32, i32) {
    %c0_i32 = arith.constant 0 : i32
    %c0_i32_0 = arith.constant 0 : i32
    %c0_i32_1 = arith.constant 0 : i32
    return %c0_i32, %c0_i32_0 : i32, i32
  }
  func.func @transform_4(%arg0: i32) -> (i32, i32) {
    %c0_i32 = arith.constant 0 : i32
    %c0_i32_0 = arith.constant 0 : i32
    %c0_i32_1 = arith.constant 0 : i32
    return %c0_i32, %c0_i32_0 : i32, i32
  }
  func.func @transform_5(%arg0: i32) -> (i32, i32) {
    %c0_i32 = arith.constant 0 : i32
    %c0_i32_0 = arith.constant 0 : i32
    %c0_i32_1 = arith.constant 0 : i32
    return %c0_i32, %c0_i32_0 : i32, i32
  }
  func.func @transform_6(%arg0: i32) -> (i32, i32) {
    %c0_i32 = arith.constant 0 : i32
    %c0_i32_0 = arith.constant 0 : i32
    %c0_i32_1 = arith.constant 0 : i32
    return %c0_i32, %c0_i32_0 : i32, i32
  }
  func.func @transform_7(%arg0: i32) -> (i32, i32) {
    %c0_i32 = arith.constant 0 : i32
    %c0_i32_0 = arith.constant 0 : i32
    %c0_i32_1 = arith.constant 0 : i32
    return %c0_i32, %c0_i32_0 : i32, i32
  }
  func.func @transform_8(%arg0: i32) -> (i32, i32) {
    %c0_i32 = arith.constant 0 : i32
    %c0_i32_0 = arith.constant 0 : i32
    %c0_i32_1 = arith.constant 0 : i32
    return %c0_i32, %c0_i32_0 : i32, i32
  }
  func.func @transform_9(%arg0: i32) -> (i32, i32) {
    %c0_i32 = arith.constant 0 : i32
    %c0_i32_0 = arith.constant 0 : i32
    %c0_i32_1 = arith.constant 0 : i32
    return %c0_i32, %c0_i32_0 : i32, i32
  }
  func.func @transform_10(%arg0: i32) -> (i32, i32) {
    %c0_i32 = arith.constant 0 : i32
    %c0_i32_0 = arith.constant 0 : i32
    %c0_i32_1 = arith.constant 0 : i32
    return %c0_i32, %c0_i32_0 : i32, i32
  }
  func.func @transform_11(%arg0: i32) -> (i32, i32, i32) {
    %c0_i32 = arith.constant 0 : i32
    %c0_i32_0 = arith.constant 0 : i32
    %c0_i32_1 = arith.constant 0 : i32
    return %arg0, %c0_i32, %c0_i32_0 : i32, i32, i32
  }
}

module attributes {stable_mosaic.version = 11 : i64} {
  func.func @_denoise_kernel(%arg0: i32, %arg1: memref<2x16x1152xf32, #tpu.memory_space<vmem>>, %arg2: memref<32x32xbf16, #tpu.memory_space<vmem>>, %arg3: memref<32x32xbf16, #tpu.memory_space<vmem>>, %arg4: memref<1152x384xbf16, #tpu.memory_space<vmem>>, %arg5: memref<1x384xf32, #tpu.memory_space<vmem>>, %arg6: memref<384x128xbf16, #tpu.memory_space<vmem>>, %arg7: memref<1x128xf32, #tpu.memory_space<vmem>>, %arg8: memref<128x384xbf16, #tpu.memory_space<vmem>>, %arg9: memref<1x384xf32, #tpu.memory_space<vmem>>, %arg10: memref<384x1152xbf16, #tpu.memory_space<vmem>>, %arg11: memref<1x1152xf32, #tpu.memory_space<vmem>>, %arg12: memref<2x16x1152xf32, #tpu.memory_space<vmem>>) attributes {dimension_semantics = [#tpu.dimension_semantics<parallel>], iteration_bounds = array<i64: 1>, scalar_prefetch = 0 : i64, scratch_operands = 0 : i64, tpu.core_type = #tpu.core_type<tc>, window_params = [{transform_indices = @transform_0, window_bounds = array<i64: 2, 16, 1152>}, {pipeline_mode = #tpu.pipeline_mode<synchronous>, transform_indices = @transform_1, window_bounds = array<i64: 32, 32>}, {pipeline_mode = #tpu.pipeline_mode<synchronous>, transform_indices = @transform_2, window_bounds = array<i64: 32, 32>}, {pipeline_mode = #tpu.pipeline_mode<synchronous>, transform_indices = @transform_3, window_bounds = array<i64: 1152, 384>}, {pipeline_mode = #tpu.pipeline_mode<synchronous>, transform_indices = @transform_4, window_bounds = array<i64: 1, 384>}, {pipeline_mode = #tpu.pipeline_mode<synchronous>, transform_indices = @transform_5, window_bounds = array<i64: 384, 128>}, {pipeline_mode = #tpu.pipeline_mode<synchronous>, transform_indices = @transform_6, window_bounds = array<i64: 1, 128>}, {pipeline_mode = #tpu.pipeline_mode<synchronous>, transform_indices = @transform_7, window_bounds = array<i64: 128, 384>}, {pipeline_mode = #tpu.pipeline_mode<synchronous>, transform_indices = @transform_8, window_bounds = array<i64: 1, 384>}, {pipeline_mode = #tpu.pipeline_mode<synchronous>, transform_indices = @transform_9, window_bounds = array<i64: 384, 1152>}, {pipeline_mode = #tpu.pipeline_mode<synchronous>, transform_indices = @transform_10, window_bounds = array<i64: 1, 1152>}, {transform_indices = @transform_11, window_bounds = array<i64: 2, 16, 1152>}]} {
    %c0 = arith.constant 0 : index
    %c0_0 = arith.constant 0 : index
    %c0_1 = arith.constant 0 : index
    %0 = vector.load %arg1[%c0, %c0_0, %c0_1] : memref<2x16x1152xf32, #tpu.memory_space<vmem>>, vector<2x16x1152xf32>
    %1 = vector.shape_cast %0 : vector<2x16x1152xf32> to vector<32x1152xf32>
    %2 = arith.truncf %1 : vector<32x1152xf32> to vector<32x1152xbf16>
    %c0_2 = arith.constant 0 : index
    %c0_3 = arith.constant 0 : index
    %3 = vector.load %arg2[%c0_2, %c0_3] : memref<32x32xbf16, #tpu.memory_space<vmem>>, vector<32x32xbf16>
    %cst = arith.constant dense<0.000000e+00> : vector<32x1152xf32>
    %4 = tpu.matmul %3, %2, %cst {dimension_numbers = #tpu.dot_dimension_numbers<[1], [0], [0], [1], [0, 0, 1, 1], [], []>} : vector<32x32xbf16>, vector<32x1152xbf16>, vector<32x1152xf32> -> vector<32x1152xf32>
    %5 = arith.truncf %4 : vector<32x1152xf32> to vector<32x1152xbf16>
    %c0_4 = arith.constant 0 : index
    %c0_5 = arith.constant 0 : index
    %6 = vector.load %arg4[%c0_4, %c0_5] : memref<1152x384xbf16, #tpu.memory_space<vmem>>, vector<1152x384xbf16>
    %cst_6 = arith.constant dense<0.000000e+00> : vector<32x384xf32>
    %7 = tpu.matmul %5, %6, %cst_6 {dimension_numbers = #tpu.dot_dimension_numbers<[1], [0], [0], [1], [0, 0, 1, 1], [], []>} : vector<32x1152xbf16>, vector<1152x384xbf16>, vector<32x384xf32> -> vector<32x384xf32>
    %c0_7 = arith.constant 0 : index
    %c0_8 = arith.constant 0 : index
    %8 = vector.load %arg5[%c0_7, %c0_8] : memref<1x384xf32, #tpu.memory_space<vmem>>, vector<1x384xf32>
    %9 = vector.broadcast %8 : vector<1x384xf32> to vector<32x384xf32>
    %10 = arith.addf %7, %9 : vector<32x384xf32>
    %cst_9 = arith.constant 0.000000e+00 : f32
    %11 = vector.broadcast %cst_9 : f32 to vector<32x384xf32>
    %12 = arith.maximumf %10, %11 : vector<32x384xf32>
    %13 = arith.truncf %12 : vector<32x384xf32> to vector<32x384xbf16>
    %c0_10 = arith.constant 0 : index
    %c0_11 = arith.constant 0 : index
    %14 = vector.load %arg6[%c0_10, %c0_11] : memref<384x128xbf16, #tpu.memory_space<vmem>>, vector<384x128xbf16>
    %cst_12 = arith.constant dense<0.000000e+00> : vector<32x128xf32>
    %15 = tpu.matmul %13, %14, %cst_12 {dimension_numbers = #tpu.dot_dimension_numbers<[1], [0], [0], [1], [0, 0, 1, 1], [], []>} : vector<32x384xbf16>, vector<384x128xbf16>, vector<32x128xf32> -> vector<32x128xf32>
    %c0_13 = arith.constant 0 : index
    %c0_14 = arith.constant 0 : index
    %16 = vector.load %arg7[%c0_13, %c0_14] : memref<1x128xf32, #tpu.memory_space<vmem>>, vector<1x128xf32>
    %17 = vector.broadcast %16 : vector<1x128xf32> to vector<32x128xf32>
    %18 = arith.addf %15, %17 : vector<32x128xf32>
    %cst_15 = arith.constant 0.000000e+00 : f32
    %19 = vector.broadcast %cst_15 : f32 to vector<32x128xf32>
    %20 = arith.maximumf %18, %19 : vector<32x128xf32>
    %21 = arith.truncf %20 : vector<32x128xf32> to vector<32x128xbf16>
    %c0_16 = arith.constant 0 : index
    %c0_17 = arith.constant 0 : index
    %22 = vector.load %arg8[%c0_16, %c0_17] : memref<128x384xbf16, #tpu.memory_space<vmem>>, vector<128x384xbf16>
    %cst_18 = arith.constant dense<0.000000e+00> : vector<32x384xf32>
    %23 = tpu.matmul %21, %22, %cst_18 {dimension_numbers = #tpu.dot_dimension_numbers<[1], [0], [0], [1], [0, 0, 1, 1], [], []>} : vector<32x128xbf16>, vector<128x384xbf16>, vector<32x384xf32> -> vector<32x384xf32>
    %c0_19 = arith.constant 0 : index
    %c0_20 = arith.constant 0 : index
    %24 = vector.load %arg9[%c0_19, %c0_20] : memref<1x384xf32, #tpu.memory_space<vmem>>, vector<1x384xf32>
    %25 = vector.broadcast %24 : vector<1x384xf32> to vector<32x384xf32>
    %26 = arith.addf %23, %25 : vector<32x384xf32>
    %cst_21 = arith.constant 0.000000e+00 : f32
    %27 = vector.broadcast %cst_21 : f32 to vector<32x384xf32>
    %28 = arith.maximumf %26, %27 : vector<32x384xf32>
    %29 = arith.truncf %28 : vector<32x384xf32> to vector<32x384xbf16>
    %c0_22 = arith.constant 0 : index
    %c0_23 = arith.constant 0 : index
    %30 = vector.load %arg10[%c0_22, %c0_23] : memref<384x1152xbf16, #tpu.memory_space<vmem>>, vector<384x1152xbf16>
    %cst_24 = arith.constant dense<0.000000e+00> : vector<32x1152xf32>
    %31 = tpu.matmul %29, %30, %cst_24 {dimension_numbers = #tpu.dot_dimension_numbers<[1], [0], [0], [1], [0, 0, 1, 1], [], []>} : vector<32x384xbf16>, vector<384x1152xbf16>, vector<32x1152xf32> -> vector<32x1152xf32>
    %c0_25 = arith.constant 0 : index
    %c0_26 = arith.constant 0 : index
    %32 = vector.load %arg11[%c0_25, %c0_26] : memref<1x1152xf32, #tpu.memory_space<vmem>>, vector<1x1152xf32>
    %33 = vector.broadcast %32 : vector<1x1152xf32> to vector<32x1152xf32>
    %34 = arith.addf %31, %33 : vector<32x1152xf32>
    %35 = arith.negf %34 : vector<32x1152xf32>
    %36 = math.exp %35 : vector<32x1152xf32>
    %cst_27 = arith.constant 1.000000e+00 : f32
    %37 = vector.broadcast %cst_27 : f32 to vector<32x1152xf32>
    %38 = arith.addf %37, %36 : vector<32x1152xf32>
    %39 = arith.divf %37, %38 : vector<32x1152xf32>
    %40 = arith.mulf %39, %4 : vector<32x1152xf32>
    %41 = arith.truncf %40 : vector<32x1152xf32> to vector<32x1152xbf16>
    %c0_28 = arith.constant 0 : index
    %c0_29 = arith.constant 0 : index
    %42 = vector.load %arg3[%c0_28, %c0_29] : memref<32x32xbf16, #tpu.memory_space<vmem>>, vector<32x32xbf16>
    %cst_30 = arith.constant dense<0.000000e+00> : vector<32x1152xf32>
    %43 = tpu.matmul %42, %41, %cst_30 {dimension_numbers = #tpu.dot_dimension_numbers<[1], [0], [0], [1], [0, 0, 1, 1], [], []>} : vector<32x32xbf16>, vector<32x1152xbf16>, vector<32x1152xf32> -> vector<32x1152xf32>
    %44 = vector.shape_cast %43 : vector<32x1152xf32> to vector<2x16x1152xf32>
    %c0_31 = arith.constant 0 : index
    %c0_32 = arith.constant 0 : index
    %c0_33 = arith.constant 0 : index
    %45 = vector.load %arg12[%c0_31, %c0_32, %c0_33] : memref<2x16x1152xf32, #tpu.memory_space<vmem>>, vector<2x16x1152xf32>
    tpu.vector_store %arg12[%c0_31, %c0_32, %c0_33], %44 {strides = array<i32>} : memref<2x16x1152xf32, #tpu.memory_space<vmem>>, vector<2x16x1152xf32>,
    return
  }
  func.func @transform_0(%arg0: i32) -> (i32, i32, i32) {
    %c0_i32 = arith.constant 0 : i32
    %c0_i32_0 = arith.constant 0 : i32
    %c0_i32_1 = arith.constant 0 : i32
    return %arg0, %c0_i32, %c0_i32_0 : i32, i32, i32
  }
  func.func @transform_1(%arg0: i32) -> (i32, i32) {
    %c0_i32 = arith.constant 0 : i32
    %c0_i32_0 = arith.constant 0 : i32
    %c0_i32_1 = arith.constant 0 : i32
    return %c0_i32, %c0_i32_0 : i32, i32
  }
  func.func @transform_2(%arg0: i32) -> (i32, i32) {
    %c0_i32 = arith.constant 0 : i32
    %c0_i32_0 = arith.constant 0 : i32
    %c0_i32_1 = arith.constant 0 : i32
    return %c0_i32, %c0_i32_0 : i32, i32
  }
  func.func @transform_3(%arg0: i32) -> (i32, i32) {
    %c0_i32 = arith.constant 0 : i32
    %c0_i32_0 = arith.constant 0 : i32
    %c0_i32_1 = arith.constant 0 : i32
    return %c0_i32, %c0_i32_0 : i32, i32
  }
  func.func @transform_4(%arg0: i32) -> (i32, i32) {
    %c0_i32 = arith.constant 0 : i32
    %c0_i32_0 = arith.constant 0 : i32
    %c0_i32_1 = arith.constant 0 : i32
    return %c0_i32, %c0_i32_0 : i32, i32
  }
  func.func @transform_5(%arg0: i32) -> (i32, i32) {
    %c0_i32 = arith.constant 0 : i32
    %c0_i32_0 = arith.constant 0 : i32
    %c0_i32_1 = arith.constant 0 : i32
    return %c0_i32, %c0_i32_0 : i32, i32
  }
  func.func @transform_6(%arg0: i32) -> (i32, i32) {
    %c0_i32 = arith.constant 0 : i32
    %c0_i32_0 = arith.constant 0 : i32
    %c0_i32_1 = arith.constant 0 : i32
    return %c0_i32, %c0_i32_0 : i32, i32
  }
  func.func @transform_7(%arg0: i32) -> (i32, i32) {
    %c0_i32 = arith.constant 0 : i32
    %c0_i32_0 = arith.constant 0 : i32
    %c0_i32_1 = arith.constant 0 : i32
    return %c0_i32, %c0_i32_0 : i32, i32
  }
  func.func @transform_8(%arg0: i32) -> (i32, i32) {
    %c0_i32 = arith.constant 0 : i32
    %c0_i32_0 = arith.constant 0 : i32
    %c0_i32_1 = arith.constant 0 : i32
    return %c0_i32, %c0_i32_0 : i32, i32
  }
  func.func @transform_9(%arg0: i32) -> (i32, i32) {
    %c0_i32 = arith.constant 0 : i32
    %c0_i32_0 = arith.constant 0 : i32
    %c0_i32_1 = arith.constant 0 : i32
    return %c0_i32, %c0_i32_0 : i32, i32
  }
  func.func @transform_10(%arg0: i32) -> (i32, i32) {
    %c0_i32 = arith.constant 0 : i32
    %c0_i32_0 = arith.constant 0 : i32
    %c0_i32_1 = arith.constant 0 : i32
    return %c0_i32, %c0_i32_0 : i32, i32
  }
  func.func @transform_11(%arg0: i32) -> (i32, i32, i32) {
    %c0_i32 = arith.constant 0 : i32
    %c0_i32_0 = arith.constant 0 : i32
    %c0_i32_1 = arith.constant 0 : i32
    return %arg0, %c0_i32, %c0_i32_0 : i32, i32, i32
  }
}

</mosaic_0001>

<bundles_post_ra>
// kernel: tfdl_forward.3
= control target key start
LH: loop header
LB: loop body
LE: loop exit
PB: predicated region body
PF: predicated region fallthrough
CT: control target
= control target key end

     0   :  { %vm59_vm0 = vcmask 261120   ;;  %s1190_s0 = inlined_call_operand.vmem [shape: f32[2,16,128], index: 0, kind: input, shape index: {}, may-alias: {0,11}]   ;;  %s1191_s1 = inlined_call_operand.vmem [shape: bf16[32,32], index: 1, kind: input, shape index: {}]   ;;  %s1192_s3 = inlined_call_operand.vmem [shape: bf16[128,128], index: 3, kind: input, shape index: {}]   ;;  %s1193_s5 = inlined_call_operand.vmem [shape: bf16[128,128], index: 5, kind: input, shape index: {}]   ;;  %s1194_s7 = inlined_call_operand.vmem [shape: bf16[128,128], index: 7, kind: input, shape index: {}]   ;;  %s1195_s4 = inlined_call_operand.vmem [shape: f32[1,128], index: 4, kind: input, shape index: {}]   ;;  %s1196_s9 = inlined_call_operand.vmem [shape: bf16[128,128], index: 9, kind: input, shape index: {}]   ;;  %s1197_s6 = inlined_call_operand.vmem [shape: f32[1,128], index: 6, kind: input, shape index: {}]   ;;  %s1198_s8 = inlined_call_operand.vmem [shape: f32[1,128], index: 8, kind: input, shape index: {}]   ;;  %s1199_s2 = inlined_call_operand.vmem [shape: bf16[32,32], index: 2, kind: input, shape index: {}]   ;;  %s1200_s10 = inlined_call_operand.vmem [shape: f32[1,128], index: 10, kind: input, shape index: {}]   ;;  %s1201_s11 = inlined_call_operand.vmem [shape: f32[2,16,128], index: 11, kind: output, shape index: {}, may-alias: {0,11}]  }
   0x1   :  { %v39_v0 = vld [vmem:[%s1190_s0] sm:$0xff]  ;;  %v40_v1 = vld [vmem:[%s1190_s0 + $0x8] sm:$0xff]  ;;  %v41_v2 = vld [vmem:[%s1190_s0 + $0x10] sm:$0xff] }
   0x2   :  { %v43_v3 = vpack.c.bf16 %v40_v1, %v39_v0  ;;  %v42_v4 = vld [vmem:[%s1190_s0 + $0x18] sm:$0xff]  ;;  %v914_v6 = vld [vmem:[%s1191_s1] sm:$0xff]   ;;  %v917_v8 = vld [vmem:[%s1192_s3 + $0x8] sm:$0xff]  }
   0x3   :  { %v44_v5 = vpack.c.bf16 %v42_v4, %v41_v2  ;;  %822 = vmatprep.mubr.msk.bf16.mxu0 %vm59_vm0, %v914_v6  ;;  %v916_v7 = vld [vmem:[%s1192_s3] sm:$0xff]   ;;  %v915_v9 = vld [vmem:[%s1191_s1 + $0x8] sm:$0xff]   ;;  %v918_v10 = vld [vmem:[%s1192_s3 + $0x10] sm:$0xff]  }
   0x4   :  { %818 = vmatprep.subr.bf16.mxu0 %v43_v3  ;;  %826 = vmatprep.subr.bf16.mxu1 %v916_v7  ;;  %v919_v11 = vld [vmem:[%s1192_s3 + $0x18] sm:$0xff]   ;;  %v920_v12 = vld [vmem:[%s1192_s3 + $0x20] sm:$0xff]   ;;  %v921_v13 = vld [vmem:[%s1192_s3 + $0x28] sm:$0xff]  }
   0x5   :  { %819 = vmatpush3.bf16.msra.mxu0 %v43_v3  ;;  %827 = vmatpush3.bf16.msra.mxu1 %v916_v7  ;;  %v922_v14 = vld [vmem:[%s1192_s3 + $0x30] sm:$0xff]   ;;  %v923_v15 = vld [vmem:[%s1192_s3 + $0x38] sm:$0xff]   ;;  %v924_v16 = vld [vmem:[%s1193_s5] sm:$0xff]  }
   0x6   :  { %820 = vmatprep.subr.bf16.mxu0 %v44_v5  ;;  %828 = vmatprep.subr.bf16.mxu1 %v917_v8  ;;  %v925_v17 = vld [vmem:[%s1193_s5 + $0x8] sm:$0xff]   ;;  %v926_v18 = vld [vmem:[%s1193_s5 + $0x10] sm:$0xff]   ;;  %v927_v19 = vld [vmem:[%s1193_s5 + $0x18] sm:$0xff]  }
   0x7   :  { %v928_v20 = vld [vmem:[%s1193_s5 + $0x20] sm:$0xff]   ;;  %v929_v21 = vld [vmem:[%s1193_s5 + $0x28] sm:$0xff]   ;;  %v930_v28 = vld [vmem:[%s1193_s5 + $0x30] sm:$0xff]  }
   0x8   :  { %v931_v29 = vld [vmem:[%s1193_s5 + $0x38] sm:$0xff]   ;;  %v932_v30 = vld [vmem:[%s1194_s7] sm:$0xff]   ;;  %v933_v31 = vld [vmem:[%s1194_s7 + $0x8] sm:$0xff]  }
   0x9   :  { %821 = vmatpush3.bf16.msra.mxu0 %v44_v5  ;;  %829 = vmatpush3.bf16.msra.mxu1 %v917_v8  ;;  %v934_v32 = vld [vmem:[%s1194_s7 + $0x10] sm:$0xff]   ;;  %v935_v33 = vld [vmem:[%s1194_s7 + $0x18] sm:$0xff]   ;;  %v936_v34 = vld [vmem:[%s1194_s7 + $0x20] sm:$0xff]  }
   0xa   :  { %830 = vmatprep.subr.bf16.mxu1 %v918_v10  ;;  %846 = vmatprep.subr.bf16.mxu0 %v924_v16  ;;  %v937_v35 = vld [vmem:[%s1194_s7 + $0x28] sm:$0xff]   ;;  %v726_v36 = vld [vmem:[%s1195_s4] ss:$0 sm:$0xff]  ;;  %v938_v51 = vld [vmem:[%s1194_s7 + $0x30] sm:$0xff]  }
   0xb   :  { %v939_v52 = vld [vmem:[%s1194_s7 + $0x38] sm:$0xff]   ;;  %v940_v53 = vld [vmem:[%s1196_s9] sm:$0xff]   ;;  %v941_v54 = vld [vmem:[%s1196_s9 + $0x8] sm:$0xff]  }
   0xc   :  { %823 = vmatmul.mubr.msk.bf16.vlgmr.msra.gmra.mrb[0].mxu0 %vm59_vm0, %v915_v9  ;;  %v942_v55 = vld [vmem:[%s1196_s9 + $0x10] sm:$0xff]   ;;  %v943_v56 = vld [vmem:[%s1196_s9 + $0x18] sm:$0xff]   ;;  %v944_v57 = vld [vmem:[%s1196_s9 + $0x20] sm:$0xff]  }
   0xd   :  { %831 = vmatpush3.bf16.msra.mxu1 %v918_v10  ;;  %847 = vmatpush3.bf16.msra.mxu0 %v924_v16  ;;  %v945_v58 = vld [vmem:[%s1196_s9 + $0x28] sm:$0xff]   ;;  %v735_v59 = vld [vmem:[%s1197_s6] ss:$0 sm:$0xff]  ;;  %v946_v10 = vld [vmem:[%s1196_s9 + $0x30] sm:$0xff]  }
   0xe   :  { %832 = vmatprep.subr.bf16.mxu1 %v919_v11  ;;  %848 = vmatprep.subr.bf16.mxu0 %v925_v17 }
  0x11   :  { %833 = vmatpush3.bf16.msra.mxu1 %v919_v11  ;;  %849 = vmatpush3.bf16.msra.mxu0 %v925_v17  ;;  %v947_v11 = vld [vmem:[%s1196_s9 + $0x38] sm:$0xff]  }
  0x12   :  { %834 = vmatprep.subr.bf16.mxu1 %v920_v12  ;;  %850 = vmatprep.subr.bf16.mxu0 %v926_v18 }
  0x15   :  { %835 = vmatpush3.bf16.msra.mxu1 %v920_v12  ;;  %851 = vmatpush3.bf16.msra.mxu0 %v926_v18  ;;  %v744_v12 = vld [vmem:[%s1198_s8] ss:$0 sm:$0xff] }
  0x16   :  { %836 = vmatprep.subr.bf16.mxu1 %v921_v13  ;;  %852 = vmatprep.subr.bf16.mxu0 %v927_v19 }
  0x19   :  { %837 = vmatpush3.bf16.msra.mxu1 %v921_v13  ;;  %853 = vmatpush3.bf16.msra.mxu0 %v927_v19 }
  0x1a   :  { %838 = vmatprep.subr.bf16.mxu1 %v922_v14  ;;  %854 = vmatprep.subr.bf16.mxu0 %v928_v20 }
  0x1d   :  { %839 = vmatpush3.bf16.msra.mxu1 %v922_v14  ;;  %855 = vmatpush3.bf16.msra.mxu0 %v928_v20 }
  0x1e   :  { %840 = vmatprep.subr.bf16.mxu1 %v923_v15  ;;  %856 = vmatprep.subr.bf16.mxu0 %v929_v21 }
  0x21   :  { %841 = vmatpush3.bf16.msra.mxu1 %v923_v15  ;;  %857 = vmatpush3.bf16.msra.mxu0 %v929_v21 }
  0x22   :  { %858 = vmatprep.subr.bf16.mxu0 %v930_v28  ;;  %866 = vmatprep.subr.bf16.mxu1 %v932_v30 }
  0x25   :  { %859 = vmatpush3.bf16.msra.mxu0 %v930_v28 }
  0x26   :  { %860 = vmatprep.subr.bf16.mxu0 %v931_v29 }
  0x29   :  { %861 = vmatpush3.bf16.msra.mxu0 %v931_v29 }
  0x2a   :  { %886 = vmatprep.subr.bf16.mxu0 %v940_v53 }
  0xdf   :  { %v1088_v22 = vpop.f32.mrb[0].mxu0 }
  0xe0   :  { %v1090_v23 = vpop.f32.mrb[1].mxu0 }
  0xe1   :  { %v1092_v24 = vpop.f32.mrb[2].mxu0 }
  0xe2   :  { %v116_v25 = vpack.c.bf16 %v1092_v24, %v1088_v22  ;;  %v1096_v26 = vpop.f32.mrb[3].mxu0 }
  0xe3   :  { %v115_v27 = vpack.c.bf16 %v1096_v26, %v1090_v23 }
  0xe5   :  { %842 = vmatprep.mubr.bf16.mxu1 %v115_v27 }
  0xe6   :  { %843 = vmatmul.mubr.bf16.vlgmr.msra.gmra.mrb[0].mxu1 %v116_v25 }
  0xe7   :  { %867 = vmatpush3.bf16.msra.mxu1 %v932_v30 }
  0xe8   :  { %868 = vmatprep.subr.bf16.mxu1 %v933_v31 }
  0xeb   :  { %869 = vmatpush3.bf16.msra.mxu1 %v933_v31  ;;  %v948_v31 = vld [vmem:[%s1199_s2] sm:$0xff]  }
  0xec   :  { %870 = vmatprep.subr.bf16.mxu1 %v934_v32 }
  0xef   :  { %871 = vmatpush3.bf16.msra.mxu1 %v934_v32  ;;  %v753_v32 = vld [vmem:[%s1200_s10] ss:$0 sm:$0xff] }
  0xf0   :  { %872 = vmatprep.subr.bf16.mxu1 %v935_v33 }
  0xf3   :  { %873 = vmatpush3.bf16.msra.mxu1 %v935_v33 }
  0xf4   :  { %874 = vmatprep.subr.bf16.mxu1 %v936_v34 }
  0xf7   :  { %875 = vmatpush3.bf16.msra.mxu1 %v936_v34 }
  0xf8   :  { %876 = vmatprep.subr.bf16.mxu1 %v937_v35 }
  0xfb   :  { %877 = vmatpush3.bf16.msra.mxu1 %v937_v35 }
  0xfc   :  { %878 = vmatprep.subr.bf16.mxu1 %v938_v51 }
  0xff   :  { %879 = vmatpush3.bf16.msra.mxu1 %v938_v51 }
 0x100   :  { %880 = vmatprep.subr.bf16.mxu1 %v939_v52 }
 0x103   :  { %881 = vmatpush3.bf16.msra.mxu1 %v939_v52 }
 0x1b9   :  { %v844_v37 = vpop.f32.mrb[0].mxu1 }
 0x1ba   :  { %v231_v38 = vadd.f32 %v844_v37, %v726_v36  ;;  %v222_v39 = vpop.f32.mrb[1].mxu1 }
 0x1bb   :  { %v223_v40 = vadd.f32 %v726_v36, %v222_v39  ;;  %v845_v41 = vpop.f32.mrb[2].mxu1 }
 0x1bc   :  { %v234_v42 = vadd.f32 %v845_v41, %v726_v36  ;;  %v225_v43 = vpop.f32.mrb[3].mxu1  ;;  %v239_v45 = vmax.f32 %v231_v38, 0.0 }
 0x1bd   :  { %v226_v44 = vadd.f32 %v726_v36, %v225_v43  ;;  %v237_v47 = vmax.f32 %v223_v40, 0.0 }
 0x1be   :  { %v240_v46 = vmax.f32 %v234_v42, 0.0 }
 0x1bf   :  { %v238_v48 = vmax.f32 %v226_v44, 0.0 }
 0x1c0   :  { %v242_v49 = vpack.c.bf16 %v240_v46, %v239_v45 }
 0x1c1   :  { %v241_v50 = vpack.c.bf16 %v238_v48, %v237_v47 }
 0x1c3   :  { %862 = vmatprep.mubr.bf16.mxu0 %v241_v50 }
 0x1c4   :  { %863 = vmatmul.mubr.bf16.vlgmr.msra.gmra.mrb[4].mxu0 %v242_v49 }
 0x1c5   :  { %887 = vmatpush3.bf16.msra.mxu0 %v940_v53 }
 0x1c6   :  { %888 = vmatprep.subr.bf16.mxu0 %v941_v54 }
 0x1c9   :  { %889 = vmatpush3.bf16.msra.mxu0 %v941_v54 }
 0x1ca   :  { %890 = vmatprep.subr.bf16.mxu0 %v942_v55 }
 0x1cd   :  { %891 = vmatpush3.bf16.msra.mxu0 %v942_v55 }
 0x1ce   :  { %892 = vmatprep.subr.bf16.mxu0 %v943_v56 }
 0x1d1   :  { %893 = vmatpush3.bf16.msra.mxu0 %v943_v56 }
 0x1d2   :  { %894 = vmatprep.subr.bf16.mxu0 %v944_v57 }
 0x1d5   :  { %895 = vmatpush3.bf16.msra.mxu0 %v944_v57 }
 0x1d6   :  { %896 = vmatprep.subr.bf16.mxu0 %v945_v58 }
 0x1d9   :  { %897 = vmatpush3.bf16.msra.mxu0 %v945_v58 }
 0x1da   :  { %898 = vmatprep.subr.bf16.mxu0 %v946_v10 }
 0x1dd   :  { %899 = vmatpush3.bf16.msra.mxu0 %v946_v10 }
 0x1de   :  { %900 = vmatprep.subr.bf16.mxu0 %v947_v11 }
 0x1e1   :  { %901 = vmatpush3.bf16.msra.mxu0 %v947_v11 }
 0x297   :  { %v864_v60 = vpop.f32.mrb[4].mxu0 }
 0x298   :  { %v357_v61 = vadd.f32 %v864_v60, %v735_v59  ;;  %v348_v62 = vpop.f32.mrb[5].mxu0 }
 0x299   :  { %v349_v63 = vadd.f32 %v735_v59, %v348_v62  ;;  %v865_v0 = vpop.f32.mrb[6].mxu0 }
 0x29a   :  { %v360_v1 = vadd.f32 %v865_v0, %v735_v59  ;;  %v351_v2 = vpop.f32.mrb[7].mxu0  ;;  %v365_v4 = vmax.f32 %v357_v61, 0.0 }
 0x29b   :  { %v352_v3 = vadd.f32 %v735_v59, %v351_v2  ;;  %v363_v6 = vmax.f32 %v349_v63, 0.0  ;;  %v949_v63 = vld [vmem:[%s1199_s2 + $0x8] sm:$0xff]  }
 0x29c   :  { %v366_v5 = vmax.f32 %v360_v1, 0.0 }
 0x29d   :  { %v364_v7 = vmax.f32 %v352_v3, 0.0 }
 0x29e   :  { %v368_v8 = vpack.c.bf16 %v366_v5, %v365_v4 }
 0x29f   :  { %v367_v9 = vpack.c.bf16 %v364_v7, %v363_v6 }
 0x2a1   :  { %882 = vmatprep.mubr.bf16.mxu1 %v367_v9 }
 0x2a2   :  { %883 = vmatmul.mubr.bf16.vlgmr.msra.gmra.mrb[4].mxu1 %v368_v8 }
 0x2a3   :  { %910 = vmatprep.mubr.msk.bf16.mxu1 %vm59_vm0, %v948_v31 }
 0x375   :  { %v884_v13 = vpop.f32.mrb[4].mxu1 }
 0x376   :  { %v483_v14 = vadd.f32 %v884_v13, %v744_v12  ;;  %v474_v15 = vpop.f32.mrb[5].mxu1 }
 0x377   :  { %v475_v16 = vadd.f32 %v744_v12, %v474_v15  ;;  %v885_v17 = vpop.f32.mrb[6].mxu1 }
 0x378   :  { %v486_v18 = vadd.f32 %v885_v17, %v744_v12  ;;  %v477_v19 = vpop.f32.mrb[7].mxu1  ;;  %v491_v21 = vmax.f32 %v483_v14, 0.0 }
 0x379   :  { %v478_v20 = vadd.f32 %v744_v12, %v477_v19  ;;  %v489_v27 = vmax.f32 %v475_v16, 0.0 }
 0x37a   :  { %v492_v25 = vmax.f32 %v486_v18, 0.0 }
 0x37b   :  { %v490_v28 = vmax.f32 %v478_v20, 0.0 }
 0x37c   :  { %v494_v29 = vpack.c.bf16 %v492_v25, %v491_v21 }
 0x37d   :  { %v493_v30 = vpack.c.bf16 %v490_v28, %v489_v27 }
 0x37f   :  { %902 = vmatprep.mubr.bf16.mxu0 %v493_v30 }
 0x380   :  { %903 = vmatmul.mubr.bf16.vlgmr.msra.gmra.mrb[8].mxu0 %v494_v29 }
 0x453   :  { %v904_v33 = vpop.f32.mrb[8].mxu0 }
 0x454   :  { %v609_v34 = vadd.f32 %v904_v33, %v753_v32  ;;  %v600_v35 = vpop.f32.mrb[9].mxu0 }
 0x455   :  { %v601_v36 = vadd.f32 %v753_v32, %v600_v35  ;;  %v905_v37 = vpop.f32.mrb[10].mxu0 }
 0x456   :  { %v764_v38 = vmul.f32 -1.442695, %v609_v34  ;;  %v612_v39 = vadd.f32 %v905_v37, %v753_v32  ;;  %v603_v40 = vpop.f32.mrb[11].mxu0 }
 0x457   :  { %v762_v41 = vmul.f32 -1.442695, %v601_v36  ;;  %v604_v42 = vadd.f32 %v753_v32, %v603_v40 }
 0x458   :  { %950 = vpow2.f32 %v764_v38  ;;  %v765_v43 = vmul.f32 -1.442695, %v612_v39 }
 0x459   :  { %952 = vpow2.f32 %v762_v41  ;;  %v763_v44 = vmul.f32 -1.442695, %v604_v42 }
 0x45a   :  { %954 = vpow2.f32 %v765_v43 }
 0x45b   :  { %956 = vpow2.f32 %v763_v44 }
 0x462   :  { %v951_v45 = vpop.eup %950 }
 0x463   :  { %v953_v46 = vpop.eup %952  ;;  %v629_v47 = vadd.f32 1.0, %v951_v45 }
 0x464   :  { %v955_v48 = vpop.eup %954  ;;  %v627_v49 = vadd.f32 1.0, %v953_v46 }
 0x465   :  { %v957_v50 = vpop.eup %956  ;;  %958 = vrcp.f32 %v629_v47  ;;  %v630_v51 = vadd.f32 1.0, %v955_v48 }
 0x466   :  { %960 = vrcp.f32 %v627_v49  ;;  %v628_v52 = vadd.f32 1.0, %v957_v50 }
 0x467   :  { %962 = vrcp.f32 %v630_v51 }
 0x468   :  { %964 = vrcp.f32 %v628_v52 }
 0x46f   :  { %v959_v53 = vpop.eup %958 }
 0x470   :  { %v961_v54 = vpop.eup %960  ;;  %v641_v55 = vmul.f32 %v959_v53, %v1088_v22 }
 0x471   :  { %v963_v56 = vpop.eup %962  ;;  %v639_v57 = vmul.f32 %v961_v54, %v1090_v23 }
 0x472   :  { %v965_v58 = vpop.eup %964  ;;  %v642_v59 = vmul.f32 %v963_v56, %v1092_v24 }
 0x473   :  { %v640_v60 = vmul.f32 %v965_v58, %v1096_v26 }
 0x474   :  { %v644_v61 = vpack.c.bf16 %v642_v59, %v641_v55 }
 0x475   :  { %v643_v62 = vpack.c.bf16 %v640_v60, %v639_v57 }
 0x477   :  { %906 = vmatprep.subr.bf16.mxu1 %v643_v62 }
 0x478   :  { %907 = vmatpush3.bf16.msra.mxu1 %v643_v62 }
 0x479   :  { %908 = vmatprep.subr.bf16.mxu1 %v644_v61 }
 0x47c   :  { %909 = vmatpush3.bf16.msra.mxu1 %v644_v61 }
 0x47f   :  { %911 = vmatmul.mubr.msk.bf16.vlgmr.msra.gmra.mrb[8].mxu1 %vm59_vm0, %v949_v63 }
 0x552   :  { %v912_v22 = vpop.f32.mrb[8].mxu1 }
 0x553   :  { %716 = vst [vmem:[%s1201_s11 + $0x10] sm:$0xff] %v912_v22  ;;  %v699_v23 = vpop.f32.mrb[9].mxu1 }
 0x554   :  { %714 = vst [vmem:[%s1201_s11] sm:$0xff] %v699_v23  ;;  %v913_v24 = vpop.f32.mrb[10].mxu1 }
 0x555   :  { %717 = vst [vmem:[%s1201_s11 + $0x18] sm:$0xff] %v913_v24  ;;  %v702_v26 = vpop.f32.mrb[11].mxu1 }
 0x556   :  { %715 = vst [vmem:[%s1201_s11 + $0x8] sm:$0xff] %v702_v26 }

// kernel: tfdl_forward.4
= control target key start
LH: loop header
LB: loop body
LE: loop exit
PB: predicated region body
PF: predicated region fallthrough
CT: control target
= control target key end

     0   :  { %v1125_v3 = vmov 0   ;;  %vm65_vm0 = vcmask 261120   ;;  %s1444_s0 = inlined_call_operand.vmem [shape: f32[2,16,256], index: 0, kind: input, shape index: {}, may-alias: {0,11}]   ;;  %s1445_s1 = inlined_call_operand.vmem [shape: bf16[32,32], index: 1, kind: input, shape index: {}]   ;;  %s1446_s3 = inlined_call_operand.vmem [shape: bf16[256,128], index: 3, kind: input, shape index: {}]   ;;  %s1447_s5 = inlined_call_operand.vmem [shape: bf16[128,128], index: 5, kind: input, shape index: {}]   ;;  %s1448_s7 = inlined_call_operand.vmem [shape: bf16[128,128], index: 7, kind: input, shape index: {}]   ;;  %s1449_s4 = inlined_call_operand.vmem [shape: f32[1,128], index: 4, kind: input, shape index: {}]   ;;  %s1450_s9 = inlined_call_operand.vmem [shape: bf16[128,256], index: 9, kind: input, shape index: {}]   ;;  %s1451_s6 = inlined_call_operand.vmem [shape: f32[1,128], index: 6, kind: input, shape index: {}]   ;;  %s1452_s8 = inlined_call_operand.vmem [shape: f32[1,128], index: 8, kind: input, shape index: {}]   ;;  %s1453_s2 = inlined_call_operand.vmem [shape: bf16[32,32], index: 2, kind: input, shape index: {}]   ;;  %s1454_s10 = inlined_call_operand.vmem [shape: f32[1,256], index: 10, kind: input, shape index: {}]   ;;  %s1455_s11 = inlined_call_operand.vmem [shape: f32[2,16,256], index: 11, kind: output, shape index: {}, may-alias: {0,11}]  }
   0x1   :  { %v40_v0 = vld [vmem:[%s1444_s0 + $0x8] sm:$0xff]  ;;  %v42_v1 = vld [vmem:[%s1444_s0 + $0x18] sm:$0xff]  ;;  %v39_v2 = vld [vmem:[%s1444_s0] sm:$0xff]  ;;  %104 = vmatprep.mubr.bf16.mxu0 %v1125_v3 }
   0x2   :  { %v48_v4 = vpack.c.bf16 %v42_v1, %v40_v0  ;;  %v41_v5 = vld [vmem:[%s1444_s0 + $0x10] sm:$0xff]  ;;  %v44_v6 = vld [vmem:[%s1444_s0 + $0x28] sm:$0xff]  ;;  %v46_v7 = vld [vmem:[%s1444_s0 + $0x38] sm:$0xff] }
   0x3   :  { %v47_v8 = vpack.c.bf16 %v41_v5, %v39_v2  ;;  %v50_v9 = vpack.c.bf16 %v46_v7, %v44_v6  ;;  %v43_v10 = vld [vmem:[%s1444_s0 + $0x20] sm:$0xff]  ;;  %v45_v11 = vld [vmem:[%s1444_s0 + $0x30] sm:$0xff]  ;;  %v1037_v16 = vld [vmem:[%s1446_s3 + $0x48] sm:$0xff]  }
   0x4   :  { %72 = vmatprep.subr.bf16.mxu0 %v48_v4  ;;  %v49_v12 = vpack.c.bf16 %v45_v11, %v43_v10  ;;  %v1033_v13 = vld [vmem:[%s1445_s1] sm:$0xff]   ;;  %v1038_v17 = vld [vmem:[%s1446_s3 + $0x8] sm:$0xff]   ;;  %v1039_v18 = vld [vmem:[%s1446_s3 + $0x50] sm:$0xff]  }
   0x5   :  { %73 = vmatpush1.bf16.msra.mxu0 %v47_v8  ;;  %v1035_v14 = vld [vmem:[%s1446_s3 + $0x40] sm:$0xff]   ;;  %v1040_v19 = vld [vmem:[%s1446_s3 + $0x10] sm:$0xff]   ;;  %v1041_v20 = vld [vmem:[%s1446_s3 + $0x58] sm:$0xff]  }
   0x6   :  { %74 = vmatprep.subr.bf16.mxu0 %v50_v9  ;;  %v1036_v15 = vld [vmem:[%s1446_s3] sm:$0xff]   ;;  %944 = vmatprep.subr.bf16.mxu1 %v1035_v14  ;;  %v1034_v21 = vld [vmem:[%s1445_s1 + $0x8] sm:$0xff]   ;;  %v1042_v22 = vld [vmem:[%s1446_s3 + $0x18] sm:$0xff]  }
   0x7   :  { %945 = vmatpush3.bf16.msra.mxu1 %v1036_v15  ;;  %v1043_v23 = vld [vmem:[%s1446_s3 + $0x60] sm:$0xff]   ;;  %v1045_v25 = vld [vmem:[%s1446_s3 + $0x68] sm:$0xff]   ;;  %v1047_v27 = vld [vmem:[%s1446_s3 + $0x70] sm:$0xff]  }
   0x8   :  { %946 = vmatprep.subr.bf16.mxu1 %v1037_v16  ;;  %v1044_v24 = vld [vmem:[%s1446_s3 + $0x20] sm:$0xff]   ;;  %v1046_v26 = vld [vmem:[%s1446_s3 + $0x28] sm:$0xff]   ;;  %v1048_v28 = vld [vmem:[%s1446_s3 + $0x30] sm:$0xff]  }
   0x9   :  { %75 = vmatpush1.bf16.msra.mxu0 %v49_v12  ;;  %v1049_v29 = vld [vmem:[%s1446_s3 + $0x78] sm:$0xff]   ;;  %v1051_v31 = vld [vmem:[%s1447_s5] sm:$0xff]   ;;  %v1052_v32 = vld [vmem:[%s1447_s5 + $0x8] sm:$0xff]  }
   0xa   :  { %v1050_v30 = vld [vmem:[%s1446_s3 + $0x38] sm:$0xff]   ;;  %992 = vmatprep.subr.bf16.mxu0 %v1051_v31  ;;  %v1053_v33 = vld [vmem:[%s1447_s5 + $0x10] sm:$0xff]   ;;  %v1055_v47 = vld [vmem:[%s1447_s5 + $0x20] sm:$0xff]  }
   0xb   :  { %947 = vmatpush3.bf16.msra.mxu1 %v1038_v17  ;;  %v1054_v46 = vld [vmem:[%s1447_s5 + $0x18] sm:$0xff]   ;;  %v1056_v48 = vld [vmem:[%s1447_s5 + $0x28] sm:$0xff]   ;;  %v1057_v49 = vld [vmem:[%s1447_s5 + $0x30] sm:$0xff]  }
   0xc   :  { %879 = vmatmul.mubr.msk.bf16.vlgmr.msra.gmra.mrb[0].mxu0 %vm65_vm0, %v1033_v13  ;;  %948 = vmatprep.subr.bf16.mxu1 %v1039_v18  ;;  %v1058_v50 = vld [vmem:[%s1447_s5 + $0x38] sm:$0xff]   ;;  %v1059_v51 = vld [vmem:[%s1448_s7] sm:$0xff]   ;;  %v1060_v52 = vld [vmem:[%s1448_s7 + $0x8] sm:$0xff]  }
   0xd   :  { %114 = vmatprep.mubr.bf16.mxu0 %v1125_v3  ;;  %993 = vmatpush3.bf16.msra.mxu0 %v1051_v31  ;;  %v1061_v53 = vld [vmem:[%s1448_s7 + $0x10] sm:$0xff]   ;;  %v1062_v54 = vld [vmem:[%s1448_s7 + $0x18] sm:$0xff]   ;;  %v1063_v55 = vld [vmem:[%s1448_s7 + $0x20] sm:$0xff]  }
   0xe   :  { %994 = vmatprep.subr.bf16.mxu0 %v1052_v32  ;;  %v1064_v56 = vld [vmem:[%s1448_s7 + $0x28] sm:$0xff]   ;;  %v881_v58 = vld [vmem:[%s1449_s4] ss:$0 sm:$0xff]  ;;  %v1065_v17 = vld [vmem:[%s1448_s7 + $0x30] sm:$0xff]  }
   0xf   :  { %949 = vmatpush3.bf16.msra.mxu1 %v1040_v19  ;;  %v1066_v18 = vld [vmem:[%s1448_s7 + $0x38] sm:$0xff]   ;;  %v1067_v19 = vld [vmem:[%s1450_s9] ss:$8 sps:$4 sm:$0xff]  }
  0x10   :  { %950 = vmatprep.subr.bf16.mxu1 %v1041_v20  ;;  %v1069_v20 = vld [vmem:[%s1450_s9 + $0x4] ss:$8 sps:$4 sm:$0xff]   ;;  %v898_v31 = vld [vmem:[%s1451_s6] ss:$0 sm:$0xff] }
  0x11   :  { %995 = vmatpush3.bf16.msra.mxu0 %v1052_v32 }
  0x12   :  { %996 = vmatprep.subr.bf16.mxu0 %v1053_v33 }
  0x13   :  { %951 = vmatpush3.bf16.msra.mxu1 %v1042_v22  ;;  %v1070_v22 = vld [vmem:[%s1450_s9 + $0x10] ss:$8 sps:$4 sm:$0xff]  }
  0x14   :  { %880 = vmatmul.mubr.msk.bf16.gmra.mrb[4].mxu0 %vm65_vm0, %v1034_v21  ;;  %952 = vmatprep.subr.bf16.mxu1 %v1043_v23  ;;  %v1072_v21 = vld [vmem:[%s1450_s9 + $0x14] ss:$8 sps:$4 sm:$0xff]   ;;  %v1075_v23 = vld [vmem:[%s1450_s9 + $0x24] ss:$8 sps:$4 sm:$0xff]  }
  0x15   :  { %997 = vmatpush3.bf16.msra.mxu0 %v1053_v33 }
  0x16   :  { %998 = vmatprep.subr.bf16.mxu0 %v1054_v46 }
  0x17   :  { %953 = vmatpush3.bf16.msra.mxu1 %v1044_v24  ;;  %v1073_v24 = vld [vmem:[%s1450_s9 + $0x20] ss:$8 sps:$4 sm:$0xff]  }
  0x18   :  { %954 = vmatprep.subr.bf16.mxu1 %v1045_v25  ;;  %v1078_v25 = vld [vmem:[%s1450_s9 + $0x34] ss:$8 sps:$4 sm:$0xff]  }
  0x19   :  { %999 = vmatpush3.bf16.msra.mxu0 %v1054_v46 }
  0x1a   :  { %1000 = vmatprep.subr.bf16.mxu0 %v1055_v47 }
  0x1b   :  { %955 = vmatpush3.bf16.msra.mxu1 %v1046_v26  ;;  %v1076_v26 = vld [vmem:[%s1450_s9 + $0x30] ss:$8 sps:$4 sm:$0xff]  }
  0x1c   :  { %956 = vmatprep.subr.bf16.mxu1 %v1047_v27  ;;  %v1081_v27 = vld [vmem:[%s1450_s9 + $0x44] ss:$8 sps:$4 sm:$0xff]  }
  0x1d   :  { %1001 = vmatpush3.bf16.msra.mxu0 %v1055_v47 }
  0x1e   :  { %1002 = vmatprep.subr.bf16.mxu0 %v1056_v48 }
  0x1f   :  { %957 = vmatpush3.bf16.msra.mxu1 %v1048_v28  ;;  %v1079_v28 = vld [vmem:[%s1450_s9 + $0x40] ss:$8 sps:$4 sm:$0xff]  }
  0x20   :  { %958 = vmatprep.subr.bf16.mxu1 %v1049_v29  ;;  %v1084_v29 = vld [vmem:[%s1450_s9 + $0x54] ss:$8 sps:$4 sm:$0xff]  }
  0x21   :  { %1003 = vmatpush3.bf16.msra.mxu0 %v1056_v48 }
  0x22   :  { %1004 = vmatprep.subr.bf16.mxu0 %v1057_v49 }
  0x23   :  { %959 = vmatpush3.bf16.msra.mxu1 %v1050_v30  ;;  %v1082_v30 = vld [vmem:[%s1450_s9 + $0x50] ss:$8 sps:$4 sm:$0xff]  }
  0x24   :  { %1012 = vmatprep.subr.bf16.mxu1 %v1059_v51 }
  0x25   :  { %1005 = vmatpush3.bf16.msra.mxu0 %v1057_v49 }
  0x26   :  { %1006 = vmatprep.subr.bf16.mxu0 %v1058_v50 }
  0x29   :  { %1007 = vmatpush3.bf16.msra.mxu0 %v1058_v50 }
  0x2a   :  { %679 = vmatprep.subr.bf16.mxu0 %v1069_v20 }
  0xdf   :  { %v1277_v34 = vpop.f32.mrb[0].mxu0 }
  0xe0   :  { %v1279_v35 = vpop.f32.mrb[1].mxu0 }
  0xe1   :  { %v1281_v36 = vpop.f32.mrb[2].mxu0 }
  0xe2   :  { %v125_v37 = vpack.c.bf16 %v1281_v36, %v1277_v34  ;;  %v1285_v38 = vpop.f32.mrb[3].mxu0 }
  0xe3   :  { %v126_v39 = vpack.c.bf16 %v1285_v38, %v1279_v35 }
  0xe5   :  { %296 = vmatprep.mubr.bf16.mxu1 %v126_v39 }
  0xe6   :  { %297 = vmatmul.mubr.bf16.vlgmr.msra.gmra.mrb[0].mxu1 %v125_v37 }
  0xe7   :  { %v1289_v40 = vpop.f32.mrb[4].mxu0  ;;  %1013 = vmatpush3.bf16.msra.mxu1 %v1059_v51 }
  0xe8   :  { %v1291_v41 = vpop.f32.mrb[5].mxu0  ;;  %1014 = vmatprep.subr.bf16.mxu1 %v1060_v52 }
  0xe9   :  { %v1293_v42 = vpop.f32.mrb[6].mxu0 }
  0xea   :  { %v127_v43 = vpack.c.bf16 %v1293_v42, %v1289_v40  ;;  %v1297_v44 = vpop.f32.mrb[7].mxu0 }
  0xeb   :  { %v128_v45 = vpack.c.bf16 %v1297_v44, %v1291_v41  ;;  %1015 = vmatpush3.bf16.msra.mxu1 %v1060_v52 }
  0xec   :  { %1016 = vmatprep.subr.bf16.mxu1 %v1061_v53 }
  0xed   :  { %304 = vmatprep.mubr.bf16.mxu1 %v128_v45 }
  0xee   :  { %305 = vmatmul.mubr.bf16.gmra.mrb[4].mxu1 %v127_v43 }
  0xef   :  { %1017 = vmatpush3.bf16.msra.mxu1 %v1061_v53 }
  0xf0   :  { %1018 = vmatprep.subr.bf16.mxu1 %v1062_v54 }
  0xf3   :  { %1019 = vmatpush3.bf16.msra.mxu1 %v1062_v54  ;;  %v1087_v54 = vld [vmem:[%s1450_s9 + $0x64] ss:$8 sps:$4 sm:$0xff]  }
  0xf4   :  { %1020 = vmatprep.subr.bf16.mxu1 %v1063_v55 }
  0xf7   :  { %1021 = vmatpush3.bf16.msra.mxu1 %v1063_v55  ;;  %v1085_v55 = vld [vmem:[%s1450_s9 + $0x60] ss:$8 sps:$4 sm:$0xff]  }
  0xf8   :  { %1022 = vmatprep.subr.bf16.mxu1 %v1064_v56 }
  0xfb   :  { %1023 = vmatpush3.bf16.msra.mxu1 %v1064_v56  ;;  %v1090_v56 = vld [vmem:[%s1450_s9 + $0x74] ss:$8 sps:$4 sm:$0xff]  }
  0xfc   :  { %1024 = vmatprep.subr.bf16.mxu1 %v1065_v17 }
  0xff   :  { %1025 = vmatpush3.bf16.msra.mxu1 %v1065_v17 }
 0x100   :  { %1026 = vmatprep.subr.bf16.mxu1 %v1066_v18 }
 0x103   :  { %1027 = vmatpush3.bf16.msra.mxu1 %v1066_v18 }
 0x1b9   :  { %v960_v57 = vpop.f32.mrb[0].mxu1 }
 0x1ba   :  { %v961_v59 = vpop.f32.mrb[1].mxu1 }
 0x1bb   :  { %v962_v60 = vadd.f32 %v961_v59, %v960_v57  ;;  %v963_v61 = vpop.f32.mrb[2].mxu1  ;;  %v1088_v57 = vld [vmem:[%s1450_s9 + $0x70] ss:$8 sps:$4 sm:$0xff]  }
 0x1bc   :  { %v964_v62 = vpop.f32.mrb[3].mxu1 }
 0x1bd   :  { %v299_v63 = vadd.f32 %v962_v60, %v881_v58  ;;  %v965_v0 = vadd.f32 %v964_v62, %v963_v61 }
 0x1bf   :  { %v302_v1 = vadd.f32 %v965_v0, %v881_v58  ;;  %v313_v2 = vmax.f32 %v299_v63, 0.0 }
 0x1c1   :  { %v314_v4 = vmax.f32 %v302_v1, 0.0  ;;  %v966_v5 = vpop.f32.mrb[4].mxu1 }
 0x1c2   :  { %v967_v6 = vpop.f32.mrb[5].mxu1 }
 0x1c3   :  { %v968_v7 = vadd.f32 %v967_v6, %v966_v5  ;;  %v969_v8 = vpop.f32.mrb[6].mxu1  ;;  %v317_v9 = vpack.c.bf16 %v314_v4, %v313_v2 }
 0x1c4   :  { %v970_v10 = vpop.f32.mrb[7].mxu1 }
 0x1c5   :  { %v307_v11 = vadd.f32 %v968_v7, %v881_v58  ;;  %v971_v12 = vadd.f32 %v970_v10, %v969_v8  ;;  %1008 = vmatprep.mubr.bf16.mxu0 %v317_v9  ;;  %v589_v10 = vlaneseq }
 0x1c7   :  { %v310_v13 = vadd.f32 %v971_v12, %v881_v58  ;;  %v315_v14 = vmax.f32 %v307_v11, 0.0  ;;  %v907_v58 = vld [vmem:[%s1452_s8] ss:$0 sm:$0xff]  ;;  %v590_v11 = vshrl.u32 %v589_v10, 7 }
 0x1c9   :  { %v316_v15 = vmax.f32 %v310_v13, 0.0  ;;  %v591_v12 = vsub.s32 0, %v590_v11  ;;  %v587_v13 = vld [vmem:[%s1454_s10] sm:$0x3] }
 0x1cb   :  { %v318_v16 = vpack.c.bf16 %v316_v15, %v315_v14  ;;  %v595_v14 = vsub.s32 1, %v590_v11  ;;  %v592_v15 = vrot.slane %v587_v13, %v591_v12 }
 0x1cd   :  { %1009 = vmatmul.mubr.bf16.vlgmr.msra.gmra.mrb[8].mxu0 %v318_v16  ;;  %v596_v16 = vrot.slane %v587_v13, %v595_v14 }
 0x1ce   :  { %711 = vmatprep.mubr.bf16.mxu0 %v1125_v3  ;;  %680 = vmatpush1.bf16.msra.mxu0 %v1067_v19 }
 0x1cf   :  { %681 = vmatprep.subr.bf16.mxu0 %v1072_v21 }
 0x1d2   :  { %682 = vmatpush1.bf16.msra.mxu0 %v1070_v22 }
 0x1d3   :  { %683 = vmatprep.subr.bf16.mxu0 %v1075_v23 }
 0x1d6   :  { %684 = vmatpush1.bf16.msra.mxu0 %v1073_v24 }
 0x1d7   :  { %685 = vmatprep.subr.bf16.mxu0 %v1078_v25 }
 0x1da   :  { %686 = vmatpush1.bf16.msra.mxu0 %v1076_v26 }
 0x1db   :  { %687 = vmatprep.subr.bf16.mxu0 %v1081_v27 }
 0x1de   :  { %688 = vmatpush1.bf16.msra.mxu0 %v1079_v28 }
 0x1df   :  { %689 = vmatprep.subr.bf16.mxu0 %v1084_v29 }
 0x1e2   :  { %690 = vmatpush1.bf16.msra.mxu0 %v1082_v30 }
 0x1e3   :  { %691 = vmatprep.subr.bf16.mxu0 %v1087_v54 }
 0x1e6   :  { %692 = vmatpush1.bf16.msra.mxu0 %v1085_v55 }
 0x1e7   :  { %693 = vmatprep.subr.bf16.mxu0 %v1090_v56 }
 0x1ea   :  { %694 = vmatpush1.bf16.msra.mxu0 %v1088_v57 }
 0x2a0   :  { %v1010_v32 = vpop.f32.mrb[8].mxu0 }
 0x2a1   :  { %v433_v33 = vadd.f32 %v1010_v32, %v898_v31  ;;  %v424_v37 = vpop.f32.mrb[9].mxu0 }
 0x2a2   :  { %v425_v39 = vadd.f32 %v898_v31, %v424_v37  ;;  %v1011_v43 = vpop.f32.mrb[10].mxu0 }
 0x2a3   :  { %v436_v45 = vadd.f32 %v1011_v43, %v898_v31  ;;  %v427_v46 = vpop.f32.mrb[11].mxu0  ;;  %v441_v48 = vmax.f32 %v433_v33, 0.0 }
 0x2a4   :  { %v428_v47 = vadd.f32 %v898_v31, %v427_v46  ;;  %v439_v50 = vmax.f32 %v425_v39, 0.0 }
 0x2a5   :  { %v442_v49 = vmax.f32 %v436_v45, 0.0 }
 0x2a6   :  { %v440_v51 = vmax.f32 %v428_v47, 0.0 }
 0x2a7   :  { %v444_v52 = vpack.c.bf16 %v442_v49, %v441_v48 }
 0x2a8   :  { %v443_v53 = vpack.c.bf16 %v440_v51, %v439_v50 }
 0x2aa   :  { %1028 = vmatprep.mubr.bf16.mxu1 %v443_v53 }
 0x2ab   :  { %1029 = vmatmul.mubr.bf16.vlgmr.msra.gmra.mrb[8].mxu1 %v444_v52 }
 0x2ac   :  { %844 = vmatprep.mubr.bf16.mxu1 %v1125_v3 }
 0x37e   :  { %v1030_v59 = vpop.f32.mrb[8].mxu1 }
 0x37f   :  { %v559_v60 = vadd.f32 %v1030_v59, %v907_v58  ;;  %v550_v61 = vpop.f32.mrb[9].mxu1 }
 0x380   :  { %v551_v62 = vadd.f32 %v907_v58, %v550_v61  ;;  %v1031_v63 = vpop.f32.mrb[10].mxu1 }
 0x381   :  { %v562_v0 = vadd.f32 %v1031_v63, %v907_v58  ;;  %v553_v1 = vpop.f32.mrb[11].mxu1  ;;  %v567_v4 = vmax.f32 %v559_v60, 0.0 }
 0x382   :  { %v554_v2 = vadd.f32 %v907_v58, %v553_v1  ;;  %v565_v6 = vmax.f32 %v551_v62, 0.0 }
 0x383   :  { %v568_v5 = vmax.f32 %v562_v0, 0.0 }
 0x384   :  { %v566_v7 = vmax.f32 %v554_v2, 0.0 }
 0x385   :  { %v570_v8 = vpack.c.bf16 %v568_v5, %v567_v4 }
 0x386   :  { %v569_v9 = vpack.c.bf16 %v566_v7, %v565_v6 }
 0x388   :  { %712 = vmatmul.mubr.bf16.vlgmr.msra.gmra.mrb[12].mxu0 %v569_v9 }
 0x389   :  { %721 = vmatprep.mubr.bf16.mxu0 %v1125_v3 }
 0x390   :  { %722 = vmatmul.mubr.bf16.gmra.mrb[16].mxu0 %v570_v8 }
 0x45b   :  { %v713_v17 = vpop.f32.mrb[12].mxu0 }
 0x45c   :  { %v714_v18 = vadd.f32 %v713_v17, %v592_v15  ;;  %v715_v19 = vpop.f32.mrb[13].mxu0 }
 0x45d   :  { %v716_v20 = vadd.f32 %v715_v19, %v596_v16  ;;  %v717_v21 = vpop.f32.mrb[14].mxu0 }
 0x45e   :  { %v932_v22 = vmul.f32 -1.442695, %v714_v18  ;;  %v718_v23 = vadd.f32 %v717_v21, %v592_v15  ;;  %v719_v24 = vpop.f32.mrb[15].mxu0 }
 0x45f   :  { %v933_v25 = vmul.f32 -1.442695, %v716_v20  ;;  %v720_v26 = vadd.f32 %v719_v24, %v596_v16 }
 0x460   :  { %1093 = vpow2.f32 %v932_v22  ;;  %v934_v27 = vmul.f32 -1.442695, %v718_v23 }
 0x461   :  { %1095 = vpow2.f32 %v933_v25  ;;  %v935_v28 = vmul.f32 -1.442695, %v720_v26 }
 0x462   :  { %1097 = vpow2.f32 %v934_v27 }
 0x463   :  { %1099 = vpow2.f32 %v935_v28  ;;  %v723_v29 = vpop.f32.mrb[16].mxu0 }
 0x464   :  { %v724_v30 = vadd.f32 %v723_v29, %v592_v15  ;;  %v725_v31 = vpop.f32.mrb[17].mxu0 }
 0x465   :  { %v726_v32 = vadd.f32 %v725_v31, %v596_v16  ;;  %v727_v33 = vpop.f32.mrb[18].mxu0 }
 0x466   :  { %v936_v37 = vmul.f32 -1.442695, %v724_v30  ;;  %v728_v39 = vadd.f32 %v727_v33, %v592_v15  ;;  %v729_v43 = vpop.f32.mrb[19].mxu0 }
 0x467   :  { %v937_v45 = vmul.f32 -1.442695, %v726_v32  ;;  %v730_v46 = vadd.f32 %v729_v43, %v596_v16 }
 0x468   :  { %1101 = vpow2.f32 %v936_v37  ;;  %v938_v47 = vmul.f32 -1.442695, %v728_v39 }
 0x469   :  { %1103 = vpow2.f32 %v937_v45  ;;  %v939_v48 = vmul.f32 -1.442695, %v730_v46 }
 0x46a   :  { %v1094_v49 = vpop.eup %1093  ;;  %1105 = vpow2.f32 %v938_v47 }
 0x46b   :  { %v1096_v50 = vpop.eup %1095  ;;  %v756_v51 = vadd.f32 1.0, %v1094_v49  ;;  %1107 = vpow2.f32 %v939_v48 }
 0x46c   :  { %v1098_v52 = vpop.eup %1097  ;;  %v757_v53 = vadd.f32 1.0, %v1096_v50 }
 0x46d   :  { %v1100_v54 = vpop.eup %1099  ;;  %1109 = vrcp.f32 %v756_v51  ;;  %v758_v55 = vadd.f32 1.0, %v1098_v52 }
 0x46e   :  { %1111 = vrcp.f32 %v757_v53  ;;  %v759_v56 = vadd.f32 1.0, %v1100_v54 }
 0x46f   :  { %1113 = vrcp.f32 %v758_v55 }
 0x470   :  { %1115 = vrcp.f32 %v759_v56 }
 0x472   :  { %v1102_v57 = vpop.eup %1101 }
 0x473   :  { %v1104_v58 = vpop.eup %1103  ;;  %v760_v59 = vadd.f32 1.0, %v1102_v57 }
 0x474   :  { %v1106_v60 = vpop.eup %1105  ;;  %v761_v61 = vadd.f32 1.0, %v1104_v58 }
 0x475   :  { %v1108_v62 = vpop.eup %1107  ;;  %1117 = vrcp.f32 %v760_v59  ;;  %v762_v63 = vadd.f32 1.0, %v1106_v60 }
 0x476   :  { %1119 = vrcp.f32 %v761_v61  ;;  %v763_v0 = vadd.f32 1.0, %v1108_v62 }
 0x477   :  { %v1110_v1 = vpop.eup %1109  ;;  %1121 = vrcp.f32 %v762_v63 }
 0x478   :  { %v1112_v2 = vpop.eup %1111  ;;  %1123 = vrcp.f32 %v763_v0  ;;  %v780_v4 = vmul.f32 %v1110_v1, %v1277_v34 }
 0x479   :  { %v1114_v5 = vpop.eup %1113  ;;  %v781_v6 = vmul.f32 %v1112_v2, %v1279_v35 }
 0x47a   :  { %v1116_v7 = vpop.eup %1115  ;;  %v782_v8 = vmul.f32 %v1114_v5, %v1281_v36 }
 0x47b   :  { %v783_v9 = vmul.f32 %v1116_v7, %v1285_v38  ;;  %v1091_v38 = vld [vmem:[%s1453_s2] sm:$0xff]  }
 0x47c   :  { %v788_v10 = vpack.c.bf16 %v782_v8, %v780_v4 }
 0x47d   :  { %v789_v11 = vpack.c.bf16 %v783_v9, %v781_v6 }
 0x47f   :  { %v1118_v12 = vpop.eup %1117  ;;  %812 = vmatprep.subr.bf16.mxu1 %v789_v11 }
 0x480   :  { %v1120_v13 = vpop.eup %1119  ;;  %813 = vmatpush1.bf16.msra.mxu1 %v788_v10  ;;  %v784_v14 = vmul.f32 %v1118_v12, %v1289_v40  ;;  %v1092_v40 = vld [vmem:[%s1453_s2 + $0x8] sm:$0xff]  }
 0x481   :  { %v1122_v15 = vpop.eup %1121  ;;  %v785_v16 = vmul.f32 %v1120_v13, %v1291_v41 }
 0x482   :  { %v1124_v34 = vpop.eup %1123  ;;  %v786_v17 = vmul.f32 %v1122_v15, %v1293_v42 }
 0x483   :  { %v787_v35 = vmul.f32 %v1124_v34, %v1297_v44 }
 0x484   :  { %v790_v18 = vpack.c.bf16 %v786_v17, %v784_v14 }
 0x485   :  { %v791_v36 = vpack.c.bf16 %v787_v35, %v785_v16 }
 0x487   :  { %814 = vmatprep.subr.bf16.mxu1 %v791_v36 }
 0x488   :  { %815 = vmatpush1.bf16.msra.mxu1 %v790_v18 }
 0x48b   :  { %942 = vmatmul.mubr.msk.bf16.vlgmr.msra.gmra.mrb[12].mxu1 %vm65_vm0, %v1091_v38 }
 0x48c   :  { %854 = vmatprep.mubr.bf16.mxu1 %v1125_v3 }
 0x493   :  { %943 = vmatmul.mubr.msk.bf16.gmra.mrb[16].mxu1 %vm65_vm0, %v1092_v40 }
 0x55e   :  { %v846_v41 = vpop.f32.mrb[12].mxu1 }
 0x55f   :  { %865 = vst [vmem:[%s1455_s11] sm:$0xff] %v846_v41  ;;  %v848_v42 = vpop.f32.mrb[13].mxu1 }
 0x560   :  { %866 = vst [vmem:[%s1455_s11 + $0x8] sm:$0xff] %v848_v42  ;;  %v850_v44 = vpop.f32.mrb[14].mxu1 }
 0x561   :  { %867 = vst [vmem:[%s1455_s11 + $0x10] sm:$0xff] %v850_v44  ;;  %v852_v3 = vpop.f32.mrb[15].mxu1 }
 0x562   :  { %868 = vst [vmem:[%s1455_s11 + $0x18] sm:$0xff] %v852_v3 }
 0x566   :  { %v856_v19 = vpop.f32.mrb[16].mxu1 }
 0x567   :  { %869 = vst [vmem:[%s1455_s11 + $0x20] sm:$0xff] %v856_v19  ;;  %v858_v20 = vpop.f32.mrb[17].mxu1 }
 0x568   :  { %870 = vst [vmem:[%s1455_s11 + $0x28] sm:$0xff] %v858_v20  ;;  %v860_v21 = vpop.f32.mrb[18].mxu1 }
 0x569   :  { %871 = vst [vmem:[%s1455_s11 + $0x30] sm:$0xff] %v860_v21  ;;  %v862_v22 = vpop.f32.mrb[19].mxu1 }
 0x56a   :  { %872 = vst [vmem:[%s1455_s11 + $0x38] sm:$0xff] %v862_v22 }

// kernel: tfdl_forward.5
= control target key start
LH: loop header
LB: loop body
LE: loop exit
PB: predicated region body
PF: predicated region fallthrough
CT: control target
= control target key end

     0   :  { %v9398_v3 = vmov 0   ;;  %vm107_vm0 = vcmask 261120   ;;  %s9386_s0 = inlined_call_operand.vmem [shape: f32[2,16,1152], index: 0, kind: input, shape index: {}, may-alias: {0,11}]   ;;  %s9387_s1 = inlined_call_operand.vmem [shape: bf16[32,32], index: 1, kind: input, shape index: {}]   ;;  %s9388_s3 = inlined_call_operand.vmem [shape: bf16[1152,384], index: 3, kind: input, shape index: {}]   ;;  %s9389_s5 = inlined_call_operand.vmem [shape: bf16[384,128], index: 5, kind: input, shape index: {}]   ;;  %s9390_s4 = inlined_call_operand.vmem [shape: f32[1,384], index: 4, kind: input, shape index: {}]   ;;  %s9391_s7 = inlined_call_operand.vmem [shape: bf16[128,384], index: 7, kind: input, shape index: {}]   ;;  %s9392_s9 = inlined_call_operand.vmem [shape: bf16[384,1152], index: 9, kind: input, shape index: {}]   ;;  %s9393_s6 = inlined_call_operand.vmem [shape: f32[1,128], index: 6, kind: input, shape index: {}]   ;;  %s9394_s8 = inlined_call_operand.vmem [shape: f32[1,384], index: 8, kind: input, shape index: {}]   ;;  %s9395_s10 = inlined_call_operand.vmem [shape: f32[1,1152], index: 10, kind: input, shape index: {}]   ;;  %s9396_s2 = inlined_call_operand.vmem [shape: bf16[32,32], index: 2, kind: input, shape index: {}]   ;;  %s9397_s11 = inlined_call_operand.vmem [shape: f32[2,16,1152], index: 11, kind: output, shape index: {}, may-alias: {0,11}]  }
   0x1   :  { %v40_v0 = vld [vmem:[%s9386_s0 + $0x8] sm:$0xff]  ;;  %v49_v1 = vld [vmem:[%s9386_s0 + $0x50] sm:$0xff]  ;;  %v39_v2 = vld [vmem:[%s9386_s0] sm:$0xff]  ;;  %146 = vmatprep.mubr.bf16.mxu0 %v9398_v3  ;;  %199 = vmatprep.mubr.bf16.mxu1 %v9398_v3 }
   0x2   :  { %v76_v4 = vpack.c.bf16 %v49_v1, %v40_v0  ;;  %v48_v5 = vld [vmem:[%s9386_s0 + $0x48] sm:$0xff]  ;;  %v58_v6 = vld [vmem:[%s9386_s0 + $0x98] sm:$0xff]  ;;  %v67_v7 = vld [vmem:[%s9386_s0 + $0xe0] sm:$0xff] }
   0x3   :  { %v75_v8 = vpack.c.bf16 %v48_v5, %v39_v2  ;;  %v85_v9 = vpack.c.bf16 %v67_v7, %v58_v6  ;;  %v57_v10 = vld [vmem:[%s9386_s0 + $0x90] sm:$0xff]  ;;  %v66_v11 = vld [vmem:[%s9386_s0 + $0xd8] sm:$0xff]  ;;  %v7340_v14 = vld [vmem:[%s9387_s1] sm:$0xff]  }
   0x4   :  { %114 = vmatprep.subr.bf16.mxu0 %v76_v4  ;;  %v84_v12 = vpack.c.bf16 %v66_v11, %v57_v10  ;;  %v42_v13 = vld [vmem:[%s9386_s0 + $0x18] sm:$0xff]  ;;  %v51_v15 = vld [vmem:[%s9386_s0 + $0x60] sm:$0xff]  ;;  %v41_v16 = vld [vmem:[%s9386_s0 + $0x10] sm:$0xff] }
   0x5   :  { %115 = vmatpush1.bf16.msra.mxu0 %v75_v8  ;;  %v50_v17 = vld [vmem:[%s9386_s0 + $0x58] sm:$0xff]  ;;  %v78_v18 = vpack.c.bf16 %v51_v15, %v42_v13  ;;  %v60_v20 = vld [vmem:[%s9386_s0 + $0xa8] sm:$0xff]  ;;  %v69_v21 = vld [vmem:[%s9386_s0 + $0xf0] sm:$0xff] }
   0x6   :  { %116 = vmatprep.subr.bf16.mxu0 %v85_v9  ;;  %v77_v19 = vpack.c.bf16 %v50_v17, %v41_v16  ;;  %v59_v22 = vld [vmem:[%s9386_s0 + $0xa0] sm:$0xff]  ;;  %v87_v23 = vpack.c.bf16 %v69_v21, %v60_v20  ;;  %v68_v24 = vld [vmem:[%s9386_s0 + $0xe8] sm:$0xff]  ;;  %v53_v26 = vld [vmem:[%s9386_s0 + $0x70] sm:$0xff] }
   0x7   :  { %v44_v25 = vld [vmem:[%s9386_s0 + $0x28] sm:$0xff]  ;;  %167 = vmatprep.subr.bf16.mxu1 %v78_v18  ;;  %v43_v28 = vld [vmem:[%s9386_s0 + $0x20] sm:$0xff]  ;;  %v62_v30 = vld [vmem:[%s9386_s0 + $0xb8] sm:$0xff]  ;;  %v86_v31 = vpack.c.bf16 %v68_v24, %v59_v22 }
   0x8   :  { %v80_v27 = vpack.c.bf16 %v53_v26, %v44_v25  ;;  %v52_v29 = vld [vmem:[%s9386_s0 + $0x68] sm:$0xff]  ;;  %168 = vmatpush1.bf16.msra.mxu1 %v77_v19  ;;  %v71_v33 = vld [vmem:[%s9386_s0 + $0x100] sm:$0xff]  ;;  %v61_v34 = vld [vmem:[%s9386_s0 + $0xb0] sm:$0xff] }
   0x9   :  { %117 = vmatpush1.bf16.msra.mxu0 %v84_v12  ;;  %v79_v32 = vpack.c.bf16 %v52_v29, %v43_v28  ;;  %v70_v35 = vld [vmem:[%s9386_s0 + $0xf8] sm:$0xff]  ;;  %169 = vmatprep.subr.bf16.mxu1 %v87_v23  ;;  %v89_v36 = vpack.c.bf16 %v71_v33, %v62_v30  ;;  %v55_v38 = vld [vmem:[%s9386_s0 + $0x80] sm:$0xff]  ;;  %v45_v39 = vld [vmem:[%s9386_s0 + $0x30] sm:$0xff] }
   0xa   :  { %220 = vmatprep.subr.bf16.mxu0 %v80_v27  ;;  %v46_v37 = vld [vmem:[%s9386_s0 + $0x38] sm:$0xff]  ;;  %v64_v42 = vld [vmem:[%s9386_s0 + $0xc8] sm:$0xff]  ;;  %v73_v43 = vld [vmem:[%s9386_s0 + $0x110] sm:$0xff]  ;;  %v88_v44 = vpack.c.bf16 %v70_v35, %v61_v34 }
   0xb   :  { %v82_v40 = vpack.c.bf16 %v55_v38, %v46_v37  ;;  %v54_v41 = vld [vmem:[%s9386_s0 + $0x78] sm:$0xff]  ;;  %v47_v45 = vld [vmem:[%s9386_s0 + $0x40] sm:$0xff]  ;;  %v56_v48 = vld [vmem:[%s9386_s0 + $0x88] sm:$0xff]  ;;  %v91_v49 = vpack.c.bf16 %v73_v43, %v64_v42 }
   0xc   :  { %5486 = vmatmul.mubr.msk.bf16.vlgmr.msra.gmra.mrb[0].mxu0 %vm107_vm0, %v7340_v14  ;;  %170 = vmatpush1.bf16.msra.mxu1 %v86_v31  ;;  %v81_v46 = vpack.c.bf16 %v54_v41, %v45_v39  ;;  %v63_v47 = vld [vmem:[%s9386_s0 + $0xc0] sm:$0xff]  ;;  %v72_v50 = vld [vmem:[%s9386_s0 + $0x108] sm:$0xff]  ;;  %v83_v51 = vpack.c.bf16 %v56_v48, %v47_v45  ;;  %v65_v55 = vld [vmem:[%s9386_s0 + $0xd0] sm:$0xff] }
   0xd   :  { %156 = vmatprep.mubr.bf16.mxu0 %v9398_v3  ;;  %221 = vmatpush1.bf16.msra.mxu0 %v79_v32  ;;  %v6444_v52 = vld [vmem:[%s9387_s1 + $0x8] sm:$0xff]   ;;  %v90_v53 = vpack.c.bf16 %v72_v50, %v63_v47  ;;  %v6447_v54 = vld [vmem:[%s9388_s3 + $0x4] ss:$12 sps:$4 sm:$0xff]   ;;  %v74_v56 = vld [vmem:[%s9386_s0 + $0x118] sm:$0xff] }
   0xe   :  { %222 = vmatprep.subr.bf16.mxu0 %v89_v36  ;;  %273 = vmatprep.subr.bf16.mxu1 %v82_v40  ;;  %v92_v57 = vpack.c.bf16 %v74_v56, %v65_v55  ;;  %v6445_v58 = vld [vmem:[%s9388_s3] ss:$12 sps:$4 sm:$0xff]   ;;  %v6450_v59 = vld [vmem:[%s9388_s3 + $0x1c] ss:$12 sps:$4 sm:$0xff]   ;;  %v6448_v61 = vld [vmem:[%s9388_s3 + $0x18] ss:$12 sps:$4 sm:$0xff]  }
   0xf   :  { %5488 = vmatmul.mubr.msk.bf16.vlgmr.msra.gmra.mrb[0].mxu1 %vm107_vm0, %v7340_v14  ;;  %v6472_v60 = vld [vmem:[%s9388_s3 + $0xc8] ss:$12 sps:$4 sm:$0xff]   ;;  %v6451_v63 = vld [vmem:[%s9388_s3 + $0x30] ss:$12 sps:$4 sm:$0xff]   ;;  %v6456_v0 = vld [vmem:[%s9388_s3 + $0x4c] ss:$12 sps:$4 sm:$0xff]  }
  0x10   :  { %209 = vmatprep.mubr.bf16.mxu1 %v9398_v3  ;;  %274 = vmatpush1.bf16.msra.mxu1 %v81_v46  ;;  %v6453_v62 = vld [vmem:[%s9388_s3 + $0x34] ss:$12 sps:$4 sm:$0xff]   ;;  %v6459_v5 = vld [vmem:[%s9388_s3 + $0x64] ss:$12 sps:$4 sm:$0xff]   ;;  %v6462_v8 = vld [vmem:[%s9388_s3 + $0x7c] ss:$12 sps:$4 sm:$0xff]  }
  0x11   :  { %223 = vmatpush1.bf16.msra.mxu0 %v88_v44  ;;  %275 = vmatprep.subr.bf16.mxu1 %v91_v49  ;;  %v6454_v1 = vld [vmem:[%s9388_s3 + $0x48] ss:$12 sps:$4 sm:$0xff]   ;;  %v6477_v4 = vld [vmem:[%s9388_s3 + $0xe0] ss:$12 sps:$4 sm:$0xff]   ;;  %v6482_v9 = vld [vmem:[%s9388_s3 + $0xf8] ss:$12 sps:$4 sm:$0xff]  }
  0x12   :  { %6242 = vmatprep.subr.bf16.mxu0 %v83_v51  ;;  %v6473_v2 = vld [vmem:[%s9388_s3 + $0x8] ss:$12 sps:$4 sm:$0xff]   ;;  %v6457_v6 = vld [vmem:[%s9388_s3 + $0x60] ss:$12 sps:$4 sm:$0xff]   ;;  %v6483_v10 = vld [vmem:[%s9388_s3 + $0x38] ss:$12 sps:$4 sm:$0xff]  }
  0x13   :  { %v6478_v7 = vld [vmem:[%s9388_s3 + $0x20] ss:$12 sps:$4 sm:$0xff]   ;;  %v6460_v11 = vld [vmem:[%s9388_s3 + $0x78] ss:$12 sps:$4 sm:$0xff]   ;;  %v6487_v12 = vld [vmem:[%s9388_s3 + $0x110] ss:$12 sps:$4 sm:$0xff]  }
  0x14   :  { %5487 = vmatmul.mubr.msk.bf16.gmra.mrb[4].mxu0 %vm107_vm0, %v6444_v52  ;;  %276 = vmatpush1.bf16.msra.mxu1 %v90_v53  ;;  %v6465_v13 = vld [vmem:[%s9388_s3 + $0x94] ss:$12 sps:$4 sm:$0xff]   ;;  %v6463_v15 = vld [vmem:[%s9388_s3 + $0x90] ss:$12 sps:$4 sm:$0xff]   ;;  %v6468_v17 = vld [vmem:[%s9388_s3 + $0xac] ss:$12 sps:$4 sm:$0xff]  }
  0x15   :  { %252 = vmatprep.mubr.bf16.mxu0 %v9398_v3  ;;  %1850 = vmatprep.subr.bf16.mxu1 %v6447_v54  ;;  %v6492_v16 = vld [vmem:[%s9388_s3 + $0x128] ss:$12 sps:$4 sm:$0xff]   ;;  %v6497_v20 = vld [vmem:[%s9388_s3 + $0x140] ss:$12 sps:$4 sm:$0xff]   ;;  %v6471_v21 = vld [vmem:[%s9388_s3 + $0xc4] ss:$12 sps:$4 sm:$0xff]  }
  0x16   :  { %v6493_v18 = vld [vmem:[%s9388_s3 + $0x68] ss:$12 sps:$4 sm:$0xff]   ;;  %v6498_v22 = vld [vmem:[%s9388_s3 + $0x80] ss:$12 sps:$4 sm:$0xff]   ;;  %v6502_v24 = vld [vmem:[%s9388_s3 + $0x158] ss:$12 sps:$4 sm:$0xff]  }
  0x17   :  { %5489 = vmatmul.mubr.msk.bf16.gmra.mrb[4].mxu1 %vm107_vm0, %v6444_v52  ;;  %v6466_v19 = vld [vmem:[%s9388_s3 + $0xa8] ss:$12 sps:$4 sm:$0xff]   ;;  %v6469_v23 = vld [vmem:[%s9388_s3 + $0xc0] ss:$12 sps:$4 sm:$0xff]   ;;  %v6503_v26 = vld [vmem:[%s9388_s3 + $0x98] ss:$12 sps:$4 sm:$0xff]  }
  0x18   :  { %305 = vmatprep.mubr.bf16.mxu1 %v9398_v3  ;;  %v6476_v25 = vld [vmem:[%s9388_s3 + $0xdc] ss:$12 sps:$4 sm:$0xff]   ;;  %v6474_v27 = vld [vmem:[%s9388_s3 + $0xd8] ss:$12 sps:$4 sm:$0xff]   ;;  %v6481_v28 = vld [vmem:[%s9388_s3 + $0xf4] ss:$12 sps:$4 sm:$0xff]  }
  0x19   :  { %v6479_v29 = vld [vmem:[%s9388_s3 + $0xf0] ss:$12 sps:$4 sm:$0xff]   ;;  %v6486_v30 = vld [vmem:[%s9388_s3 + $0x10c] ss:$12 sps:$4 sm:$0xff]   ;;  %v6484_v31 = vld [vmem:[%s9388_s3 + $0x108] ss:$12 sps:$4 sm:$0xff]  }
  0x1a   :  { %v6491_v32 = vld [vmem:[%s9388_s3 + $0x124] ss:$12 sps:$4 sm:$0xff]   ;;  %v6489_v33 = vld [vmem:[%s9388_s3 + $0x120] ss:$12 sps:$4 sm:$0xff]   ;;  %v6496_v34 = vld [vmem:[%s9388_s3 + $0x13c] ss:$12 sps:$4 sm:$0xff]  }
  0x1b   :  { %v6494_v35 = vld [vmem:[%s9388_s3 + $0x138] ss:$12 sps:$4 sm:$0xff]   ;;  %v6501_v36 = vld [vmem:[%s9388_s3 + $0x154] ss:$12 sps:$4 sm:$0xff]   ;;  %v6499_v37 = vld [vmem:[%s9388_s3 + $0x150] ss:$12 sps:$4 sm:$0xff]  }
  0x1c   :  { %5490 = vmatmul.mubr.msk.bf16.vlgmr.msra.gmra.mrb[8].mxu0 %vm107_vm0, %v7340_v14  ;;  %v6506_v38 = vld [vmem:[%s9388_s3 + $0x16c] ss:$12 sps:$4 sm:$0xff]   ;;  %v6507_v39 = vld [vmem:[%s9388_s3 + $0x170] ss:$12 sps:$4 sm:$0xff]   ;;  %v6504_v40 = vld [vmem:[%s9388_s3 + $0x168] ss:$12 sps:$4 sm:$0xff]  }
  0x1d   :  { %262 = vmatprep.mubr.bf16.mxu0 %v9398_v3  ;;  %6243 = vmatpush3.bf16.msra.mxu0 %v83_v51  ;;  %v6508_v41 = vld [vmem:[%s9388_s3 + $0xb0] ss:$12 sps:$4 sm:$0xff]   ;;  %v6512_v43 = vld [vmem:[%s9388_s3 + $0x248] ss:$12 sps:$4 sm:$0xff]   ;;  %v6509_v50 = vld [vmem:[%s9388_s3 + $0x180] ss:$12 sps:$4 sm:$0xff]  }
  0x1e   :  { %6244 = vmatprep.subr.bf16.mxu0 %v92_v57  ;;  %v6511_v42 = vld [vmem:[%s9388_s3 + $0x184] ss:$12 sps:$4 sm:$0xff]   ;;  %v6513_v51 = vld [vmem:[%s9388_s3 + $0x188] ss:$12 sps:$4 sm:$0xff]   ;;  %v6517_v53 = vld [vmem:[%s9388_s3 + $0x260] ss:$12 sps:$4 sm:$0xff]  }
  0x1f   :  { %5492 = vmatmul.mubr.msk.bf16.vlgmr.msra.gmra.mrb[8].mxu1 %vm107_vm0, %v7340_v14 }
  0x20   :  { %315 = vmatprep.mubr.bf16.mxu1 %v9398_v3  ;;  %1851 = vmatpush1.bf16.msra.mxu1 %v6445_v58  ;;  %v6518_v58 = vld [vmem:[%s9388_s3 + $0x1a0] ss:$12 sps:$4 sm:$0xff]  }
  0x21   :  { %6245 = vmatpush3.bf16.msra.mxu0 %v92_v57  ;;  %1852 = vmatprep.subr.bf16.mxu1 %v6450_v59  ;;  %v6514_v57 = vld [vmem:[%s9388_s3 + $0x198] ss:$12 sps:$4 sm:$0xff]  }
  0x22   :  { %6030 = vmatprep.subr.bf16.mxu0 %v6472_v60 }
  0x24   :  { %5491 = vmatmul.mubr.msk.bf16.gmra.mrb[12].mxu0 %vm107_vm0, %v6444_v52  ;;  %1853 = vmatpush1.bf16.msra.mxu1 %v6448_v61 }
  0x25   :  { %6246 = vmatprep.mubr.msk.bf16.mxu0 %vm107_vm0, %v7340_v14  ;;  %1854 = vmatprep.subr.bf16.mxu1 %v6453_v62  ;;  %v6488_v14 = vld [vmem:[%s9388_s3 + $0x50] ss:$12 sps:$4 sm:$0xff]   ;;  %v6521_v62 = vld [vmem:[%s9388_s3 + $0x1b4] ss:$12 sps:$4 sm:$0xff]  }
  0x27   :  { %5493 = vmatmul.mubr.msk.bf16.gmra.mrb[12].mxu1 %vm107_vm0, %v6444_v52 }
  0x28   :  { %1855 = vmatpush1.bf16.msra.mxu1 %v6451_v63  ;;  %v6522_v63 = vld [vmem:[%s9388_s3 + $0x278] ss:$12 sps:$4 sm:$0xff]  }
  0x29   :  { %1856 = vmatprep.subr.bf16.mxu1 %v6456_v0 }
  0x2c   :  { %6247 = vmatmul.mubr.msk.bf16.vlgmr.msra.gmra.mrb[16].mxu0 %vm107_vm0, %v6444_v52  ;;  %1857 = vmatpush1.bf16.msra.mxu1 %v6454_v1  ;;  %v6516_v52 = vld [vmem:[%s9388_s3 + $0x19c] ss:$12 sps:$4 sm:$0xff]  }
  0x2d   :  { %6031 = vmatpush3.bf16.msra.mxu0 %v6473_v2  ;;  %1858 = vmatprep.subr.bf16.mxu1 %v6459_v5 }
  0x2e   :  { %6032 = vmatprep.subr.bf16.mxu0 %v6477_v4 }
  0x30   :  { %1859 = vmatpush1.bf16.msra.mxu1 %v6457_v6  ;;  %v6519_v6 = vld [vmem:[%s9388_s3 + $0x1b0] ss:$12 sps:$4 sm:$0xff]  }
  0x31   :  { %6033 = vmatpush3.bf16.msra.mxu0 %v6478_v7  ;;  %1860 = vmatprep.subr.bf16.mxu1 %v6462_v8  ;;  %v6523_v7 = vld [vmem:[%s9388_s3 + $0x1b8] ss:$12 sps:$4 sm:$0xff]  }
  0x32   :  { %6034 = vmatprep.subr.bf16.mxu0 %v6482_v9  ;;  %v6526_v9 = vld [vmem:[%s9388_s3 + $0x1cc] ss:$12 sps:$4 sm:$0xff]  }
  0x34   :  { %1861 = vmatpush1.bf16.msra.mxu1 %v6460_v11 }
  0x35   :  { %6035 = vmatpush3.bf16.msra.mxu0 %v6483_v10  ;;  %1862 = vmatprep.subr.bf16.mxu1 %v6465_v13  ;;  %v6527_v10 = vld [vmem:[%s9388_s3 + $0x290] ss:$12 sps:$4 sm:$0xff]  }
  0x36   :  { %6036 = vmatprep.subr.bf16.mxu0 %v6487_v12 }
  0x38   :  { %1863 = vmatpush1.bf16.msra.mxu1 %v6463_v15  ;;  %v6528_v15 = vld [vmem:[%s9388_s3 + $0x1d0] ss:$12 sps:$4 sm:$0xff]  }
  0x39   :  { %6037 = vmatpush3.bf16.msra.mxu0 %v6488_v14  ;;  %1864 = vmatprep.subr.bf16.mxu1 %v6468_v17  ;;  %v6524_v14 = vld [vmem:[%s9388_s3 + $0x1c8] ss:$12 sps:$4 sm:$0xff]  }
  0x3a   :  { %6038 = vmatprep.subr.bf16.mxu0 %v6492_v16 }
  0x3c   :  { %1865 = vmatpush1.bf16.msra.mxu1 %v6466_v19  ;;  %v6531_v19 = vld [vmem:[%s9388_s3 + $0x1e4] ss:$12 sps:$4 sm:$0xff]  }
  0x3d   :  { %6039 = vmatpush3.bf16.msra.mxu0 %v6493_v18  ;;  %1866 = vmatprep.subr.bf16.mxu1 %v6471_v21 }
  0x3e   :  { %6040 = vmatprep.subr.bf16.mxu0 %v6497_v20  ;;  %v6532_v20 = vld [vmem:[%s9388_s3 + $0x2a8] ss:$12 sps:$4 sm:$0xff]  }
  0x40   :  { %1867 = vmatpush1.bf16.msra.mxu1 %v6469_v23 }
  0x41   :  { %6041 = vmatpush3.bf16.msra.mxu0 %v6498_v22  ;;  %1868 = vmatprep.subr.bf16.mxu1 %v6476_v25 }
  0x42   :  { %6042 = vmatprep.subr.bf16.mxu0 %v6502_v24 }
  0x44   :  { %1869 = vmatpush1.bf16.msra.mxu1 %v6474_v27  ;;  %v6533_v27 = vld [vmem:[%s9388_s3 + $0x1e8] ss:$12 sps:$4 sm:$0xff]  }
  0x45   :  { %6043 = vmatpush3.bf16.msra.mxu0 %v6503_v26  ;;  %1870 = vmatprep.subr.bf16.mxu1 %v6481_v28  ;;  %v6529_v26 = vld [vmem:[%s9388_s3 + $0x1e0] ss:$12 sps:$4 sm:$0xff]  }
  0x46   :  { %6044 = vmatprep.subr.bf16.mxu0 %v6507_v39  ;;  %v6541_v39 = vld [vmem:[%s9388_s3 + $0x214] ss:$12 sps:$4 sm:$0xff]  }
  0x48   :  { %1871 = vmatpush1.bf16.msra.mxu1 %v6479_v29  ;;  %v6536_v29 = vld [vmem:[%s9388_s3 + $0x1fc] ss:$12 sps:$4 sm:$0xff]  }
  0x49   :  { %1872 = vmatprep.subr.bf16.mxu1 %v6486_v30  ;;  %6045 = vmatpush3.bf16.msra.mxu0 %v6508_v41  ;;  %v6537_v30 = vld [vmem:[%s9388_s3 + $0x2c0] ss:$12 sps:$4 sm:$0xff]  }
  0x4a   :  { %6058 = vmatprep.subr.bf16.mxu0 %v6512_v43 }
  0x4c   :  { %1873 = vmatpush1.bf16.msra.mxu1 %v6484_v31 }
  0x4d   :  { %1874 = vmatprep.subr.bf16.mxu1 %v6491_v32 }
  0x50   :  { %1875 = vmatpush1.bf16.msra.mxu1 %v6489_v33 }
  0x51   :  { %1876 = vmatprep.subr.bf16.mxu1 %v6496_v34  ;;  %v6534_v34 = vld [vmem:[%s9388_s3 + $0x1f8] ss:$12 sps:$4 sm:$0xff]  }
  0x54   :  { %1877 = vmatpush1.bf16.msra.mxu1 %v6494_v35  ;;  %v6538_v35 = vld [vmem:[%s9388_s3 + $0x200] ss:$12 sps:$4 sm:$0xff]  }
  0x55   :  { %1878 = vmatprep.subr.bf16.mxu1 %v6501_v36 }
  0x58   :  { %1879 = vmatpush1.bf16.msra.mxu1 %v6499_v37 }
  0x59   :  { %1880 = vmatprep.subr.bf16.mxu1 %v6506_v38 }
  0x5c   :  { %1881 = vmatpush1.bf16.msra.mxu1 %v6504_v40  ;;  %v6542_v40 = vld [vmem:[%s9388_s3 + $0x2d8] ss:$12 sps:$4 sm:$0xff]  }
  0x5d   :  { %1903 = vmatprep.subr.bf16.mxu1 %v6511_v42 }
  0xdf   :  { %v7597_v44 = vpop.f32.mrb[0].mxu0 }
  0xe0   :  { %v7599_v45 = vpop.f32.mrb[1].mxu0 }
  0xe1   :  { %v7601_v46 = vpop.f32.mrb[2].mxu0 }
  0xe2   :  { %v375_v47 = vpack.c.bf16 %v7601_v46, %v7597_v44  ;;  %v7605_v48 = vpop.f32.mrb[3].mxu0  ;;  %v7621_v54 = vpop.f32.mrb[0].mxu1 }
  0xe3   :  { %v376_v49 = vpack.c.bf16 %v7605_v48, %v7599_v45  ;;  %v7623_v55 = vpop.f32.mrb[1].mxu1 }
  0xe4   :  { %v7625_v56 = vpop.f32.mrb[2].mxu1 }
  0xe5   :  { %1882 = vmatprep.mubr.bf16.mxu1 %v376_v49  ;;  %2147 = vmatprep.mubr.bf16.mxu0 %v376_v49  ;;  %v7637_v60 = vpack.c.bf16 %v7625_v56, %v7621_v54  ;;  %v7639_v61 = vpop.f32.mrb[3].mxu1 }
  0xe6   :  { %1883 = vmatmul.mubr.bf16.vlgmr.msra.gmra.mrb[16].mxu1 %v375_v47  ;;  %2148 = vmatmul.mubr.bf16.vlgmr.msra.gmra.mrb[20].mxu0 %v375_v47  ;;  %v378_v1 = vpack.c.bf16 %v7639_v61, %v7623_v55 }
  0xe7   :  { %1904 = vmatpush1.bf16.msra.mxu1 %v6509_v50  ;;  %6059 = vmatpush3.bf16.msra.mxu0 %v6513_v51  ;;  %v7633_v59 = vpop.f32.mrb[4].mxu0  ;;  %v6539_v50 = vld [vmem:[%s9388_s3 + $0x210] ss:$12 sps:$4 sm:$0xff]   ;;  %v6543_v51 = vld [vmem:[%s9388_s3 + $0x218] ss:$12 sps:$4 sm:$0xff]  }
  0xe8   :  { %1905 = vmatprep.subr.bf16.mxu1 %v6516_v52  ;;  %6060 = vmatprep.subr.bf16.mxu0 %v6517_v53  ;;  %v7647_v0 = vpop.f32.mrb[5].mxu0  ;;  %v6546_v53 = vld [vmem:[%s9388_s3 + $0x22c] ss:$12 sps:$4 sm:$0xff]  }
  0xe9   :  { %v7651_v2 = vpop.f32.mrb[6].mxu0 }
  0xea   :  { %v384_v4 = vpack.c.bf16 %v7651_v2, %v7633_v59  ;;  %v7655_v5 = vpop.f32.mrb[7].mxu0  ;;  %v7671_v11 = vpop.f32.mrb[4].mxu1 }
  0xeb   :  { %1906 = vmatpush1.bf16.msra.mxu1 %v6514_v57  ;;  %6061 = vmatpush3.bf16.msra.mxu0 %v6518_v58  ;;  %v385_v8 = vpack.c.bf16 %v7655_v5, %v7647_v0  ;;  %v7673_v12 = vpop.f32.mrb[5].mxu1  ;;  %v6547_v57 = vld [vmem:[%s9388_s3 + $0x2f0] ss:$12 sps:$4 sm:$0xff]  }
  0xec   :  { %1907 = vmatprep.subr.bf16.mxu1 %v6521_v62  ;;  %6062 = vmatprep.subr.bf16.mxu0 %v6522_v63  ;;  %v7675_v13 = vpop.f32.mrb[6].mxu1 }
  0xed   :  { %2155 = vmatprep.mubr.bf16.mxu0 %v385_v8  ;;  %1892 = vmatprep.mubr.bf16.mxu1 %v385_v8  ;;  %v7685_v16 = vpack.c.bf16 %v7675_v13, %v7671_v11  ;;  %v7687_v17 = vpop.f32.mrb[7].mxu1 }
  0xee   :  { %2156 = vmatmul.mubr.bf16.gmra.mrb[24].mxu0 %v384_v4  ;;  %1893 = vmatmul.mubr.bf16.gmra.mrb[20].mxu1 %v384_v4  ;;  %v7699_v21 = vpack.c.bf16 %v7687_v17, %v7673_v12  ;;  %v6548_v4 = vld [vmem:[%s9388_s3 + $0x230] ss:$12 sps:$4 sm:$0xff]  }
  0xef   :  { %1908 = vmatpush1.bf16.msra.mxu1 %v6519_v6  ;;  %6063 = vmatpush3.bf16.msra.mxu0 %v6523_v7  ;;  %v7689_v18 = vpop.f32.mrb[8].mxu0 }
  0xf0   :  { %1909 = vmatprep.subr.bf16.mxu1 %v6526_v9  ;;  %6064 = vmatprep.subr.bf16.mxu0 %v6527_v10  ;;  %v7701_v22 = vpop.f32.mrb[9].mxu0  ;;  %v6551_v9 = vld [vmem:[%s9388_s3 + $0x244] ss:$12 sps:$4 sm:$0xff]   ;;  %v6552_v10 = vld [vmem:[%s9388_s3 + $0x3c8] ss:$12 sps:$4 sm:$0xff]  }
  0xf1   :  { %2196 = vmatprep.mubr.bf16.mxu0 %v378_v1  ;;  %v7703_v23 = vpop.f32.mrb[10].mxu0  ;;  %1935 = vmatprep.mubr.bf16.mxu1 %v378_v1  ;;  %v6544_v1 = vld [vmem:[%s9388_s3 + $0x228] ss:$12 sps:$4 sm:$0xff]  }
  0xf2   :  { %v7707_v24 = vpack.c.bf16 %v7703_v23, %v7689_v18  ;;  %v7709_v25 = vpop.f32.mrb[11].mxu0  ;;  %v7727_v31 = vpop.f32.mrb[8].mxu1 }
  0xf3   :  { %1910 = vmatpush1.bf16.msra.mxu1 %v6524_v14  ;;  %6065 = vmatpush3.bf16.msra.mxu0 %v6528_v15  ;;  %v7719_v28 = vpack.c.bf16 %v7709_v25, %v7701_v22  ;;  %v7729_v32 = vpop.f32.mrb[9].mxu1 }
  0xf4   :  { %1911 = vmatprep.subr.bf16.mxu1 %v6531_v19  ;;  %6066 = vmatprep.subr.bf16.mxu0 %v6532_v20  ;;  %v7731_v33 = vpop.f32.mrb[10].mxu1 }
  0xf5   :  { %v7743_v37 = vpack.c.bf16 %v7731_v33, %v7727_v31  ;;  %v7745_v38 = vpop.f32.mrb[11].mxu1 }
  0xf6   :  { %v7757_v42 = vpack.c.bf16 %v7745_v38, %v7729_v32 }
  0xf7   :  { %1912 = vmatpush1.bf16.msra.mxu1 %v6529_v26  ;;  %6067 = vmatpush3.bf16.msra.mxu0 %v6533_v27  ;;  %v7739_v36 = vpop.f32.mrb[12].mxu0  ;;  %v6549_v27 = vld [vmem:[%s9388_s3 + $0x240] ss:$12 sps:$4 sm:$0xff]  }
  0xf8   :  { %1913 = vmatprep.subr.bf16.mxu1 %v6536_v29  ;;  %6068 = vmatprep.subr.bf16.mxu0 %v6537_v30  ;;  %v7753_v41 = vpop.f32.mrb[13].mxu0  ;;  %v6553_v29 = vld [vmem:[%s9388_s3 + $0x308] ss:$12 sps:$4 sm:$0xff]  }
  0xf9   :  { %v7759_v43 = vpop.f32.mrb[14].mxu0 }
  0xfa   :  { %v7763_v47 = vpack.c.bf16 %v7759_v43, %v7739_v36  ;;  %v7765_v49 = vpop.f32.mrb[15].mxu0  ;;  %v7783_v58 = vpop.f32.mrb[12].mxu1 }
  0xfb   :  { %1914 = vmatpush1.bf16.msra.mxu1 %v6534_v34  ;;  %6069 = vmatpush3.bf16.msra.mxu0 %v6538_v35  ;;  %v7775_v52 = vpack.c.bf16 %v7765_v49, %v7753_v41  ;;  %v7785_v62 = vpop.f32.mrb[13].mxu1  ;;  %v6556_v34 = vld [vmem:[%s9388_s3 + $0x25c] ss:$12 sps:$4 sm:$0xff]   ;;  %v6557_v35 = vld [vmem:[%s9388_s3 + $0x3e0] ss:$12 sps:$4 sm:$0xff]  }
  0xfc   :  { %1915 = vmatprep.subr.bf16.mxu1 %v6541_v39  ;;  %6070 = vmatprep.subr.bf16.mxu0 %v6542_v40  ;;  %v7787_v63 = vpop.f32.mrb[14].mxu1  ;;  %v6554_v39 = vld [vmem:[%s9388_s3 + $0x258] ss:$12 sps:$4 sm:$0xff]   ;;  %v6558_v40 = vld [vmem:[%s9388_s3 + $0x320] ss:$12 sps:$4 sm:$0xff]  }
  0xfd   :  { %v7797_v6 = vpack.c.bf16 %v7787_v63, %v7783_v58  ;;  %v7799_v7 = vpop.f32.mrb[15].mxu1 }
  0xfe   :  { %v7811_v14 = vpack.c.bf16 %v7799_v7, %v7785_v62 }
  0xff   :  { %1916 = vmatpush1.bf16.msra.mxu1 %v6539_v50  ;;  %6071 = vmatpush3.bf16.msra.mxu0 %v6543_v51  ;;  %v7801_v8 = vpop.f32.mrb[16].mxu0  ;;  %v6561_v50 = vld [vmem:[%s9388_s3 + $0x274] ss:$12 sps:$4 sm:$0xff]   ;;  %v6562_v51 = vld [vmem:[%s9388_s3 + $0x3f8] ss:$12 sps:$4 sm:$0xff]  }
 0x100   :  { %9403 = vst [vmem:[#allocation2_spill] sm:$0xff] %v7801_v8  ;;  %1917 = vmatprep.subr.bf16.mxu1 %v6546_v53  ;;  %6072 = vmatprep.subr.bf16.mxu0 %v6547_v57  ;;  %v7813_v15 = vpop.f32.mrb[17].mxu0  ;;  %v6559_v53 = vld [vmem:[%s9388_s3 + $0x270] ss:$12 sps:$4 sm:$0xff]   ;;  %v6563_v57 = vld [vmem:[%s9388_s3 + $0x338] ss:$12 sps:$4 sm:$0xff]  }
 0x101   :  { %v7815_v19 = vpop.f32.mrb[18].mxu0 }
 0x102   :  { %9404 = vst [vmem:[#allocation3_spill] sm:$0xff] %v7815_v19  ;;  %v7819_v20 = vpack.c.bf16 %v7815_v19, %v7801_v8  ;;  %v7821_v26 = vpop.f32.mrb[19].mxu0 }
 0x103   :  { %9405 = vst [vmem:[#allocation4_spill] sm:$0xff] %v7821_v26  ;;  %1918 = vmatpush1.bf16.msra.mxu1 %v6544_v1  ;;  %6073 = vmatpush3.bf16.msra.mxu0 %v6548_v4  ;;  %v7831_v30 = vpack.c.bf16 %v7821_v26, %v7813_v15  ;;  %v6566_v1 = vld [vmem:[%s9388_s3 + $0x28c] ss:$12 sps:$4 sm:$0xff]   ;;  %v6567_v4 = vld [vmem:[%s9388_s3 + $0x410] ss:$12 sps:$4 sm:$0xff]  }
 0x104   :  { %1919 = vmatprep.subr.bf16.mxu1 %v6551_v9  ;;  %6086 = vmatprep.subr.bf16.mxu0 %v6552_v10  ;;  %v6564_v9 = vld [vmem:[%s9388_s3 + $0x288] ss:$12 sps:$4 sm:$0xff]   ;;  %v6568_v10 = vld [vmem:[%s9388_s3 + $0x350] ss:$12 sps:$4 sm:$0xff]  }
 0x106   :  { %2197 = vmatmul.mubr.bf16.vlgmr.msra.gmra.mrb[28].mxu0 %v7637_v60 }
 0x107   :  { %1920 = vmatpush1.bf16.msra.mxu1 %v6549_v27  ;;  %6087 = vmatpush3.bf16.msra.mxu0 %v6553_v29  ;;  %v6571_v27 = vld [vmem:[%s9388_s3 + $0x2a4] ss:$12 sps:$4 sm:$0xff]   ;;  %v6572_v29 = vld [vmem:[%s9388_s3 + $0x428] ss:$12 sps:$4 sm:$0xff]  }
 0x108   :  { %1921 = vmatprep.subr.bf16.mxu1 %v6556_v34  ;;  %6088 = vmatprep.subr.bf16.mxu0 %v6557_v35  ;;  %v6569_v34 = vld [vmem:[%s9388_s3 + $0x2a0] ss:$12 sps:$4 sm:$0xff]   ;;  %v6573_v35 = vld [vmem:[%s9388_s3 + $0x368] ss:$12 sps:$4 sm:$0xff]  }
 0x109   :  { %2204 = vmatprep.mubr.bf16.mxu0 %v7699_v21 }
 0x10b   :  { %1922 = vmatpush1.bf16.msra.mxu1 %v6554_v39  ;;  %6089 = vmatpush3.bf16.msra.mxu0 %v6558_v40  ;;  %v6576_v39 = vld [vmem:[%s9388_s3 + $0x2bc] ss:$12 sps:$4 sm:$0xff]   ;;  %v6577_v40 = vld [vmem:[%s9388_s3 + $0x440] ss:$12 sps:$4 sm:$0xff]  }
 0x10c   :  { %1923 = vmatprep.subr.bf16.mxu1 %v6561_v50  ;;  %6090 = vmatprep.subr.bf16.mxu0 %v6562_v51  ;;  %v6574_v50 = vld [vmem:[%s9388_s3 + $0x2b8] ss:$12 sps:$4 sm:$0xff]   ;;  %v6578_v51 = vld [vmem:[%s9388_s3 + $0x380] ss:$12 sps:$4 sm:$0xff]  }
 0x10e   :  { %2205 = vmatmul.mubr.bf16.gmra.mrb[32].mxu0 %v7685_v16 }
 0x10f   :  { %1924 = vmatpush1.bf16.msra.mxu1 %v6559_v53  ;;  %6091 = vmatpush3.bf16.msra.mxu0 %v6563_v57  ;;  %v6581_v53 = vld [vmem:[%s9388_s3 + $0x2d4] ss:$12 sps:$4 sm:$0xff]   ;;  %v6582_v57 = vld [vmem:[%s9388_s3 + $0x458] ss:$12 sps:$4 sm:$0xff]  }
 0x110   :  { %1925 = vmatprep.subr.bf16.mxu1 %v6566_v1  ;;  %6092 = vmatprep.subr.bf16.mxu0 %v6567_v4  ;;  %v6579_v1 = vld [vmem:[%s9388_s3 + $0x2d0] ss:$12 sps:$4 sm:$0xff]   ;;  %v6583_v4 = vld [vmem:[%s9388_s3 + $0x398] ss:$12 sps:$4 sm:$0xff]  }
 0x111   :  { %2245 = vmatprep.mubr.bf16.mxu0 %v7719_v28 }
 0x113   :  { %1926 = vmatpush1.bf16.msra.mxu1 %v6564_v9  ;;  %6093 = vmatpush3.bf16.msra.mxu0 %v6568_v10  ;;  %v6586_v9 = vld [vmem:[%s9388_s3 + $0x2ec] ss:$12 sps:$4 sm:$0xff]   ;;  %v6587_v10 = vld [vmem:[%s9388_s3 + $0x470] ss:$12 sps:$4 sm:$0xff]  }
 0x114   :  { %1927 = vmatprep.subr.bf16.mxu1 %v6571_v27  ;;  %6094 = vmatprep.subr.bf16.mxu0 %v6572_v29  ;;  %v6584_v27 = vld [vmem:[%s9388_s3 + $0x2e8] ss:$12 sps:$4 sm:$0xff]   ;;  %v6588_v29 = vld [vmem:[%s9388_s3 + $0x3b0] ss:$12 sps:$4 sm:$0xff]  }
 0x117   :  { %1928 = vmatpush1.bf16.msra.mxu1 %v6569_v34  ;;  %6095 = vmatpush3.bf16.msra.mxu0 %v6573_v35  ;;  %v6591_v34 = vld [vmem:[%s9388_s3 + $0x304] ss:$12 sps:$4 sm:$0xff]   ;;  %v6592_v35 = vld [vmem:[%s9388_s3 + $0x548] ss:$12 sps:$4 sm:$0xff]  }
 0x118   :  { %1929 = vmatprep.subr.bf16.mxu1 %v6576_v39  ;;  %6096 = vmatprep.subr.bf16.mxu0 %v6577_v40  ;;  %v6589_v39 = vld [vmem:[%s9388_s3 + $0x300] ss:$12 sps:$4 sm:$0xff]   ;;  %v6593_v40 = vld [vmem:[%s9388_s3 + $0x488] ss:$12 sps:$4 sm:$0xff]  }
 0x11b   :  { %1930 = vmatpush1.bf16.msra.mxu1 %v6574_v50  ;;  %6097 = vmatpush3.bf16.msra.mxu0 %v6578_v51  ;;  %v6596_v50 = vld [vmem:[%s9388_s3 + $0x31c] ss:$12 sps:$4 sm:$0xff]   ;;  %v6597_v51 = vld [vmem:[%s9388_s3 + $0x560] ss:$12 sps:$4 sm:$0xff]  }
 0x11c   :  { %1931 = vmatprep.subr.bf16.mxu1 %v6581_v53  ;;  %6098 = vmatprep.subr.bf16.mxu0 %v6582_v57  ;;  %v6594_v53 = vld [vmem:[%s9388_s3 + $0x318] ss:$12 sps:$4 sm:$0xff]   ;;  %v6598_v57 = vld [vmem:[%s9388_s3 + $0x4a0] ss:$12 sps:$4 sm:$0xff]  }
 0x11f   :  { %1932 = vmatpush1.bf16.msra.mxu1 %v6579_v1  ;;  %6099 = vmatpush3.bf16.msra.mxu0 %v6583_v4  ;;  %v6601_v1 = vld [vmem:[%s9388_s3 + $0x334] ss:$12 sps:$4 sm:$0xff]   ;;  %v6599_v4 = vld [vmem:[%s9388_s3 + $0x330] ss:$12 sps:$4 sm:$0xff]  }
 0x120   :  { %1933 = vmatprep.subr.bf16.mxu1 %v6586_v9  ;;  %6100 = vmatprep.subr.bf16.mxu0 %v6587_v10  ;;  %v6603_v9 = vld [vmem:[%s9388_s3 + $0x4b8] ss:$12 sps:$4 sm:$0xff]  }
 0x121   :  { %v6606_v10 = vld [vmem:[%s9388_s3 + $0x34c] ss:$12 sps:$4 sm:$0xff]  }
 0x123   :  { %1934 = vmatpush1.bf16.msra.mxu1 %v6584_v27  ;;  %6101 = vmatpush3.bf16.msra.mxu0 %v6588_v29  ;;  %v6604_v27 = vld [vmem:[%s9388_s3 + $0x348] ss:$12 sps:$4 sm:$0xff]   ;;  %v6608_v29 = vld [vmem:[%s9388_s3 + $0x4d0] ss:$12 sps:$4 sm:$0xff]  }
 0x124   :  { %1956 = vmatprep.subr.bf16.mxu1 %v6591_v34  ;;  %6114 = vmatprep.subr.bf16.mxu0 %v6592_v35  ;;  %v6611_v34 = vld [vmem:[%s9388_s3 + $0x364] ss:$12 sps:$4 sm:$0xff]   ;;  %v6609_v35 = vld [vmem:[%s9388_s3 + $0x360] ss:$12 sps:$4 sm:$0xff]  }
 0x126   :  { %1936 = vmatmul.mubr.bf16.vlgmr.msra.gmra.mrb[16].mxu1 %v7637_v60  ;;  %2246 = vmatmul.mubr.bf16.vlgmr.msra.gmra.mrb[36].mxu0 %v7707_v24  ;;  %v6602_v60 = vld [vmem:[%s9388_s3 + $0x578] ss:$12 sps:$4 sm:$0xff]  }
 0x127   :  { %1957 = vmatpush1.bf16.msra.mxu1 %v6589_v39  ;;  %6115 = vmatpush3.bf16.msra.mxu0 %v6593_v40  ;;  %v6613_v39 = vld [vmem:[%s9388_s3 + $0x4e8] ss:$12 sps:$4 sm:$0xff]  }
 0x128   :  { %1958 = vmatprep.subr.bf16.mxu1 %v6596_v50  ;;  %6116 = vmatprep.subr.bf16.mxu0 %v6597_v51  ;;  %v6616_v40 = vld [vmem:[%s9388_s3 + $0x37c] ss:$12 sps:$4 sm:$0xff]   ;;  %v6614_v50 = vld [vmem:[%s9388_s3 + $0x378] ss:$12 sps:$4 sm:$0xff]   ;;  %v6618_v51 = vld [vmem:[%s9388_s3 + $0x500] ss:$12 sps:$4 sm:$0xff]  }
 0x129   :  { %2253 = vmatprep.mubr.bf16.mxu0 %v7775_v52  ;;  %1945 = vmatprep.mubr.bf16.mxu1 %v7699_v21  ;;  %v6607_v21 = vld [vmem:[%s9388_s3 + $0x590] ss:$12 sps:$4 sm:$0xff]  }
 0x12b   :  { %1959 = vmatpush1.bf16.msra.mxu1 %v6594_v53  ;;  %6117 = vmatpush3.bf16.msra.mxu0 %v6598_v57  ;;  %v6621_v53 = vld [vmem:[%s9388_s3 + $0x394] ss:$12 sps:$4 sm:$0xff]   ;;  %v6622_v57 = vld [vmem:[%s9388_s3 + $0x5d8] ss:$12 sps:$4 sm:$0xff]  }
 0x12c   :  { %1960 = vmatprep.subr.bf16.mxu1 %v6601_v1  ;;  %6118 = vmatprep.subr.bf16.mxu0 %v6602_v60  ;;  %v6619_v1 = vld [vmem:[%s9388_s3 + $0x390] ss:$12 sps:$4 sm:$0xff]   ;;  %v6623_v60 = vld [vmem:[%s9388_s3 + $0x518] ss:$12 sps:$4 sm:$0xff]  }
 0x12e   :  { %2254 = vmatmul.mubr.bf16.gmra.mrb[40].mxu0 %v7763_v47  ;;  %1946 = vmatmul.mubr.bf16.gmra.mrb[20].mxu1 %v7685_v16  ;;  %v6612_v16 = vld [vmem:[%s9388_s3 + $0x5a8] ss:$12 sps:$4 sm:$0xff]  }
 0x12f   :  { %1961 = vmatpush1.bf16.msra.mxu1 %v6599_v4  ;;  %6119 = vmatpush3.bf16.msra.mxu0 %v6603_v9  ;;  %v6626_v4 = vld [vmem:[%s9388_s3 + $0x3ac] ss:$12 sps:$4 sm:$0xff]   ;;  %v6627_v9 = vld [vmem:[%s9388_s3 + $0x5f0] ss:$12 sps:$4 sm:$0xff]  }
 0x130   :  { %1962 = vmatprep.subr.bf16.mxu1 %v6606_v10  ;;  %6120 = vmatprep.subr.bf16.mxu0 %v6607_v21  ;;  %v6624_v10 = vld [vmem:[%s9388_s3 + $0x3a8] ss:$12 sps:$4 sm:$0xff]   ;;  %v6628_v21 = vld [vmem:[%s9388_s3 + $0x530] ss:$12 sps:$4 sm:$0xff]  }
 0x131   :  { %2294 = vmatprep.mubr.bf16.mxu0 %v7757_v42  ;;  %1988 = vmatprep.mubr.bf16.mxu1 %v7719_v28  ;;  %v6617_v28 = vld [vmem:[%s9388_s3 + $0x5c0] ss:$12 sps:$4 sm:$0xff]  }
 0x133   :  { %1963 = vmatpush1.bf16.msra.mxu1 %v6604_v27  ;;  %6121 = vmatpush3.bf16.msra.mxu0 %v6608_v29  ;;  %v6631_v27 = vld [vmem:[%s9388_s3 + $0x3c4] ss:$12 sps:$4 sm:$0xff]   ;;  %v6632_v29 = vld [vmem:[%s9388_s3 + $0x608] ss:$12 sps:$4 sm:$0xff]  }
 0x134   :  { %1964 = vmatprep.subr.bf16.mxu1 %v6611_v34  ;;  %6122 = vmatprep.subr.bf16.mxu0 %v6612_v16  ;;  %v6629_v34 = vld [vmem:[%s9388_s3 + $0x3c0] ss:$12 sps:$4 sm:$0xff]   ;;  %v6635_v16 = vld [vmem:[%s9388_s3 + $0x3dc] ss:$12 sps:$4 sm:$0xff]  }
 0x137   :  { %1965 = vmatpush1.bf16.msra.mxu1 %v6609_v35  ;;  %6123 = vmatpush3.bf16.msra.mxu0 %v6613_v39  ;;  %v6636_v35 = vld [vmem:[%s9388_s3 + $0x620] ss:$12 sps:$4 sm:$0xff]   ;;  %v6633_v39 = vld [vmem:[%s9388_s3 + $0x3d8] ss:$12 sps:$4 sm:$0xff]  }
 0x138   :  { %1966 = vmatprep.subr.bf16.mxu1 %v6616_v40  ;;  %6124 = vmatprep.subr.bf16.mxu0 %v6617_v28  ;;  %v6639_v40 = vld [vmem:[%s9388_s3 + $0x3f4] ss:$12 sps:$4 sm:$0xff]   ;;  %v6640_v28 = vld [vmem:[%s9388_s3 + $0x638] ss:$12 sps:$4 sm:$0xff]  }
 0x13b   :  { %1967 = vmatpush1.bf16.msra.mxu1 %v6614_v50  ;;  %6125 = vmatpush3.bf16.msra.mxu0 %v6618_v51  ;;  %v6637_v50 = vld [vmem:[%s9388_s3 + $0x3f0] ss:$12 sps:$4 sm:$0xff]   ;;  %v6643_v51 = vld [vmem:[%s9388_s3 + $0x40c] ss:$12 sps:$4 sm:$0xff]  }
 0x13c   :  { %1968 = vmatprep.subr.bf16.mxu1 %v6621_v53  ;;  %6126 = vmatprep.subr.bf16.mxu0 %v6622_v57  ;;  %v6644_v53 = vld [vmem:[%s9388_s3 + $0x650] ss:$12 sps:$4 sm:$0xff]   ;;  %v6641_v57 = vld [vmem:[%s9388_s3 + $0x408] ss:$12 sps:$4 sm:$0xff]  }
 0x13f   :  { %1969 = vmatpush1.bf16.msra.mxu1 %v6619_v1  ;;  %6127 = vmatpush3.bf16.msra.mxu0 %v6623_v60  ;;  %v6647_v1 = vld [vmem:[%s9388_s3 + $0x424] ss:$12 sps:$4 sm:$0xff]   ;;  %v6648_v60 = vld [vmem:[%s9388_s3 + $0x668] ss:$12 sps:$4 sm:$0xff]  }
 0x140   :  { %1970 = vmatprep.subr.bf16.mxu1 %v6626_v4  ;;  %6128 = vmatprep.subr.bf16.mxu0 %v6627_v9  ;;  %v6645_v4 = vld [vmem:[%s9388_s3 + $0x420] ss:$12 sps:$4 sm:$0xff]   ;;  %v6651_v9 = vld [vmem:[%s9388_s3 + $0x43c] ss:$12 sps:$4 sm:$0xff]  }
 0x143   :  { %1971 = vmatpush1.bf16.msra.mxu1 %v6624_v10  ;;  %6129 = vmatpush3.bf16.msra.mxu0 %v6628_v21  ;;  %v6652_v10 = vld [vmem:[%s9388_s3 + $0x680] ss:$12 sps:$4 sm:$0xff]   ;;  %v6649_v21 = vld [vmem:[%s9388_s3 + $0x438] ss:$12 sps:$4 sm:$0xff]  }
 0x144   :  { %1972 = vmatprep.subr.bf16.mxu1 %v6631_v27  ;;  %6250 = vmatprep.subr.bf16.mxu0 %v6632_v29  ;;  %v6655_v27 = vld [vmem:[%s9388_s3 + $0x454] ss:$12 sps:$4 sm:$0xff]  }
 0x146   :  { %2295 = vmatmul.mubr.bf16.vlgmr.msra.gmra.mrb[44].mxu0 %v7743_v37 }
 0x147   :  { %1973 = vmatpush1.bf16.msra.mxu1 %v6629_v34  ;;  %6251 = vmatpush3.bf16.msra.mxu0 %v6632_v29  ;;  %v6656_v29 = vld [vmem:[%s9388_s3 + $0x698] ss:$12 sps:$4 sm:$0xff]   ;;  %v6653_v34 = vld [vmem:[%s9388_s3 + $0x450] ss:$12 sps:$4 sm:$0xff]  }
 0x148   :  { %1974 = vmatprep.subr.bf16.mxu1 %v6635_v16  ;;  %6252 = vmatprep.subr.bf16.mxu0 %v6636_v35  ;;  %v6659_v16 = vld [vmem:[%s9388_s3 + $0x46c] ss:$12 sps:$4 sm:$0xff]  }
 0x149   :  { %2302 = vmatprep.mubr.bf16.mxu0 %v7811_v14 }
 0x14b   :  { %1975 = vmatpush1.bf16.msra.mxu1 %v6633_v39  ;;  %6253 = vmatpush3.bf16.msra.mxu0 %v6636_v35  ;;  %v6660_v35 = vld [vmem:[%s9388_s3 + $0x6b0] ss:$12 sps:$4 sm:$0xff]   ;;  %v6657_v39 = vld [vmem:[%s9388_s3 + $0x468] ss:$12 sps:$4 sm:$0xff]  }
 0x14c   :  { %1976 = vmatprep.subr.bf16.mxu1 %v6639_v40  ;;  %6254 = vmatprep.subr.bf16.mxu0 %v6640_v28  ;;  %v6663_v40 = vld [vmem:[%s9388_s3 + $0x484] ss:$12 sps:$4 sm:$0xff]  }
 0x14e   :  { %2303 = vmatmul.mubr.bf16.gmra.mrb[48].mxu0 %v7797_v6 }
 0x14f   :  { %1977 = vmatpush1.bf16.msra.mxu1 %v6637_v50  ;;  %6255 = vmatpush3.bf16.msra.mxu0 %v6640_v28  ;;  %v6661_v28 = vld [vmem:[%s9388_s3 + $0x480] ss:$12 sps:$4 sm:$0xff]   ;;  %v6666_v50 = vld [vmem:[%s9388_s3 + $0x49c] ss:$12 sps:$4 sm:$0xff]  }
 0x150   :  { %1978 = vmatprep.subr.bf16.mxu1 %v6643_v51  ;;  %6256 = vmatprep.subr.bf16.mxu0 %v6644_v53  ;;  %v6664_v51 = vld [vmem:[%s9388_s3 + $0x498] ss:$12 sps:$4 sm:$0xff]  }
 0x151   :  { %6266 = vmatprep.mubr.bf16.mxu0 %v7831_v30 }
 0x153   :  { %1979 = vmatpush1.bf16.msra.mxu1 %v6641_v57  ;;  %6257 = vmatpush3.bf16.msra.mxu0 %v6644_v53  ;;  %v6669_v53 = vld [vmem:[%s9388_s3 + $0x4b4] ss:$12 sps:$4 sm:$0xff]   ;;  %v6667_v57 = vld [vmem:[%s9388_s3 + $0x4b0] ss:$12 sps:$4 sm:$0xff]  }
 0x154   :  { %1980 = vmatprep.subr.bf16.mxu1 %v6647_v1  ;;  %6258 = vmatprep.subr.bf16.mxu0 %v6648_v60  ;;  %v6675_v1 = vld [vmem:[%s9388_s3 + $0x4e4] ss:$12 sps:$4 sm:$0xff]  }
 0x157   :  { %1981 = vmatpush1.bf16.msra.mxu1 %v6645_v4  ;;  %6259 = vmatpush3.bf16.msra.mxu0 %v6648_v60  ;;  %v6673_v60 = vld [vmem:[%s9388_s3 + $0x4e0] ss:$12 sps:$4 sm:$0xff]  }
 0x158   :  { %1982 = vmatprep.subr.bf16.mxu1 %v6651_v9  ;;  %6260 = vmatprep.subr.bf16.mxu0 %v6652_v10  ;;  %v6681_v4 = vld [vmem:[%s9388_s3 + $0x514] ss:$12 sps:$4 sm:$0xff]   ;;  %v6679_v9 = vld [vmem:[%s9388_s3 + $0x510] ss:$12 sps:$4 sm:$0xff]  }
 0x15b   :  { %1983 = vmatpush1.bf16.msra.mxu1 %v6649_v21  ;;  %6261 = vmatpush3.bf16.msra.mxu0 %v6652_v10  ;;  %v6684_v10 = vld [vmem:[%s9388_s3 + $0x52c] ss:$12 sps:$4 sm:$0xff]   ;;  %v6682_v21 = vld [vmem:[%s9388_s3 + $0x528] ss:$12 sps:$4 sm:$0xff]  }
 0x15c   :  { %1984 = vmatprep.subr.bf16.mxu1 %v6655_v27  ;;  %6262 = vmatprep.subr.bf16.mxu0 %v6656_v29  ;;  %v6687_v27 = vld [vmem:[%s9388_s3 + $0x544] ss:$12 sps:$4 sm:$0xff]  }
 0x15f   :  { %1985 = vmatpush1.bf16.msra.mxu1 %v6653_v34  ;;  %6263 = vmatpush3.bf16.msra.mxu0 %v6656_v29  ;;  %v6685_v29 = vld [vmem:[%s9388_s3 + $0x540] ss:$12 sps:$4 sm:$0xff]   ;;  %v6690_v34 = vld [vmem:[%s9388_s3 + $0x55c] ss:$12 sps:$4 sm:$0xff]  }
 0x160   :  { %1986 = vmatprep.subr.bf16.mxu1 %v6659_v16  ;;  %6264 = vmatprep.subr.bf16.mxu0 %v6660_v35  ;;  %v6688_v16 = vld [vmem:[%s9388_s3 + $0x558] ss:$12 sps:$4 sm:$0xff]  }
 0x163   :  { %1987 = vmatpush1.bf16.msra.mxu1 %v6657_v39  ;;  %6265 = vmatpush3.bf16.msra.mxu0 %v6660_v35  ;;  %v6693_v35 = vld [vmem:[%s9388_s3 + $0x574] ss:$12 sps:$4 sm:$0xff]   ;;  %v6691_v39 = vld [vmem:[%s9388_s3 + $0x570] ss:$12 sps:$4 sm:$0xff]  }
 0x164   :  { %2009 = vmatprep.subr.bf16.mxu1 %v6663_v40  ;;  %v6696_v40 = vld [vmem:[%s9388_s3 + $0x58c] ss:$12 sps:$4 sm:$0xff]  }
 0x166   :  { %1989 = vmatmul.mubr.bf16.vlgmr.msra.gmra.mrb[16].mxu1 %v7707_v24  ;;  %6267 = vmatmul.mubr.bf16.vlgmr.msra.gmra.mrb[52].mxu0 %v7819_v20  ;;  %v6672_v24 = vld [vmem:[%s9388_s3 + $0x4cc] ss:$12 sps:$4 sm:$0xff]  }
 0x167   :  { %2010 = vmatpush1.bf16.msra.mxu1 %v6661_v28  ;;  %1998 = vmatprep.mubr.bf16.mxu1 %v7775_v52  ;;  %v6670_v52 = vld [vmem:[%s9388_s3 + $0x4c8] ss:$12 sps:$4 sm:$0xff]  }
 0x168   :  { %2011 = vmatprep.subr.bf16.mxu1 %v6666_v50  ;;  %v6694_v28 = vld [vmem:[%s9388_s3 + $0x588] ss:$12 sps:$4 sm:$0xff]   ;;  %v6699_v50 = vld [vmem:[%s9388_s3 + $0x5a4] ss:$12 sps:$4 sm:$0xff]  }
 0x16b   :  { %2012 = vmatpush1.bf16.msra.mxu1 %v6664_v51  ;;  %v6697_v51 = vld [vmem:[%s9388_s3 + $0x5a0] ss:$12 sps:$4 sm:$0xff]  }
 0x16c   :  { %2013 = vmatprep.subr.bf16.mxu1 %v6669_v53  ;;  %v6702_v53 = vld [vmem:[%s9388_s3 + $0x5bc] ss:$12 sps:$4 sm:$0xff]  }
 0x16e   :  { %1999 = vmatmul.mubr.bf16.gmra.mrb[20].mxu1 %v7763_v47  ;;  %v6678_v47 = vld [vmem:[%s9388_s3 + $0x4fc] ss:$12 sps:$4 sm:$0xff]  }
 0x16f   :  { %2014 = vmatpush1.bf16.msra.mxu1 %v6667_v57  ;;  %2041 = vmatprep.mubr.bf16.mxu1 %v7757_v42  ;;  %v6676_v42 = vld [vmem:[%s9388_s3 + $0x4f8] ss:$12 sps:$4 sm:$0xff]  }
 0x170   :  { %2015 = vmatprep.subr.bf16.mxu1 %v6672_v24  ;;  %v6700_v57 = vld [vmem:[%s9388_s3 + $0x5b8] ss:$12 sps:$4 sm:$0xff]   ;;  %v6705_v24 = vld [vmem:[%s9388_s3 + $0x5d4] ss:$12 sps:$4 sm:$0xff]  }
 0x173   :  { %2016 = vmatpush1.bf16.msra.mxu1 %v6670_v52  ;;  %v6703_v52 = vld [vmem:[%s9388_s3 + $0x5d0] ss:$12 sps:$4 sm:$0xff]  }
 0x174   :  { %2017 = vmatprep.subr.bf16.mxu1 %v6675_v1  ;;  %v6708_v1 = vld [vmem:[%s9388_s3 + $0x5ec] ss:$12 sps:$4 sm:$0xff]  }
 0x177   :  { %2018 = vmatpush1.bf16.msra.mxu1 %v6673_v60  ;;  %v6706_v60 = vld [vmem:[%s9388_s3 + $0x5e8] ss:$12 sps:$4 sm:$0xff]  }
 0x178   :  { %2019 = vmatprep.subr.bf16.mxu1 %v6678_v47  ;;  %v6711_v47 = vld [vmem:[%s9388_s3 + $0x604] ss:$12 sps:$4 sm:$0xff]  }
 0x17b   :  { %2020 = vmatpush1.bf16.msra.mxu1 %v6676_v42  ;;  %v6709_v42 = vld [vmem:[%s9388_s3 + $0x600] ss:$12 sps:$4 sm:$0xff]  }
 0x17c   :  { %2021 = vmatprep.subr.bf16.mxu1 %v6681_v4  ;;  %v6714_v4 = vld [vmem:[%s9388_s3 + $0x61c] ss:$12 sps:$4 sm:$0xff]  }
 0x17f   :  { %2022 = vmatpush1.bf16.msra.mxu1 %v6679_v9  ;;  %v6712_v9 = vld [vmem:[%s9388_s3 + $0x618] ss:$12 sps:$4 sm:$0xff]  }
 0x180   :  { %2023 = vmatprep.subr.bf16.mxu1 %v6684_v10  ;;  %v6717_v10 = vld [vmem:[%s9388_s3 + $0x634] ss:$12 sps:$4 sm:$0xff]  }
 0x183   :  { %2024 = vmatpush1.bf16.msra.mxu1 %v6682_v21  ;;  %v6715_v21 = vld [vmem:[%s9388_s3 + $0x630] ss:$12 sps:$4 sm:$0xff]  }
 0x184   :  { %2025 = vmatprep.subr.bf16.mxu1 %v6687_v27  ;;  %v6723_v27 = vld [vmem:[%s9388_s3 + $0x664] ss:$12 sps:$4 sm:$0xff]  }
 0x187   :  { %2026 = vmatpush1.bf16.msra.mxu1 %v6685_v29  ;;  %v6721_v29 = vld [vmem:[%s9388_s3 + $0x660] ss:$12 sps:$4 sm:$0xff]  }
 0x188   :  { %2027 = vmatprep.subr.bf16.mxu1 %v6690_v34  ;;  %v6724_v34 = vld [vmem:[%s9388_s3 + $0x678] ss:$12 sps:$4 sm:$0xff]  }
 0x18b   :  { %2028 = vmatpush1.bf16.msra.mxu1 %v6688_v16  ;;  %v6729_v16 = vld [vmem:[%s9388_s3 + $0x694] ss:$12 sps:$4 sm:$0xff]  }
 0x18c   :  { %2029 = vmatprep.subr.bf16.mxu1 %v6693_v35 }
 0x18f   :  { %2030 = vmatpush1.bf16.msra.mxu1 %v6691_v39 }
 0x190   :  { %2031 = vmatprep.subr.bf16.mxu1 %v6696_v40 }
 0x193   :  { %2032 = vmatpush1.bf16.msra.mxu1 %v6694_v28 }
 0x194   :  { %2033 = vmatprep.subr.bf16.mxu1 %v6699_v50  ;;  %v6727_v50 = vld [vmem:[%s9388_s3 + $0x690] ss:$12 sps:$4 sm:$0xff]  }
 0x197   :  { %2034 = vmatpush1.bf16.msra.mxu1 %v6697_v51 }
 0x198   :  { %2035 = vmatprep.subr.bf16.mxu1 %v6702_v53  ;;  %v6732_v53 = vld [vmem:[%s9388_s3 + $0x6ac] ss:$12 sps:$4 sm:$0xff]  }
 0x19b   :  { %2036 = vmatpush1.bf16.msra.mxu1 %v6700_v57 }
 0x19c   :  { %2037 = vmatprep.subr.bf16.mxu1 %v6705_v24  ;;  %v6730_v24 = vld [vmem:[%s9388_s3 + $0x6a8] ss:$12 sps:$4 sm:$0xff]  }
 0x19f   :  { %2038 = vmatpush1.bf16.msra.mxu1 %v6703_v52 }
 0x1a0   :  { %2039 = vmatprep.subr.bf16.mxu1 %v6708_v1 }
 0x1a3   :  { %2040 = vmatpush1.bf16.msra.mxu1 %v6706_v60  ;;  %v6733_v60 = vld [vmem:[%s9389_s5 + $0x40] sm:$0xff]  }
 0x1a4   :  { %2062 = vmatprep.subr.bf16.mxu1 %v6711_v47  ;;  %6152 = vmatprep.subr.bf16.mxu0 %v6733_v60 }
 0x1a6   :  { %2042 = vmatmul.mubr.bf16.vlgmr.msra.gmra.mrb[16].mxu1 %v7743_v37  ;;  %v6720_v37 = vld [vmem:[%s9388_s3 + $0x64c] ss:$12 sps:$4 sm:$0xff]  }
 0x1a7   :  { %2063 = vmatpush1.bf16.msra.mxu1 %v6709_v42  ;;  %2051 = vmatprep.mubr.bf16.mxu1 %v7811_v14  ;;  %v6718_v14 = vld [vmem:[%s9388_s3 + $0x648] ss:$12 sps:$4 sm:$0xff]  }
 0x1a8   :  { %2064 = vmatprep.subr.bf16.mxu1 %v6714_v4  ;;  %v6734_v4 = vld [vmem:[%s9389_s5] sm:$0xff]  }
 0x1a9   :  { %6153 = vmatpush3.bf16.msra.mxu0 %v6734_v4 }
 0x1ab   :  { %2065 = vmatpush1.bf16.msra.mxu1 %v6712_v9 }
 0x1ac   :  { %2066 = vmatprep.subr.bf16.mxu1 %v6717_v10  ;;  %v6735_v10 = vld [vmem:[%s9389_s5 + $0x48] sm:$0xff]  }
 0x1ad   :  { %6154 = vmatprep.subr.bf16.mxu0 %v6735_v10 }
 0x1ae   :  { %2052 = vmatmul.mubr.bf16.gmra.mrb[20].mxu1 %v7797_v6  ;;  %v6726_v6 = vld [vmem:[%s9388_s3 + $0x67c] ss:$12 sps:$4 sm:$0xff]  }
 0x1af   :  { %2067 = vmatpush1.bf16.msra.mxu1 %v6715_v21  ;;  %2094 = vmatprep.mubr.bf16.mxu1 %v9398_v3  ;;  %v683_v21 = vlaneseq }
 0x1b0   :  { %2068 = vmatprep.subr.bf16.mxu1 %v6720_v37 }
 0x1b3   :  { %2069 = vmatpush1.bf16.msra.mxu1 %v6718_v14  ;;  %v6736_v14 = vld [vmem:[%s9389_s5 + $0x8] sm:$0xff]  }
 0x1b4   :  { %2070 = vmatprep.subr.bf16.mxu1 %v6723_v27  ;;  %v6737_v27 = vld [vmem:[%s9389_s5 + $0x50] sm:$0xff]   ;;  %6155 = vmatpush3.bf16.msra.mxu0 %v6736_v14 }
 0x1b5   :  { %6156 = vmatprep.subr.bf16.mxu0 %v6737_v27 }
 0x1b7   :  { %2071 = vmatpush1.bf16.msra.mxu1 %v6721_v29  ;;  %v8271_v29 = vshrl.u32 %v683_v21, 7 }
 0x1b8   :  { %2072 = vmatprep.subr.bf16.mxu1 %v6726_v6  ;;  %v6738_v6 = vld [vmem:[%s9389_s5 + $0x10] sm:$0xff]  }
 0x1b9   :  { %v6046_v35 = vpop.f32.mrb[20].mxu0  ;;  %6157 = vmatpush3.bf16.msra.mxu0 %v6738_v6 }
 0x1ba   :  { %v6047_v39 = vpop.f32.mrb[21].mxu0 }
 0x1bb   :  { %2073 = vmatpush1.bf16.msra.mxu1 %v6724_v34  ;;  %v6048_v40 = vadd.f32 %v6047_v39, %v6046_v35  ;;  %v6049_v28 = vpop.f32.mrb[22].mxu0  ;;  %v6739_v34 = vld [vmem:[%s9389_s5 + $0x58] sm:$0xff]   ;;  %v6741_v35 = vld [vmem:[%s9389_s5 + $0x60] sm:$0xff]  }
 0x1bc   :  { %v6050_v51 = vpop.f32.mrb[23].mxu0  ;;  %2074 = vmatprep.subr.bf16.mxu1 %v6729_v16  ;;  %v8283_v16 = vsub.s32 2, %v8271_v29  ;;  %6158 = vmatprep.subr.bf16.mxu0 %v6739_v34  ;;  %v6742_v39 = vld [vmem:[%s9389_s5 + $0x20] sm:$0xff]  }
 0x1bd   :  { %v6051_v57 = vadd.f32 %v6050_v51, %v6049_v28  ;;  %v6743_v28 = vld [vmem:[%s9389_s5 + $0x68] sm:$0xff]  }
 0x1bf   :  { %2075 = vmatpush1.bf16.msra.mxu1 %v6727_v50  ;;  %v8298_v50 = vld [vmem:[%s9390_s4] sm:$0x7] }
 0x1c0   :  { %2076 = vmatprep.subr.bf16.mxu1 %v6732_v53  ;;  %v694_v51 = vrot.slane %v8298_v50, %v8283_v16 }
 0x1c1   :  { %v6052_v52 = vpop.f32.mrb[24].mxu0 }
 0x1c2   :  { %v6053_v1 = vpop.f32.mrb[25].mxu0  ;;  %v2153_v4 = vadd.f32 %v6051_v57, %v694_v51 }
 0x1c3   :  { %2077 = vmatpush1.bf16.msra.mxu1 %v6730_v24  ;;  %v6054_v47 = vadd.f32 %v6053_v1, %v6052_v52  ;;  %v6055_v42 = vpop.f32.mrb[26].mxu0  ;;  %v2150_v52 = vadd.f32 %v6048_v40, %v694_v51 }
 0x1c4   :  { %v6056_v9 = vpop.f32.mrb[27].mxu0 }
 0x1c5   :  { %v6057_v37 = vadd.f32 %v6056_v9, %v6055_v42  ;;  %v2158_v14 = vadd.f32 %v6054_v47, %v694_v51 }
 0x1c6   :  { %2095 = vmatmul.mubr.bf16.vlgmr.msra.gmra.mrb[16].mxu1 %v7831_v30  ;;  %v6740_v30 = vld [vmem:[%s9389_s5 + $0x18] sm:$0xff]  }
 0x1c7   :  { %2104 = vmatprep.mubr.bf16.mxu1 %v9398_v3  ;;  %6159 = vmatpush3.bf16.msra.mxu0 %v6740_v30  ;;  %v2161_v34 = vadd.f32 %v6057_v37, %v694_v51 }
 0x1c8   :  { %6160 = vmatprep.subr.bf16.mxu0 %v6741_v35 }
 0x1cb   :  { %6161 = vmatpush3.bf16.msra.mxu0 %v6742_v39 }
 0x1cc   :  { %6162 = vmatprep.subr.bf16.mxu0 %v6743_v28 }
 0x1ce   :  { %2105 = vmatmul.mubr.bf16.gmra.mrb[20].mxu1 %v7819_v20  ;;  %v6744_v20 = vld [vmem:[%s9389_s5 + $0x28] sm:$0xff]  }
 0x1cf   :  { %6163 = vmatpush3.bf16.msra.mxu0 %v6744_v20 }
 0x1d9   :  { %v6074_v53 = vpop.f32.mrb[28].mxu0 }
 0x1da   :  { %v6075_v24 = vpop.f32.mrb[29].mxu0 }
 0x1db   :  { %v6076_v1 = vadd.f32 %v6075_v24, %v6074_v53  ;;  %v6077_v60 = vpop.f32.mrb[30].mxu0 }
 0x1dc   :  { %v6078_v42 = vpop.f32.mrb[31].mxu0 }
 0x1dd   :  { %v2199_v9 = vadd.f32 %v6076_v1, %v2150_v52  ;;  %v6079_v10 = vadd.f32 %v6078_v42, %v6077_v60 }
 0x1df   :  { %v2202_v21 = vadd.f32 %v6079_v10, %v2153_v4 }
 0x1e1   :  { %v6080_v27 = vpop.f32.mrb[32].mxu0 }
 0x1e2   :  { %v6081_v6 = vpop.f32.mrb[33].mxu0 }
 0x1e3   :  { %v6082_v30 = vadd.f32 %v6081_v6, %v6080_v27  ;;  %v6083_v35 = vpop.f32.mrb[34].mxu0 }
 0x1e4   :  { %v6084_v39 = vpop.f32.mrb[35].mxu0 }
 0x1e5   :  { %v2207_v28 = vadd.f32 %v6082_v30, %v2158_v14  ;;  %v6085_v3 = vadd.f32 %v6084_v39, %v6083_v35  ;;  %v6748_v35 = vld [vmem:[%s9389_s5 + $0x38] sm:$0xff]  }
 0x1e7   :  { %v2210_v19 = vadd.f32 %v6085_v3, %v2161_v34  ;;  %v6745_v3 = vld [vmem:[%s9389_s5 + $0x70] sm:$0xff]  }
 0x1e8   :  { %6164 = vmatprep.subr.bf16.mxu0 %v6745_v3 }
 0x1f9   :  { %v6102_v20 = vpop.f32.mrb[36].mxu0 }
 0x1fa   :  { %v6103_v8 = vpop.f32.mrb[37].mxu0 }
 0x1fb   :  { %v6104_v40 = vadd.f32 %v6103_v8, %v6102_v20  ;;  %v6105_v53 = vpop.f32.mrb[38].mxu0  ;;  %v6746_v8 = vld [vmem:[%s9389_s5 + $0x30] sm:$0xff]   ;;  %v6749_v20 = vld [vmem:[%s9389_s5 + $0x80] sm:$0xff]  }
 0x1fc   :  { %v6106_v24 = vpop.f32.mrb[39].mxu0  ;;  %6165 = vmatpush3.bf16.msra.mxu0 %v6746_v8 }
 0x1fd   :  { %v2248_v26 = vadd.f32 %v6104_v40, %v2199_v9  ;;  %v6107_v57 = vadd.f32 %v6106_v24, %v6105_v53 }
 0x1ff   :  { %v2251_v52 = vadd.f32 %v6107_v57, %v2202_v21 }
 0x201   :  { %v6108_v1 = vpop.f32.mrb[40].mxu0 }
 0x202   :  { %v6109_v60 = vpop.f32.mrb[41].mxu0 }
 0x203   :  { %v6110_v47 = vadd.f32 %v6109_v60, %v6108_v1  ;;  %v6111_v42 = vpop.f32.mrb[42].mxu0 }
 0x204   :  { %v6112_v4 = vpop.f32.mrb[43].mxu0 }
 0x205   :  { %v2256_v37 = vadd.f32 %v6110_v47, %v2207_v28  ;;  %v6113_v51 = vadd.f32 %v6112_v4, %v6111_v42 }
 0x207   :  { %v2259_v10 = vadd.f32 %v6113_v51, %v2210_v19  ;;  %v6747_v19 = vld [vmem:[%s9389_s5 + $0x78] sm:$0xff]  }
 0x208   :  { %6166 = vmatprep.subr.bf16.mxu0 %v6747_v19 }
 0x209   :  { %6167 = vmatpush3.bf16.msra.mxu0 %v6748_v35  ;;  %v8321_v35 = vsub.s32 0, %v8271_v29 }
 0x20a   :  { %6270 = vmatprep.subr.bf16.mxu0 %v6749_v20 }
 0x219   :  { %v6130_v27 = vpop.f32.mrb[44].mxu0 }
 0x21a   :  { %v6131_v14 = vpop.f32.mrb[45].mxu0 }
 0x21b   :  { %v6132_v9 = vadd.f32 %v6131_v14, %v6130_v27  ;;  %v6133_v21 = vpop.f32.mrb[46].mxu0 }
 0x21c   :  { %v6134_v6 = vpop.f32.mrb[47].mxu0 }
 0x21d   :  { %v6135_v34 = vadd.f32 %v6134_v6, %v6133_v21  ;;  %v2297_v30 = vadd.f32 %v6132_v9, %v2248_v26 }
 0x21f   :  { %v2300_v39 = vadd.f32 %v6135_v34, %v2251_v52 }
 0x221   :  { %v6136_v28 = vpop.f32.mrb[48].mxu0 }
 0x222   :  { %v6137_v40 = vpop.f32.mrb[49].mxu0 }
 0x223   :  { %v6138_v53 = vadd.f32 %v6137_v40, %v6136_v28  ;;  %v6139_v24 = vpop.f32.mrb[50].mxu0 }
 0x224   :  { %v6140_v26 = vpop.f32.mrb[51].mxu0 }
 0x225   :  { %v6141_v57 = vadd.f32 %v6140_v26, %v6139_v24  ;;  %v2305_v1 = vadd.f32 %v6138_v53, %v2256_v37  ;;  %v8324_v37 = vsub.s32 1, %v8271_v29 }
 0x227   :  { %v2308_v60 = vadd.f32 %v6141_v57, %v2259_v10  ;;  %v686_v10 = vrot.slane %v8298_v50, %v8321_v35 }
 0x239   :  { %v6268_v47 = vpop.f32.mrb[52].mxu0 }
 0x23a   :  { %v2354_v42 = vadd.f32 %v6268_v47, %v2305_v1  ;;  %v2345_v4 = vpop.f32.mrb[53].mxu0 }
 0x23b   :  { %v2346_v51 = vadd.f32 %v2345_v4, %v2297_v30  ;;  %v6269_v52 = vpop.f32.mrb[54].mxu0  ;;  %v690_v30 = vrot.slane %v8298_v50, %v8324_v37  ;;  %v6750_v50 = vld [vmem:[%s9389_s5 + $0x88] sm:$0xff]  }
 0x23c   :  { %v2357_v27 = vadd.f32 %v6269_v52, %v2308_v60  ;;  %v2348_v3 = vpop.f32.mrb[55].mxu0  ;;  %v2368_v8 = vmax.f32 %v2354_v42, 0.0 }
 0x23d   :  { %v2349_v14 = vadd.f32 %v2348_v3, %v2300_v39  ;;  %v2362_v21 = vmax.f32 %v2346_v51, 0.0 }
 0x23e   :  { %v2371_v9 = vmax.f32 %v2357_v27, 0.0 }
 0x23f   :  { %v2365_v6 = vmax.f32 %v2349_v14, 0.0 }
 0x240   :  { %v2377_v34 = vpack.c.bf16 %v2371_v9, %v2368_v8 }
 0x241   :  { %v2374_v19 = vpack.c.bf16 %v2365_v6, %v2362_v21 }
 0x299   :  { %v2096_v28 = vpop.f32.mrb[16].mxu1 }
 0x29a   :  { %v6338_v39 = vadd.f32 %v2096_v28, %v686_v10  ;;  %v2098_v40 = vpop.f32.mrb[17].mxu1 }
 0x29b   :  { %v6339_v53 = vadd.f32 %v2098_v40, %v690_v30  ;;  %v2100_v24 = vpop.f32.mrb[18].mxu1 }
 0x29c   :  { %v6340_v26 = vadd.f32 %v2100_v24, %v686_v10  ;;  %v2102_v57 = vpop.f32.mrb[19].mxu1  ;;  %v2360_v60 = vmax.f32 %v6338_v39, 0.0 }
 0x29d   :  { %v6341_v1 = vadd.f32 %v2102_v57, %v690_v30  ;;  %v2361_v42 = vmax.f32 %v6339_v53, 0.0  ;;  %v6751_v53 = vld [vmem:[%s9389_s5 + $0x90] sm:$0xff]  }
 0x29e   :  { %v2363_v47 = vmax.f32 %v6340_v26, 0.0 }
 0x29f   :  { %v2364_v4 = vmax.f32 %v6341_v1, 0.0 }
 0x2a0   :  { %v2372_v51 = vpack.c.bf16 %v2363_v47, %v2360_v60  ;;  %v6755_v60 = vld [vmem:[%s9389_s5 + $0xb0] sm:$0xff]   ;;  %v9406_v47 = vmov 0  }
 0x2a1   :  { %v2373_v52 = vpack.c.bf16 %v2364_v4, %v2361_v42  ;;  %v2106_v27 = vpop.f32.mrb[20].mxu1  ;;  %v6759_v42 = vld [vmem:[%s9391_s7 + $0x4] ss:$12 sps:$4 sm:$0xff]   ;;  %v6757_v4 = vld [vmem:[%s9391_s7] ss:$12 sps:$4 sm:$0xff]  }
 0x2a2   :  { %v6342_v3 = vadd.f32 %v2106_v27, %v686_v10  ;;  %v2108_v14 = vpop.f32.mrb[21].mxu1  ;;  %v6763_v27 = vld [vmem:[%s9391_s7 + $0x30] ss:$12 sps:$4 sm:$0xff]  }
 0x2a3   :  { %v6343_v8 = vadd.f32 %v2108_v14, %v690_v30  ;;  %v2110_v9 = vpop.f32.mrb[22].mxu1  ;;  %2609 = vmatprep.mubr.bf16.mxu0 %v2373_v52  ;;  %v6765_v52 = vld [vmem:[%s9391_s7 + $0x34] ss:$12 sps:$4 sm:$0xff]  }
 0x2a4   :  { %v6344_v21 = vadd.f32 %v2110_v9, %v686_v10  ;;  %v2112_v6 = vpop.f32.mrb[23].mxu1  ;;  %2610 = vmatmul.mubr.bf16.vlgmr.msra.gmra.mrb[56].mxu0 %v2372_v51  ;;  %v2366_v39 = vmax.f32 %v6342_v3, 0.0  ;;  %v6752_v10 = vld [vmem:[%s9389_s5 + $0x98] sm:$0xff]   ;;  %v6766_v14 = vld [vmem:[%s9391_s7 + $0x48] ss:$12 sps:$4 sm:$0xff]  }
 0x2a5   :  { %v6345_v28 = vadd.f32 %v2112_v6, %v690_v30  ;;  %6271 = vmatpush3.bf16.msra.mxu0 %v6749_v20  ;;  %v2367_v24 = vmax.f32 %v6343_v8, 0.0  ;;  %v6753_v20 = vld [vmem:[%s9389_s5 + $0xa0] sm:$0xff]   ;;  %v6754_v30 = vld [vmem:[%s9389_s5 + $0xa8] sm:$0xff]  }
 0x2a6   :  { %v2369_v40 = vmax.f32 %v6344_v21, 0.0  ;;  %6272 = vmatprep.subr.bf16.mxu0 %v6750_v50  ;;  %v6762_v51 = vld [vmem:[%s9391_s7 + $0x1c] ss:$12 sps:$4 sm:$0xff]   ;;  %v6768_v3 = vld [vmem:[%s9391_s7 + $0x4c] ss:$12 sps:$4 sm:$0xff]  }
 0x2a7   :  { %v2370_v26 = vmax.f32 %v6345_v28, 0.0  ;;  %v6769_v8 = vld [vmem:[%s9391_s7 + $0x60] ss:$12 sps:$4 sm:$0xff]   ;;  %v6774_v9 = vld [vmem:[%s9391_s7 + $0x7c] ss:$12 sps:$4 sm:$0xff]  }
 0x2a8   :  { %v2375_v57 = vpack.c.bf16 %v2369_v40, %v2366_v39  ;;  %v6772_v21 = vld [vmem:[%s9391_s7 + $0x78] ss:$12 sps:$4 sm:$0xff]   ;;  %v6777_v6 = vld [vmem:[%s9391_s7 + $0x94] ss:$12 sps:$4 sm:$0xff]   ;;  %v6775_v28 = vld [vmem:[%s9391_s7 + $0x90] ss:$12 sps:$4 sm:$0xff]  }
 0x2a9   :  { %v2376_v1 = vpack.c.bf16 %v2370_v26, %v2367_v24  ;;  %6273 = vmatpush3.bf16.msra.mxu0 %v6750_v50  ;;  %v6771_v50 = vld [vmem:[%s9391_s7 + $0x64] ss:$12 sps:$4 sm:$0xff]   ;;  %v6780_v39 = vld [vmem:[%s9391_s7 + $0xac] ss:$12 sps:$4 sm:$0xff]   ;;  %v6778_v40 = vld [vmem:[%s9391_s7 + $0xa8] ss:$12 sps:$4 sm:$0xff]  }
 0x2aa   :  { %6274 = vmatprep.subr.bf16.mxu0 %v6751_v53  ;;  %v6789_v24 = vld [vmem:[%s9392_s9] ss:$36 sps:$4 sm:$0xff]  }
 0x2ab   :  { %2617 = vmatprep.mubr.bf16.mxu0 %v2376_v1  ;;  %v6791_v26 = vld [vmem:[%s9392_s9 + $0x4] ss:$36 sps:$4 sm:$0xff]  }
 0x2ac   :  { %2618 = vmatmul.mubr.bf16.gmra.mrb[60].mxu0 %v2375_v57  ;;  %4371 = vmatprep.subr.bf16.mxu1 %v6791_v26  ;;  %v6797_v57 = vld [vmem:[%s9392_s9 + $0x4c] ss:$36 sps:$4 sm:$0xff]  }
 0x2ad   :  { %6275 = vmatpush3.bf16.msra.mxu0 %v6751_v53  ;;  %6286 = vmatprep.mubr.bf16.mxu0 %v2374_v19  ;;  %v6756_v19 = vld [vmem:[%s9389_s5 + $0xb8] sm:$0xff]   ;;  %v8403_v53 = vld [vmem:[%s9391_s7 + $0x8] ss:$12 sps:$4 sm:$0xff]   ;;  %v6869_v26 = vld [vmem:[%s9392_s9 + $0x3ac] ss:$36 sps:$4 sm:$0xff]  }
 0x2ae   :  { %6276 = vmatprep.subr.bf16.mxu0 %v6752_v10  ;;  %4372 = vmatpush1.bf16.msra.mxu1 %v6789_v24  ;;  %v6795_v1 = vld [vmem:[%s9392_s9 + $0x48] ss:$36 sps:$4 sm:$0xff]   ;;  %v6861_v24 = vld [vmem:[%s9392_s9 + $0x360] ss:$36 sps:$4 sm:$0xff]  }
 0x2af   :  { %4373 = vmatprep.subr.bf16.mxu1 %v6797_v57  ;;  %v6867_v57 = vld [vmem:[%s9392_s9 + $0x3a8] ss:$36 sps:$4 sm:$0xff]  }
 0x2b1   :  { %6277 = vmatpush3.bf16.msra.mxu0 %v6752_v10  ;;  %v6803_v10 = vld [vmem:[%s9392_s9 + $0x94] ss:$36 sps:$4 sm:$0xff]  }
 0x2b2   :  { %6278 = vmatprep.subr.bf16.mxu0 %v6753_v20  ;;  %4374 = vmatpush1.bf16.msra.mxu1 %v6795_v1 }
 0x2b3   :  { %4375 = vmatprep.subr.bf16.mxu1 %v6803_v10 }
 0x2b5   :  { %6279 = vmatpush3.bf16.msra.mxu0 %v6753_v20  ;;  %v6801_v20 = vld [vmem:[%s9392_s9 + $0x90] ss:$36 sps:$4 sm:$0xff]  }
 0x2b6   :  { %6280 = vmatprep.subr.bf16.mxu0 %v6754_v30  ;;  %4376 = vmatpush1.bf16.msra.mxu1 %v6801_v20 }
 0x2b9   :  { %6281 = vmatpush3.bf16.msra.mxu0 %v6754_v30  ;;  %v6809_v30 = vld [vmem:[%s9392_s9 + $0xdc] ss:$36 sps:$4 sm:$0xff]  }
 0x2ba   :  { %6282 = vmatprep.subr.bf16.mxu0 %v6755_v60  ;;  %4377 = vmatprep.subr.bf16.mxu1 %v6809_v30 }
 0x2bd   :  { %6283 = vmatpush3.bf16.msra.mxu0 %v6755_v60  ;;  %v6807_v60 = vld [vmem:[%s9392_s9 + $0xd8] ss:$36 sps:$4 sm:$0xff]  }
 0x2be   :  { %6284 = vmatprep.subr.bf16.mxu0 %v6756_v19  ;;  %4378 = vmatpush1.bf16.msra.mxu1 %v6807_v60 }
 0x2c1   :  { %6285 = vmatpush3.bf16.msra.mxu0 %v6756_v19  ;;  %v6815_v19 = vld [vmem:[%s9392_s9 + $0x124] ss:$36 sps:$4 sm:$0xff]  }
 0x2c2   :  { %2858 = vmatprep.subr.bf16.mxu0 %v6759_v42  ;;  %v6813_v42 = vld [vmem:[%s9392_s9 + $0x120] ss:$36 sps:$4 sm:$0xff]   ;;  %4379 = vmatprep.subr.bf16.mxu1 %v6815_v19 }
 0x2c3   :  { %4380 = vmatpush1.bf16.msra.mxu1 %v6813_v42 }
 0x2c4   :  { %6287 = vmatmul.mubr.bf16.vlgmr.msra.gmra.mrb[64].mxu0 %v2377_v34  ;;  %v6760_v34 = vld [vmem:[%s9391_s7 + $0x18] ss:$12 sps:$4 sm:$0xff]  }
 0x2c5   :  { %2890 = vmatprep.mubr.bf16.mxu0 %v9406_v47  ;;  %2859 = vmatpush1.bf16.msra.mxu0 %v6757_v4  ;;  %v6821_v4 = vld [vmem:[%s9392_s9 + $0x16c] ss:$36 sps:$4 sm:$0xff]  }
 0x2c6   :  { %2860 = vmatprep.subr.bf16.mxu0 %v6762_v51  ;;  %v6819_v51 = vld [vmem:[%s9392_s9 + $0x168] ss:$36 sps:$4 sm:$0xff]   ;;  %4381 = vmatprep.subr.bf16.mxu1 %v6821_v4 }
 0x2c7   :  { %4382 = vmatpush1.bf16.msra.mxu1 %v6819_v51 }
 0x2c9   :  { %2861 = vmatpush1.bf16.msra.mxu0 %v6760_v34  ;;  %v6827_v34 = vld [vmem:[%s9392_s9 + $0x1b4] ss:$36 sps:$4 sm:$0xff]  }
 0x2ca   :  { %2862 = vmatprep.subr.bf16.mxu0 %v6765_v52  ;;  %v6825_v52 = vld [vmem:[%s9392_s9 + $0x1b0] ss:$36 sps:$4 sm:$0xff]   ;;  %4383 = vmatprep.subr.bf16.mxu1 %v6827_v34 }
 0x2cb   :  { %4384 = vmatpush1.bf16.msra.mxu1 %v6825_v52 }
 0x2cd   :  { %2863 = vmatpush1.bf16.msra.mxu0 %v6763_v27  ;;  %v6833_v27 = vld [vmem:[%s9392_s9 + $0x1fc] ss:$36 sps:$4 sm:$0xff]  }
 0x2ce   :  { %2864 = vmatprep.subr.bf16.mxu0 %v6768_v3  ;;  %v6831_v3 = vld [vmem:[%s9392_s9 + $0x1f8] ss:$36 sps:$4 sm:$0xff]   ;;  %4385 = vmatprep.subr.bf16.mxu1 %v6833_v27 }
 0x2cf   :  { %4386 = vmatpush1.bf16.msra.mxu1 %v6831_v3  ;;  %v5712_v3 = vld [vmem:[%s9393_s6] ss:$0 sm:$0xff] }
 0x2d1   :  { %2865 = vmatpush1.bf16.msra.mxu0 %v6766_v14  ;;  %v6839_v14 = vld [vmem:[%s9392_s9 + $0x244] ss:$36 sps:$4 sm:$0xff]  }
 0x2d2   :  { %2866 = vmatprep.subr.bf16.mxu0 %v6771_v50  ;;  %v6837_v50 = vld [vmem:[%s9392_s9 + $0x240] ss:$36 sps:$4 sm:$0xff]   ;;  %4387 = vmatprep.subr.bf16.mxu1 %v6839_v14 }
 0x2d3   :  { %4388 = vmatpush1.bf16.msra.mxu1 %v6837_v50 }
 0x2d5   :  { %2867 = vmatpush1.bf16.msra.mxu0 %v6769_v8  ;;  %v6845_v8 = vld [vmem:[%s9392_s9 + $0x28c] ss:$36 sps:$4 sm:$0xff]  }
 0x2d6   :  { %2868 = vmatprep.subr.bf16.mxu0 %v6774_v9  ;;  %v6843_v9 = vld [vmem:[%s9392_s9 + $0x288] ss:$36 sps:$4 sm:$0xff]   ;;  %4389 = vmatprep.subr.bf16.mxu1 %v6845_v8 }
 0x2d7   :  { %4390 = vmatpush1.bf16.msra.mxu1 %v6843_v9 }
 0x2d9   :  { %2869 = vmatpush1.bf16.msra.mxu0 %v6772_v21  ;;  %v6851_v21 = vld [vmem:[%s9392_s9 + $0x2d4] ss:$36 sps:$4 sm:$0xff]  }
 0x2da   :  { %2870 = vmatprep.subr.bf16.mxu0 %v6777_v6  ;;  %v6849_v6 = vld [vmem:[%s9392_s9 + $0x2d0] ss:$36 sps:$4 sm:$0xff]   ;;  %4391 = vmatprep.subr.bf16.mxu1 %v6851_v21 }
 0x2db   :  { %4392 = vmatpush1.bf16.msra.mxu1 %v6849_v6 }
 0x2dd   :  { %2871 = vmatpush1.bf16.msra.mxu0 %v6775_v28  ;;  %v6857_v28 = vld [vmem:[%s9392_s9 + $0x31c] ss:$36 sps:$4 sm:$0xff]  }
 0x2de   :  { %2872 = vmatprep.subr.bf16.mxu0 %v6780_v39  ;;  %v6855_v39 = vld [vmem:[%s9392_s9 + $0x318] ss:$36 sps:$4 sm:$0xff]   ;;  %4393 = vmatprep.subr.bf16.mxu1 %v6857_v28 }
 0x2df   :  { %4394 = vmatpush1.bf16.msra.mxu1 %v6855_v39 }
 0x2e1   :  { %2873 = vmatpush1.bf16.msra.mxu0 %v6778_v40  ;;  %v6863_v40 = vld [vmem:[%s9392_s9 + $0x364] ss:$36 sps:$4 sm:$0xff]  }
 0x2e2   :  { %6290 = vmatprep.subr.bf16.mxu0 %v8403_v53  ;;  %4395 = vmatprep.subr.bf16.mxu1 %v6863_v40 }
 0x2e3   :  { %4396 = vmatpush1.bf16.msra.mxu1 %v6861_v24 }
 0x2e4   :  { %4397 = vmatprep.subr.bf16.mxu1 %v6869_v26 }
 0x2e7   :  { %4398 = vmatpush1.bf16.msra.mxu1 %v6867_v57 }
 0x377   :  { %v6168_v1 = vpop.f32.mrb[56].mxu0 }
 0x378   :  { %v6169_v10 = vpop.f32.mrb[57].mxu0 }
 0x379   :  { %v6170_v20 = vadd.f32 %v6169_v10, %v6168_v1  ;;  %v6171_v30 = vpop.f32.mrb[58].mxu0 }
 0x37a   :  { %v6172_v60 = vpop.f32.mrb[59].mxu0 }
 0x37b   :  { %v6173_v19 = vadd.f32 %v6172_v60, %v6171_v30  ;;  %v2612_v8 = vadd.f32 %v6170_v20, %v5712_v3  ;;  %v6783_v20 = vld [vmem:[%s9391_s7 + $0x38] ss:$12 sps:$4 sm:$0xff]  }
 0x37d   :  { %v2615_v40 = vadd.f32 %v6173_v19, %v5712_v3  ;;  %v6784_v19 = vld [vmem:[%s9391_s7 + $0x50] ss:$12 sps:$4 sm:$0xff]  }
 0x37f   :  { %v6174_v42 = vpop.f32.mrb[60].mxu0 }
 0x380   :  { %v6175_v4 = vpop.f32.mrb[61].mxu0 }
 0x381   :  { %v6176_v51 = vadd.f32 %v6175_v4, %v6174_v42  ;;  %v6177_v34 = vpop.f32.mrb[62].mxu0  ;;  %v6782_v42 = vld [vmem:[%s9391_s7 + $0x20] ss:$12 sps:$4 sm:$0xff]  }
 0x382   :  { %v6178_v52 = vpop.f32.mrb[63].mxu0 }
 0x383   :  { %v6179_v27 = vadd.f32 %v6178_v52, %v6177_v34  ;;  %v2620_v14 = vadd.f32 %v6176_v51, %v5712_v3  ;;  %v6785_v34 = vld [vmem:[%s9391_s7 + $0x68] ss:$12 sps:$4 sm:$0xff]   ;;  %v6787_v52 = vld [vmem:[%s9391_s7 + $0x98] ss:$12 sps:$4 sm:$0xff]  }
 0x385   :  { %v2623_v6 = vadd.f32 %v6179_v27, %v5712_v3  ;;  %v6788_v27 = vld [vmem:[%s9391_s7 + $0xb0] ss:$12 sps:$4 sm:$0xff]  }
 0x386   :  { %v6794_v3 = vld [vmem:[%s9392_s9 + $0xc] ss:$36 sps:$4 sm:$0xff]  }
 0x397   :  { %v6288_v50 = vpop.f32.mrb[64].mxu0 }
 0x398   :  { %v2669_v9 = vadd.f32 %v6288_v50, %v2620_v14  ;;  %v2660_v21 = vpop.f32.mrb[65].mxu0  ;;  %v6792_v14 = vld [vmem:[%s9392_s9 + $0x8] ss:$36 sps:$4 sm:$0xff]   ;;  %v6800_v50 = vld [vmem:[%s9392_s9 + $0x54] ss:$36 sps:$4 sm:$0xff]  }
 0x399   :  { %v2661_v28 = vadd.f32 %v2660_v21, %v2612_v8  ;;  %v6289_v39 = vpop.f32.mrb[66].mxu0  ;;  %v6798_v8 = vld [vmem:[%s9392_s9 + $0x50] ss:$36 sps:$4 sm:$0xff]   ;;  %v6804_v21 = vld [vmem:[%s9392_s9 + $0x98] ss:$36 sps:$4 sm:$0xff]  }
 0x39a   :  { %v2672_v24 = vadd.f32 %v6289_v39, %v2623_v6  ;;  %v2663_v26 = vpop.f32.mrb[67].mxu0  ;;  %v2677_v1 = vmax.f32 %v2669_v9, 0.0  ;;  %v6806_v9 = vld [vmem:[%s9392_s9 + $0x9c] ss:$36 sps:$4 sm:$0xff]   ;;  %v6812_v6 = vld [vmem:[%s9392_s9 + $0xe4] ss:$36 sps:$4 sm:$0xff]  }
 0x39b   :  { %v2664_v57 = vadd.f32 %v2663_v26, %v2615_v40  ;;  %v2675_v30 = vmax.f32 %v2661_v28, 0.0  ;;  %v6810_v28 = vld [vmem:[%s9392_s9 + $0xe0] ss:$36 sps:$4 sm:$0xff]   ;;  %v6818_v39 = vld [vmem:[%s9392_s9 + $0x12c] ss:$36 sps:$4 sm:$0xff]  }
 0x39c   :  { %v2678_v10 = vmax.f32 %v2672_v24, 0.0  ;;  %v6816_v40 = vld [vmem:[%s9392_s9 + $0x128] ss:$36 sps:$4 sm:$0xff]   ;;  %v6824_v24 = vld [vmem:[%s9392_s9 + $0x174] ss:$36 sps:$4 sm:$0xff]  }
 0x39d   :  { %v2676_v60 = vmax.f32 %v2664_v57, 0.0  ;;  %v6822_v26 = vld [vmem:[%s9392_s9 + $0x170] ss:$36 sps:$4 sm:$0xff]   ;;  %v6830_v57 = vld [vmem:[%s9392_s9 + $0x1bc] ss:$36 sps:$4 sm:$0xff]  }
 0x39e   :  { %v2680_v4 = vpack.c.bf16 %v2678_v10, %v2677_v1  ;;  %v6828_v1 = vld [vmem:[%s9392_s9 + $0x1b8] ss:$36 sps:$4 sm:$0xff]   ;;  %v6836_v10 = vld [vmem:[%s9392_s9 + $0x204] ss:$36 sps:$4 sm:$0xff]  }
 0x39f   :  { %v2679_v51 = vpack.c.bf16 %v2676_v60, %v2675_v30  ;;  %v6834_v30 = vld [vmem:[%s9392_s9 + $0x200] ss:$36 sps:$4 sm:$0xff]   ;;  %v6842_v60 = vld [vmem:[%s9392_s9 + $0x24c] ss:$36 sps:$4 sm:$0xff]  }
 0x3a1   :  { %2891 = vmatmul.mubr.bf16.vlgmr.msra.gmra.mrb[68].mxu0 %v2679_v51 }
 0x3a2   :  { %6291 = vmatpush3.bf16.msra.mxu0 %v8403_v53  ;;  %2900 = vmatprep.mubr.bf16.mxu0 %v9406_v47  ;;  %v6786_v53 = vld [vmem:[%s9391_s7 + $0x80] ss:$12 sps:$4 sm:$0xff]  }
 0x3a3   :  { %6292 = vmatprep.subr.bf16.mxu0 %v6782_v42 }
 0x3a6   :  { %6293 = vmatpush3.bf16.msra.mxu0 %v6782_v42  ;;  %v6840_v42 = vld [vmem:[%s9392_s9 + $0x248] ss:$36 sps:$4 sm:$0xff]  }
 0x3a7   :  { %6294 = vmatprep.subr.bf16.mxu0 %v6783_v20 }
 0x3a9   :  { %2901 = vmatmul.mubr.bf16.gmra.mrb[72].mxu0 %v2680_v4 }
 0x3aa   :  { %6295 = vmatpush3.bf16.msra.mxu0 %v6783_v20  ;;  %6306 = vmatprep.mubr.bf16.mxu0 %v2679_v51  ;;  %v6846_v51 = vld [vmem:[%s9392_s9 + $0x290] ss:$36 sps:$4 sm:$0xff]   ;;  %v6854_v20 = vld [vmem:[%s9392_s9 + $0x2dc] ss:$36 sps:$4 sm:$0xff]  }
 0x3ab   :  { %6296 = vmatprep.subr.bf16.mxu0 %v6784_v19 }
 0x3ae   :  { %6297 = vmatpush3.bf16.msra.mxu0 %v6784_v19  ;;  %v6852_v19 = vld [vmem:[%s9392_s9 + $0x2d8] ss:$36 sps:$4 sm:$0xff]  }
 0x3af   :  { %6298 = vmatprep.subr.bf16.mxu0 %v6785_v34 }
 0x3b2   :  { %6299 = vmatpush3.bf16.msra.mxu0 %v6785_v34  ;;  %v6860_v34 = vld [vmem:[%s9392_s9 + $0x324] ss:$36 sps:$4 sm:$0xff]  }
 0x3b3   :  { %6300 = vmatprep.subr.bf16.mxu0 %v6786_v53 }
 0x3b6   :  { %6301 = vmatpush3.bf16.msra.mxu0 %v6786_v53  ;;  %v6858_v53 = vld [vmem:[%s9392_s9 + $0x320] ss:$36 sps:$4 sm:$0xff]  }
 0x3b7   :  { %6302 = vmatprep.subr.bf16.mxu0 %v6787_v52 }
 0x3ba   :  { %6303 = vmatpush3.bf16.msra.mxu0 %v6787_v52  ;;  %v6866_v52 = vld [vmem:[%s9392_s9 + $0x36c] ss:$36 sps:$4 sm:$0xff]  }
 0x3bb   :  { %6304 = vmatprep.subr.bf16.mxu0 %v6788_v27 }
 0x3be   :  { %6305 = vmatpush3.bf16.msra.mxu0 %v6788_v27  ;;  %v6864_v27 = vld [vmem:[%s9392_s9 + $0x368] ss:$36 sps:$4 sm:$0xff]  }
 0x3bf   :  { %4477 = vmatprep.subr.bf16.mxu0 %v6794_v3  ;;  %v6872_v3 = vld [vmem:[%s9392_s9 + $0x3b4] ss:$36 sps:$4 sm:$0xff]  }
 0x3c1   :  { %6307 = vmatmul.mubr.bf16.vlgmr.msra.gmra.mrb[76].mxu0 %v2680_v4  ;;  %v6848_v4 = vld [vmem:[%s9392_s9 + $0x294] ss:$36 sps:$4 sm:$0xff]  }
 0x3c2   :  { %4478 = vmatpush1.bf16.msra.mxu0 %v6792_v14  ;;  %v6870_v14 = vld [vmem:[%s9392_s9 + $0x3b0] ss:$36 sps:$4 sm:$0xff]  }
 0x3c3   :  { %4479 = vmatprep.subr.bf16.mxu0 %v6800_v50  ;;  %v6875_v50 = vld [vmem:[%s9392_s9 + $0x3f4] ss:$36 sps:$4 sm:$0xff]  }
 0x3c4   :  { %4399 = vmatprep.subr.bf16.mxu1 %v6875_v50 }
 0x3c6   :  { %4480 = vmatpush1.bf16.msra.mxu0 %v6798_v8  ;;  %v6878_v8 = vld [vmem:[%s9392_s9 + $0x3fc] ss:$36 sps:$4 sm:$0xff]  }
 0x3c7   :  { %4481 = vmatprep.subr.bf16.mxu0 %v6806_v9  ;;  %v6873_v9 = vld [vmem:[%s9392_s9 + $0x3f0] ss:$36 sps:$4 sm:$0xff]  }
 0x3c8   :  { %4400 = vmatpush1.bf16.msra.mxu1 %v6873_v9  ;;  %v6885_v9 = vld [vmem:[%s9392_s9 + $0x480] ss:$36 sps:$4 sm:$0xff]  }
 0x3ca   :  { %4482 = vmatpush1.bf16.msra.mxu0 %v6804_v21  ;;  %v6876_v21 = vld [vmem:[%s9392_s9 + $0x3f8] ss:$36 sps:$4 sm:$0xff]  }
 0x3cb   :  { %4483 = vmatprep.subr.bf16.mxu0 %v6812_v6  ;;  %v6881_v6 = vld [vmem:[%s9392_s9 + $0x43c] ss:$36 sps:$4 sm:$0xff]  }
 0x3cc   :  { %4401 = vmatprep.subr.bf16.mxu1 %v6881_v6 }
 0x3ce   :  { %4484 = vmatpush1.bf16.msra.mxu0 %v6810_v28  ;;  %v6884_v28 = vld [vmem:[%s9392_s9 + $0x444] ss:$36 sps:$4 sm:$0xff]  }
 0x3cf   :  { %4485 = vmatprep.subr.bf16.mxu0 %v6818_v39  ;;  %v6879_v39 = vld [vmem:[%s9392_s9 + $0x438] ss:$36 sps:$4 sm:$0xff]  }
 0x3d0   :  { %4402 = vmatpush1.bf16.msra.mxu1 %v6879_v39  ;;  %v6893_v39 = vld [vmem:[%s9392_s9 + $0x4cc] ss:$36 sps:$4 sm:$0xff]  }
 0x3d2   :  { %4486 = vmatpush1.bf16.msra.mxu0 %v6816_v40  ;;  %v6882_v40 = vld [vmem:[%s9392_s9 + $0x440] ss:$36 sps:$4 sm:$0xff]  }
 0x3d3   :  { %4487 = vmatprep.subr.bf16.mxu0 %v6824_v24  ;;  %v6887_v24 = vld [vmem:[%s9392_s9 + $0x484] ss:$36 sps:$4 sm:$0xff]  }
 0x3d4   :  { %4424 = vmatprep.subr.bf16.mxu1 %v6887_v24 }
 0x3d6   :  { %4488 = vmatpush1.bf16.msra.mxu0 %v6822_v26  ;;  %v6890_v26 = vld [vmem:[%s9392_s9 + $0x48c] ss:$36 sps:$4 sm:$0xff]  }
 0x3d7   :  { %4489 = vmatprep.subr.bf16.mxu0 %v6830_v57  ;;  %v8633_v57 = vld [vmem:[%s9394_s8] sm:$0x7] }
 0x3da   :  { %4490 = vmatpush1.bf16.msra.mxu0 %v6828_v1  ;;  %v2718_v1 = vrot.slane %v8633_v57, %v8321_v35 }
 0x3db   :  { %4491 = vmatprep.subr.bf16.mxu0 %v6836_v10  ;;  %v2722_v10 = vrot.slane %v8633_v57, %v8324_v37 }
 0x3de   :  { %4492 = vmatpush1.bf16.msra.mxu0 %v6834_v30 }
 0x3df   :  { %4493 = vmatprep.subr.bf16.mxu0 %v6842_v60 }
 0x3e2   :  { %4494 = vmatpush1.bf16.msra.mxu0 %v6840_v42 }
 0x3e3   :  { %4495 = vmatprep.subr.bf16.mxu0 %v6848_v4 }
 0x3e6   :  { %4496 = vmatpush1.bf16.msra.mxu0 %v6846_v51 }
 0x3e7   :  { %4497 = vmatprep.subr.bf16.mxu0 %v6854_v20 }
 0x3ea   :  { %4498 = vmatpush1.bf16.msra.mxu0 %v6852_v19 }
 0x3eb   :  { %4499 = vmatprep.subr.bf16.mxu0 %v6860_v34 }
 0x3ee   :  { %4500 = vmatpush1.bf16.msra.mxu0 %v6858_v53 }
 0x3ef   :  { %4501 = vmatprep.subr.bf16.mxu0 %v6866_v52 }
 0x3f2   :  { %4502 = vmatpush1.bf16.msra.mxu0 %v6864_v27 }
 0x3f3   :  { %4503 = vmatprep.subr.bf16.mxu0 %v6872_v3 }
 0x3f6   :  { %4504 = vmatpush1.bf16.msra.mxu0 %v6870_v14 }
 0x3f7   :  { %4505 = vmatprep.subr.bf16.mxu0 %v6878_v8 }
 0x3fa   :  { %4506 = vmatpush1.bf16.msra.mxu0 %v6876_v21  ;;  %v6888_v21 = vld [vmem:[%s9392_s9 + $0x488] ss:$36 sps:$4 sm:$0xff]  }
 0x3fb   :  { %4507 = vmatprep.subr.bf16.mxu0 %v6884_v28 }
 0x3fe   :  { %4508 = vmatpush1.bf16.msra.mxu0 %v6882_v40  ;;  %v6896_v40 = vld [vmem:[%s9392_s9 + $0x4d4] ss:$36 sps:$4 sm:$0xff]  }
 0x3ff   :  { %4530 = vmatprep.subr.bf16.mxu0 %v6890_v26 }
 0x474   :  { %v2892_v30 = vpop.f32.mrb[68].mxu0 }
 0x475   :  { %v2893_v60 = vadd.f32 %v2892_v30, %v2718_v1  ;;  %v2894_v42 = vpop.f32.mrb[69].mxu0 }
 0x476   :  { %v2895_v4 = vadd.f32 %v2894_v42, %v2722_v10  ;;  %v2896_v51 = vpop.f32.mrb[70].mxu0 }
 0x477   :  { %v2897_v20 = vadd.f32 %v2896_v51, %v2718_v1  ;;  %v2898_v19 = vpop.f32.mrb[71].mxu0  ;;  %v2960_v53 = vmax.f32 %v2893_v60, 0.0  ;;  %v6894_v51 = vld [vmem:[%s9392_s9 + $0x4d0] ss:$36 sps:$4 sm:$0xff]  }
 0x478   :  { %v2899_v34 = vadd.f32 %v2898_v19, %v2722_v10  ;;  %v2961_v27 = vmax.f32 %v2895_v4, 0.0  ;;  %v6891_v4 = vld [vmem:[%s9392_s9 + $0x4c8] ss:$36 sps:$4 sm:$0xff]  }
 0x479   :  { %v2963_v52 = vmax.f32 %v2897_v20, 0.0 }
 0x47a   :  { %v2964_v3 = vmax.f32 %v2899_v34, 0.0 }
 0x47b   :  { %v8639_v14 = vpack.c.bf16 %v2963_v52, %v2960_v53 }
 0x47c   :  { %v8641_v50 = vpack.c.bf16 %v2964_v3, %v2961_v27  ;;  %v2902_v8 = vpop.f32.mrb[72].mxu0  ;;  %v6897_v3 = vld [vmem:[%s9392_s9 + $0x510] ss:$36 sps:$4 sm:$0xff]  }
 0x47d   :  { %v2903_v6 = vadd.f32 %v2902_v8, %v2718_v1  ;;  %v2904_v28 = vpop.f32.mrb[73].mxu0  ;;  %v6900_v8 = vld [vmem:[%s9392_s9 + $0x518] ss:$36 sps:$4 sm:$0xff]  }
 0x47e   :  { %v2905_v24 = vadd.f32 %v2904_v28, %v2722_v10  ;;  %v2906_v26 = vpop.f32.mrb[74].mxu0  ;;  %4403 = vmatprep.mubr.bf16.mxu1 %v8641_v50  ;;  %4509 = vmatprep.mubr.bf16.mxu0 %v8641_v50  ;;  %v6906_v28 = vld [vmem:[%s9392_s9 + $0x560] ss:$36 sps:$4 sm:$0xff]  }
 0x47f   :  { %v2907_v30 = vadd.f32 %v2906_v26, %v2718_v1  ;;  %v2908_v60 = vpop.f32.mrb[75].mxu0  ;;  %4404 = vmatmul.mubr.bf16.vlgmr.msra.gmra.mrb[24].mxu1 %v8639_v14  ;;  %4510 = vmatmul.mubr.bf16.vlgmr.msra.gmra.mrb[80].mxu0 %v8639_v14  ;;  %v2966_v20 = vmax.f32 %v2903_v6, 0.0  ;;  %v6899_v1 = vld [vmem:[%s9392_s9 + $0x514] ss:$36 sps:$4 sm:$0xff]   ;;  %v6912_v26 = vld [vmem:[%s9392_s9 + $0x5a8] ss:$36 sps:$4 sm:$0xff]  }
 0x480   :  { %v2909_v42 = vadd.f32 %v2908_v60, %v2722_v10  ;;  %4425 = vmatpush1.bf16.msra.mxu1 %v6885_v9  ;;  %4531 = vmatpush1.bf16.msra.mxu0 %v6888_v21  ;;  %v6902_v10 = vld [vmem:[%s9392_s9 + $0x51c] ss:$36 sps:$4 sm:$0xff]   ;;  %v2967_v34 = vmax.f32 %v2905_v24, 0.0  ;;  %v6908_v21 = vld [vmem:[%s9392_s9 + $0x564] ss:$36 sps:$4 sm:$0xff]  }
 0x481   :  { %v2969_v19 = vmax.f32 %v2907_v30, 0.0  ;;  %4426 = vmatprep.subr.bf16.mxu1 %v6893_v39  ;;  %4532 = vmatprep.subr.bf16.mxu0 %v6896_v40  ;;  %v6905_v9 = vld [vmem:[%s9392_s9 + $0x55c] ss:$36 sps:$4 sm:$0xff]   ;;  %v6911_v39 = vld [vmem:[%s9392_s9 + $0x5a4] ss:$36 sps:$4 sm:$0xff]  }
 0x482   :  { %v2970_v53 = vmax.f32 %v2909_v42, 0.0  ;;  %v6903_v6 = vld [vmem:[%s9392_s9 + $0x558] ss:$36 sps:$4 sm:$0xff]   ;;  %v6914_v40 = vld [vmem:[%s9392_s9 + $0x5ac] ss:$36 sps:$4 sm:$0xff]  }
 0x483   :  { %v8671_v52 = vpack.c.bf16 %v2969_v19, %v2966_v20  ;;  %v6909_v24 = vld [vmem:[%s9392_s9 + $0x5a0] ss:$36 sps:$4 sm:$0xff]   ;;  %v6917_v30 = vld [vmem:[%s9392_s9 + $0x5ec] ss:$36 sps:$4 sm:$0xff]   ;;  %v6920_v60 = vld [vmem:[%s9392_s9 + $0x5f4] ss:$36 sps:$4 sm:$0xff]  }
 0x484   :  { %v8673_v27 = vpack.c.bf16 %v2970_v53, %v2967_v34  ;;  %4427 = vmatpush1.bf16.msra.mxu1 %v6891_v4  ;;  %4533 = vmatpush1.bf16.msra.mxu0 %v6894_v51  ;;  %v6915_v42 = vld [vmem:[%s9392_s9 + $0x5e8] ss:$36 sps:$4 sm:$0xff]   ;;  %v6918_v4 = vld [vmem:[%s9392_s9 + $0x5f0] ss:$36 sps:$4 sm:$0xff]   ;;  %v2726_v51 = vrot.slane %v8633_v57, %v8283_v16  ;;  %v6926_v19 = vld [vmem:[%s9392_s9 + $0x63c] ss:$36 sps:$4 sm:$0xff]  }
 0x485   :  { %4428 = vmatprep.subr.bf16.mxu1 %v6899_v1  ;;  %4534 = vmatprep.subr.bf16.mxu0 %v6902_v10  ;;  %v6923_v20 = vld [vmem:[%s9392_s9 + $0x634] ss:$36 sps:$4 sm:$0xff]  }
 0x486   :  { %4413 = vmatprep.mubr.bf16.mxu1 %v8673_v27  ;;  %4519 = vmatprep.mubr.bf16.mxu0 %v8673_v27  ;;  %v6921_v10 = vld [vmem:[%s9392_s9 + $0x630] ss:$36 sps:$4 sm:$0xff]   ;;  %v6924_v34 = vld [vmem:[%s9392_s9 + $0x638] ss:$36 sps:$4 sm:$0xff]  }
 0x487   :  { %4414 = vmatmul.mubr.bf16.gmra.mrb[28].mxu1 %v8671_v52  ;;  %4520 = vmatmul.mubr.bf16.gmra.mrb[84].mxu0 %v8671_v52 }
 0x488   :  { %4429 = vmatpush1.bf16.msra.mxu1 %v6897_v3  ;;  %4535 = vmatpush1.bf16.msra.mxu0 %v6900_v8  ;;  %v6929_v3 = vld [vmem:[%s9392_s9 + $0x67c] ss:$36 sps:$4 sm:$0xff]   ;;  %v6932_v8 = vld [vmem:[%s9392_s9 + $0x684] ss:$36 sps:$4 sm:$0xff]  }
 0x489   :  { %4430 = vmatprep.subr.bf16.mxu1 %v6905_v9  ;;  %4536 = vmatprep.subr.bf16.mxu0 %v6908_v21 }
 0x48a   :  { %4456 = vmatprep.mubr.bf16.mxu1 %v9406_v47  ;;  %4562 = vmatprep.mubr.bf16.mxu0 %v9406_v47 }
 0x48c   :  { %4431 = vmatpush1.bf16.msra.mxu1 %v6903_v6  ;;  %4537 = vmatpush1.bf16.msra.mxu0 %v6906_v28 }
 0x48d   :  { %4432 = vmatprep.subr.bf16.mxu1 %v6911_v39  ;;  %4538 = vmatprep.subr.bf16.mxu0 %v6914_v40  ;;  %v6927_v40 = vld [vmem:[%s9392_s9 + $0x678] ss:$36 sps:$4 sm:$0xff]  }
 0x490   :  { %4433 = vmatpush1.bf16.msra.mxu1 %v6909_v24  ;;  %4539 = vmatpush1.bf16.msra.mxu0 %v6912_v26  ;;  %v6930_v24 = vld [vmem:[%s9392_s9 + $0x680] ss:$36 sps:$4 sm:$0xff]  }
 0x491   :  { %4434 = vmatprep.subr.bf16.mxu1 %v6917_v30  ;;  %4540 = vmatprep.subr.bf16.mxu0 %v6920_v60  ;;  %v6935_v60 = vld [vmem:[%s9392_s9 + $0x14] ss:$36 sps:$4 sm:$0xff]  }
 0x494   :  { %v6308_v1 = vpop.f32.mrb[76].mxu0  ;;  %4435 = vmatpush1.bf16.msra.mxu1 %v6915_v42  ;;  %4541 = vmatpush1.bf16.msra.mxu0 %v6918_v4  ;;  %v6938_v42 = vld [vmem:[%s9392_s9 + $0x1c] ss:$36 sps:$4 sm:$0xff]  }
 0x495   :  { %v2954_v57 = vadd.f32 %v6308_v1, %v2726_v51  ;;  %v2945_v53 = vpop.f32.mrb[77].mxu0  ;;  %4436 = vmatprep.subr.bf16.mxu1 %v6923_v20  ;;  %4542 = vmatprep.subr.bf16.mxu0 %v6926_v19  ;;  %v6933_v1 = vld [vmem:[%s9392_s9 + $0x10] ss:$36 sps:$4 sm:$0xff]  }
 0x496   :  { %v2946_v9 = vadd.f32 %v2945_v53, %v2726_v51  ;;  %v6309_v21 = vpop.f32.mrb[78].mxu0  ;;  %v6939_v53 = vld [vmem:[%s9392_s9 + $0x58] ss:$36 sps:$4 sm:$0xff]  }
 0x497   :  { %v2957_v6 = vadd.f32 %v6309_v21, %v2726_v51  ;;  %v2948_v28 = vpop.f32.mrb[79].mxu0  ;;  %v2968_v26 = vmax.f32 %v2954_v57, 0.0  ;;  %v6944_v57 = vld [vmem:[%s9392_s9 + $0x64] ss:$36 sps:$4 sm:$0xff]  }
 0x498   :  { %v2949_v39 = vadd.f32 %v2948_v28, %v2726_v51  ;;  %4437 = vmatpush1.bf16.msra.mxu1 %v6921_v10  ;;  %4543 = vmatpush1.bf16.msra.mxu0 %v6924_v34  ;;  %v2962_v4 = vmax.f32 %v2946_v9, 0.0  ;;  %v6936_v10 = vld [vmem:[%s9392_s9 + $0x18] ss:$36 sps:$4 sm:$0xff]   ;;  %v6950_v9 = vld [vmem:[%s9392_s9 + $0xac] ss:$36 sps:$4 sm:$0xff]  }
 0x499   :  { %v2971_v30 = vmax.f32 %v2957_v6, 0.0  ;;  %4438 = vmatprep.subr.bf16.mxu1 %v6929_v3  ;;  %4544 = vmatprep.subr.bf16.mxu0 %v6932_v8  ;;  %v6941_v34 = vld [vmem:[%s9392_s9 + $0x5c] ss:$36 sps:$4 sm:$0xff]   ;;  %v6947_v8 = vld [vmem:[%s9392_s9 + $0xa4] ss:$36 sps:$4 sm:$0xff]  }
 0x49a   :  { %v2965_v51 = vmax.f32 %v2949_v39, 0.0  ;;  %v6942_v3 = vld [vmem:[%s9392_s9 + $0x60] ss:$36 sps:$4 sm:$0xff]   ;;  %v6948_v6 = vld [vmem:[%s9392_s9 + $0xa8] ss:$36 sps:$4 sm:$0xff]  }
 0x49b   :  { %v8755_v20 = vpack.c.bf16 %v2971_v30, %v2968_v26  ;;  %v6945_v21 = vld [vmem:[%s9392_s9 + $0xa0] ss:$36 sps:$4 sm:$0xff]   ;;  %v6953_v28 = vld [vmem:[%s9392_s9 + $0xec] ss:$36 sps:$4 sm:$0xff]   ;;  %v6956_v39 = vld [vmem:[%s9392_s9 + $0xf4] ss:$36 sps:$4 sm:$0xff]  }
 0x49c   :  { %v8757_v19 = vpack.c.bf16 %v2965_v51, %v2962_v4  ;;  %4439 = vmatpush1.bf16.msra.mxu1 %v6927_v40  ;;  %4545 = vmatpush1.bf16.msra.mxu0 %v6930_v24  ;;  %v6951_v40 = vld [vmem:[%s9392_s9 + $0xe8] ss:$36 sps:$4 sm:$0xff]   ;;  %v6954_v24 = vld [vmem:[%s9392_s9 + $0xf0] ss:$36 sps:$4 sm:$0xff]   ;;  %v6962_v30 = vld [vmem:[%s9392_s9 + $0x13c] ss:$36 sps:$4 sm:$0xff]  }
 0x49d   :  { %4583 = vmatprep.subr.bf16.mxu1 %v6935_v60  ;;  %4689 = vmatprep.subr.bf16.mxu0 %v6938_v42  ;;  %v6959_v26 = vld [vmem:[%s9392_s9 + $0x134] ss:$36 sps:$4 sm:$0xff]   ;;  %v6965_v4 = vld [vmem:[%s9392_s9 + $0x17c] ss:$36 sps:$4 sm:$0xff]   ;;  %v6968_v51 = vld [vmem:[%s9392_s9 + $0x184] ss:$36 sps:$4 sm:$0xff]  }
 0x49e   :  { %v6957_v60 = vld [vmem:[%s9392_s9 + $0x130] ss:$36 sps:$4 sm:$0xff]   ;;  %v6960_v42 = vld [vmem:[%s9392_s9 + $0x138] ss:$36 sps:$4 sm:$0xff]  }
 0x49f   :  { %4457 = vmatmul.mubr.bf16.vlgmr.msra.gmra.mrb[24].mxu1 %v8757_v19  ;;  %4563 = vmatmul.mubr.bf16.vlgmr.msra.gmra.mrb[80].mxu0 %v8757_v19 }
 0x4a0   :  { %4584 = vmatpush1.bf16.msra.mxu1 %v6933_v1  ;;  %4690 = vmatpush1.bf16.msra.mxu0 %v6936_v10  ;;  %v6963_v1 = vld [vmem:[%s9392_s9 + $0x178] ss:$36 sps:$4 sm:$0xff]   ;;  %v6966_v10 = vld [vmem:[%s9392_s9 + $0x180] ss:$36 sps:$4 sm:$0xff]  }
 0x4a1   :  { %4585 = vmatprep.subr.bf16.mxu1 %v6941_v34  ;;  %4691 = vmatprep.subr.bf16.mxu0 %v6944_v57  ;;  %v6971_v34 = vld [vmem:[%s9392_s9 + $0x1c4] ss:$36 sps:$4 sm:$0xff]   ;;  %v6974_v57 = vld [vmem:[%s9392_s9 + $0x1cc] ss:$36 sps:$4 sm:$0xff]  }
 0x4a2   :  { %4466 = vmatprep.mubr.bf16.mxu1 %v9406_v47  ;;  %4572 = vmatprep.mubr.bf16.mxu0 %v9406_v47 }
 0x4a4   :  { %4586 = vmatpush1.bf16.msra.mxu1 %v6939_v53  ;;  %4692 = vmatpush1.bf16.msra.mxu0 %v6942_v3  ;;  %v6969_v53 = vld [vmem:[%s9392_s9 + $0x1c0] ss:$36 sps:$4 sm:$0xff]   ;;  %v6972_v3 = vld [vmem:[%s9392_s9 + $0x1c8] ss:$36 sps:$4 sm:$0xff]  }
 0x4a5   :  { %4587 = vmatprep.subr.bf16.mxu1 %v6947_v8  ;;  %4693 = vmatprep.subr.bf16.mxu0 %v6950_v9  ;;  %v6977_v8 = vld [vmem:[%s9392_s9 + $0x20c] ss:$36 sps:$4 sm:$0xff]   ;;  %v6980_v9 = vld [vmem:[%s9392_s9 + $0x214] ss:$36 sps:$4 sm:$0xff]  }
 0x4a7   :  { %4467 = vmatmul.mubr.bf16.gmra.mrb[28].mxu1 %v8755_v20  ;;  %4573 = vmatmul.mubr.bf16.gmra.mrb[84].mxu0 %v8755_v20 }
 0x4a8   :  { %4588 = vmatpush1.bf16.msra.mxu1 %v6945_v21  ;;  %4615 = vmatprep.mubr.bf16.mxu1 %v8641_v50  ;;  %v6975_v21 = vld [vmem:[%s9392_s9 + $0x208] ss:$36 sps:$4 sm:$0xff]  }
 0x4a9   :  { %4694 = vmatpush1.bf16.msra.mxu0 %v6948_v6  ;;  %4721 = vmatprep.mubr.bf16.mxu0 %v8641_v50  ;;  %v6978_v6 = vld [vmem:[%s9392_s9 + $0x210] ss:$36 sps:$4 sm:$0xff]  }
 0x4aa   :  { %4589 = vmatprep.subr.bf16.mxu1 %v6953_v28  ;;  %4695 = vmatprep.subr.bf16.mxu0 %v6956_v39  ;;  %v6983_v28 = vld [vmem:[%s9392_s9 + $0x254] ss:$36 sps:$4 sm:$0xff]   ;;  %v6986_v39 = vld [vmem:[%s9392_s9 + $0x25c] ss:$36 sps:$4 sm:$0xff]  }
 0x4ac   :  { %4590 = vmatpush1.bf16.msra.mxu1 %v6951_v40  ;;  %v6981_v40 = vld [vmem:[%s9392_s9 + $0x250] ss:$36 sps:$4 sm:$0xff]  }
 0x4ad   :  { %4696 = vmatpush1.bf16.msra.mxu0 %v6954_v24  ;;  %4591 = vmatprep.subr.bf16.mxu1 %v6959_v26  ;;  %v6984_v24 = vld [vmem:[%s9392_s9 + $0x258] ss:$36 sps:$4 sm:$0xff]  }
 0x4ae   :  { %4697 = vmatprep.subr.bf16.mxu0 %v6962_v30  ;;  %v6989_v26 = vld [vmem:[%s9392_s9 + $0x29c] ss:$36 sps:$4 sm:$0xff]   ;;  %v6992_v30 = vld [vmem:[%s9392_s9 + $0x2a4] ss:$36 sps:$4 sm:$0xff]  }
 0x4b0   :  { %4592 = vmatpush1.bf16.msra.mxu1 %v6957_v60  ;;  %v6987_v60 = vld [vmem:[%s9392_s9 + $0x298] ss:$36 sps:$4 sm:$0xff]  }
 0x4b1   :  { %4698 = vmatpush1.bf16.msra.mxu0 %v6960_v42  ;;  %4593 = vmatprep.subr.bf16.mxu1 %v6965_v4  ;;  %v6990_v42 = vld [vmem:[%s9392_s9 + $0x2a0] ss:$36 sps:$4 sm:$0xff]  }
 0x4b2   :  { %4699 = vmatprep.subr.bf16.mxu0 %v6968_v51  ;;  %v6995_v4 = vld [vmem:[%s9392_s9 + $0x2e4] ss:$36 sps:$4 sm:$0xff]   ;;  %v6998_v51 = vld [vmem:[%s9392_s9 + $0x2ec] ss:$36 sps:$4 sm:$0xff]  }
 0x4b4   :  { %4594 = vmatpush1.bf16.msra.mxu1 %v6963_v1  ;;  %v6993_v1 = vld [vmem:[%s9392_s9 + $0x2e0] ss:$36 sps:$4 sm:$0xff]  }
 0x4b5   :  { %4700 = vmatpush1.bf16.msra.mxu0 %v6966_v10  ;;  %4595 = vmatprep.subr.bf16.mxu1 %v6971_v34  ;;  %v6996_v10 = vld [vmem:[%s9392_s9 + $0x2e8] ss:$36 sps:$4 sm:$0xff]  }
 0x4b6   :  { %4701 = vmatprep.subr.bf16.mxu0 %v6974_v57  ;;  %v7001_v34 = vld [vmem:[%s9392_s9 + $0x32c] ss:$36 sps:$4 sm:$0xff]   ;;  %v7004_v57 = vld [vmem:[%s9392_s9 + $0x334] ss:$36 sps:$4 sm:$0xff]  }
 0x4b8   :  { %4596 = vmatpush1.bf16.msra.mxu1 %v6969_v53  ;;  %v6999_v53 = vld [vmem:[%s9392_s9 + $0x328] ss:$36 sps:$4 sm:$0xff]  }
 0x4b9   :  { %4702 = vmatpush1.bf16.msra.mxu0 %v6972_v3  ;;  %4597 = vmatprep.subr.bf16.mxu1 %v6977_v8  ;;  %v7002_v3 = vld [vmem:[%s9392_s9 + $0x330] ss:$36 sps:$4 sm:$0xff]  }
 0x4ba   :  { %4703 = vmatprep.subr.bf16.mxu0 %v6980_v9  ;;  %v7007_v8 = vld [vmem:[%s9392_s9 + $0x374] ss:$36 sps:$4 sm:$0xff]   ;;  %v7010_v9 = vld [vmem:[%s9392_s9 + $0x37c] ss:$36 sps:$4 sm:$0xff]  }
 0x4bc   :  { %4598 = vmatpush1.bf16.msra.mxu1 %v6975_v21  ;;  %v7005_v21 = vld [vmem:[%s9392_s9 + $0x370] ss:$36 sps:$4 sm:$0xff]  }
 0x4bd   :  { %4704 = vmatpush1.bf16.msra.mxu0 %v6978_v6  ;;  %4599 = vmatprep.subr.bf16.mxu1 %v6983_v28  ;;  %v7008_v6 = vld [vmem:[%s9392_s9 + $0x378] ss:$36 sps:$4 sm:$0xff]  }
 0x4be   :  { %4705 = vmatprep.subr.bf16.mxu0 %v6986_v39  ;;  %v7013_v28 = vld [vmem:[%s9392_s9 + $0x3bc] ss:$36 sps:$4 sm:$0xff]   ;;  %v7016_v39 = vld [vmem:[%s9392_s9 + $0x3c4] ss:$36 sps:$4 sm:$0xff]  }
 0x4c0   :  { %4600 = vmatpush1.bf16.msra.mxu1 %v6981_v40  ;;  %v7011_v40 = vld [vmem:[%s9392_s9 + $0x3b8] ss:$36 sps:$4 sm:$0xff]  }
 0x4c1   :  { %4706 = vmatpush1.bf16.msra.mxu0 %v6984_v24  ;;  %4601 = vmatprep.subr.bf16.mxu1 %v6989_v26  ;;  %v7014_v24 = vld [vmem:[%s9392_s9 + $0x3c0] ss:$36 sps:$4 sm:$0xff]  }
 0x4c2   :  { %4707 = vmatprep.subr.bf16.mxu0 %v6992_v30  ;;  %v7019_v26 = vld [vmem:[%s9392_s9 + $0x404] ss:$36 sps:$4 sm:$0xff]   ;;  %v7022_v30 = vld [vmem:[%s9392_s9 + $0x40c] ss:$36 sps:$4 sm:$0xff]  }
 0x4c4   :  { %4602 = vmatpush1.bf16.msra.mxu1 %v6987_v60  ;;  %v7017_v60 = vld [vmem:[%s9392_s9 + $0x400] ss:$36 sps:$4 sm:$0xff]  }
 0x4c5   :  { %4708 = vmatpush1.bf16.msra.mxu0 %v6990_v42  ;;  %4603 = vmatprep.subr.bf16.mxu1 %v6995_v4  ;;  %v7020_v42 = vld [vmem:[%s9392_s9 + $0x408] ss:$36 sps:$4 sm:$0xff]  }
 0x4c6   :  { %4709 = vmatprep.subr.bf16.mxu0 %v6998_v51  ;;  %v7025_v4 = vld [vmem:[%s9392_s9 + $0x44c] ss:$36 sps:$4 sm:$0xff]   ;;  %v7028_v51 = vld [vmem:[%s9392_s9 + $0x454] ss:$36 sps:$4 sm:$0xff]  }
 0x4c8   :  { %4604 = vmatpush1.bf16.msra.mxu1 %v6993_v1  ;;  %v7023_v1 = vld [vmem:[%s9392_s9 + $0x448] ss:$36 sps:$4 sm:$0xff]  }
 0x4c9   :  { %4710 = vmatpush1.bf16.msra.mxu0 %v6996_v10  ;;  %4605 = vmatprep.subr.bf16.mxu1 %v7001_v34  ;;  %v7026_v10 = vld [vmem:[%s9392_s9 + $0x450] ss:$36 sps:$4 sm:$0xff]  }
 0x4ca   :  { %4711 = vmatprep.subr.bf16.mxu0 %v7004_v57  ;;  %v7031_v34 = vld [vmem:[%s9392_s9 + $0x494] ss:$36 sps:$4 sm:$0xff]   ;;  %v7034_v57 = vld [vmem:[%s9392_s9 + $0x49c] ss:$36 sps:$4 sm:$0xff]  }
 0x4cc   :  { %4606 = vmatpush1.bf16.msra.mxu1 %v6999_v53  ;;  %v7029_v53 = vld [vmem:[%s9392_s9 + $0x490] ss:$36 sps:$4 sm:$0xff]  }
 0x4cd   :  { %4712 = vmatpush1.bf16.msra.mxu0 %v7002_v3  ;;  %4607 = vmatprep.subr.bf16.mxu1 %v7007_v8  ;;  %v7032_v3 = vld [vmem:[%s9392_s9 + $0x498] ss:$36 sps:$4 sm:$0xff]  }
 0x4ce   :  { %4713 = vmatprep.subr.bf16.mxu0 %v7010_v9  ;;  %v7037_v8 = vld [vmem:[%s9392_s9 + $0x4dc] ss:$36 sps:$4 sm:$0xff]   ;;  %v7040_v9 = vld [vmem:[%s9392_s9 + $0x4e4] ss:$36 sps:$4 sm:$0xff]  }
 0x4d0   :  { %4608 = vmatpush1.bf16.msra.mxu1 %v7005_v21  ;;  %v7035_v21 = vld [vmem:[%s9392_s9 + $0x4d8] ss:$36 sps:$4 sm:$0xff]  }
 0x4d1   :  { %4714 = vmatpush1.bf16.msra.mxu0 %v7008_v6  ;;  %4609 = vmatprep.subr.bf16.mxu1 %v7013_v28  ;;  %v7038_v6 = vld [vmem:[%s9392_s9 + $0x4e0] ss:$36 sps:$4 sm:$0xff]  }
 0x4d2   :  { %4715 = vmatprep.subr.bf16.mxu0 %v7016_v39  ;;  %v7043_v28 = vld [vmem:[%s9392_s9 + $0x524] ss:$36 sps:$4 sm:$0xff]   ;;  %v7046_v39 = vld [vmem:[%s9392_s9 + $0x52c] ss:$36 sps:$4 sm:$0xff]  }
 0x4d4   :  { %4610 = vmatpush1.bf16.msra.mxu1 %v7011_v40  ;;  %v7041_v40 = vld [vmem:[%s9392_s9 + $0x520] ss:$36 sps:$4 sm:$0xff]  }
 0x4d5   :  { %4716 = vmatpush1.bf16.msra.mxu0 %v7014_v24  ;;  %4611 = vmatprep.subr.bf16.mxu1 %v7019_v26  ;;  %v7044_v24 = vld [vmem:[%s9392_s9 + $0x528] ss:$36 sps:$4 sm:$0xff]  }
 0x4d6   :  { %4717 = vmatprep.subr.bf16.mxu0 %v7022_v30  ;;  %v7049_v26 = vld [vmem:[%s9392_s9 + $0x56c] ss:$36 sps:$4 sm:$0xff]   ;;  %v7052_v30 = vld [vmem:[%s9392_s9 + $0x574] ss:$36 sps:$4 sm:$0xff]  }
 0x4d8   :  { %4612 = vmatpush1.bf16.msra.mxu1 %v7017_v60  ;;  %v7047_v60 = vld [vmem:[%s9392_s9 + $0x568] ss:$36 sps:$4 sm:$0xff]  }
 0x4d9   :  { %4718 = vmatpush1.bf16.msra.mxu0 %v7020_v42  ;;  %4613 = vmatprep.subr.bf16.mxu1 %v7025_v4  ;;  %v7050_v42 = vld [vmem:[%s9392_s9 + $0x570] ss:$36 sps:$4 sm:$0xff]  }
 0x4da   :  { %4719 = vmatprep.subr.bf16.mxu0 %v7028_v51  ;;  %v7055_v4 = vld [vmem:[%s9392_s9 + $0x5b4] ss:$36 sps:$4 sm:$0xff]   ;;  %v7058_v51 = vld [vmem:[%s9392_s9 + $0x5bc] ss:$36 sps:$4 sm:$0xff]  }
 0x4dc   :  { %4614 = vmatpush1.bf16.msra.mxu1 %v7023_v1  ;;  %v7053_v1 = vld [vmem:[%s9392_s9 + $0x5b0] ss:$36 sps:$4 sm:$0xff]  }
 0x4dd   :  { %4720 = vmatpush1.bf16.msra.mxu0 %v7026_v10  ;;  %4636 = vmatprep.subr.bf16.mxu1 %v7031_v34  ;;  %v7056_v10 = vld [vmem:[%s9392_s9 + $0x5b8] ss:$36 sps:$4 sm:$0xff]  }
 0x4de   :  { %4742 = vmatprep.subr.bf16.mxu0 %v7034_v57  ;;  %v7061_v34 = vld [vmem:[%s9392_s9 + $0x5fc] ss:$36 sps:$4 sm:$0xff]   ;;  %v7064_v57 = vld [vmem:[%s9392_s9 + $0x604] ss:$36 sps:$4 sm:$0xff]  }
 0x4df   :  { %4616 = vmatmul.mubr.bf16.vlgmr.msra.gmra.mrb[32].mxu1 %v8639_v14 }
 0x4e0   :  { %4722 = vmatmul.mubr.bf16.vlgmr.msra.gmra.mrb[88].mxu0 %v8639_v14  ;;  %4625 = vmatprep.mubr.bf16.mxu1 %v8673_v27 }
 0x4e1   :  { %4637 = vmatpush1.bf16.msra.mxu1 %v7029_v53  ;;  %4731 = vmatprep.mubr.bf16.mxu0 %v8673_v27  ;;  %v7059_v53 = vld [vmem:[%s9392_s9 + $0x5f8] ss:$36 sps:$4 sm:$0xff]  }
 0x4e2   :  { %4743 = vmatpush1.bf16.msra.mxu0 %v7032_v3  ;;  %4638 = vmatprep.subr.bf16.mxu1 %v7037_v8  ;;  %v7062_v3 = vld [vmem:[%s9392_s9 + $0x600] ss:$36 sps:$4 sm:$0xff]  }
 0x4e3   :  { %4744 = vmatprep.subr.bf16.mxu0 %v7040_v9  ;;  %v7067_v8 = vld [vmem:[%s9392_s9 + $0x644] ss:$36 sps:$4 sm:$0xff]   ;;  %v7070_v9 = vld [vmem:[%s9392_s9 + $0x64c] ss:$36 sps:$4 sm:$0xff]  }
 0x4e5   :  { %4639 = vmatpush1.bf16.msra.mxu1 %v7035_v21  ;;  %v7065_v21 = vld [vmem:[%s9392_s9 + $0x640] ss:$36 sps:$4 sm:$0xff]  }
 0x4e6   :  { %4745 = vmatpush1.bf16.msra.mxu0 %v7038_v6  ;;  %4640 = vmatprep.subr.bf16.mxu1 %v7043_v28  ;;  %v7068_v6 = vld [vmem:[%s9392_s9 + $0x648] ss:$36 sps:$4 sm:$0xff]  }
 0x4e7   :  { %4626 = vmatmul.mubr.bf16.gmra.mrb[36].mxu1 %v8671_v52  ;;  %4746 = vmatprep.subr.bf16.mxu0 %v7046_v39  ;;  %v7073_v28 = vld [vmem:[%s9392_s9 + $0x68c] ss:$36 sps:$4 sm:$0xff]   ;;  %v7076_v39 = vld [vmem:[%s9392_s9 + $0x694] ss:$36 sps:$4 sm:$0xff]  }
 0x4e8   :  { %4732 = vmatmul.mubr.bf16.gmra.mrb[92].mxu0 %v8671_v52  ;;  %4668 = vmatprep.mubr.bf16.mxu1 %v9406_v47 }
 0x4e9   :  { %4641 = vmatpush1.bf16.msra.mxu1 %v7041_v40  ;;  %4774 = vmatprep.mubr.bf16.mxu0 %v9406_v47  ;;  %v7071_v40 = vld [vmem:[%s9392_s9 + $0x688] ss:$36 sps:$4 sm:$0xff]  }
 0x4ea   :  { %4747 = vmatpush1.bf16.msra.mxu0 %v7044_v24  ;;  %4642 = vmatprep.subr.bf16.mxu1 %v7049_v26  ;;  %v7074_v24 = vld [vmem:[%s9392_s9 + $0x690] ss:$36 sps:$4 sm:$0xff]   ;;  %v7077_v26 = vld [vmem:[%s9392_s9 + $0x260] ss:$36 sps:$4 sm:$0xff]  }
 0x4eb   :  { %4748 = vmatprep.subr.bf16.mxu0 %v7052_v30  ;;  %v7078_v30 = vld [vmem:[%s9392_s9 + $0x4a0] ss:$36 sps:$4 sm:$0xff]  }
 0x4ed   :  { %4643 = vmatpush1.bf16.msra.mxu1 %v7047_v60  ;;  %v7079_v60 = vld [vmem:[%s9392_s9 + $0x20] ss:$36 sps:$4 sm:$0xff]  }
 0x4ee   :  { %4749 = vmatpush1.bf16.msra.mxu0 %v7050_v42  ;;  %4644 = vmatprep.subr.bf16.mxu1 %v7055_v4  ;;  %v7080_v42 = vld [vmem:[%s9392_s9 + $0x2a8] ss:$36 sps:$4 sm:$0xff]  }
 0x4ef   :  { %4750 = vmatprep.subr.bf16.mxu0 %v7058_v51  ;;  %v7081_v4 = vld [vmem:[%s9392_s9 + $0x4e8] ss:$36 sps:$4 sm:$0xff]  }
 0x4f0   :  { %v7082_v51 = vld [vmem:[%s9392_s9 + $0x68] ss:$36 sps:$4 sm:$0xff]  }
 0x4f1   :  { %4645 = vmatpush1.bf16.msra.mxu1 %v7053_v1  ;;  %v7083_v1 = vld [vmem:[%s9392_s9 + $0x2f0] ss:$36 sps:$4 sm:$0xff]  }
 0x4f2   :  { %4751 = vmatpush1.bf16.msra.mxu0 %v7056_v10  ;;  %4646 = vmatprep.subr.bf16.mxu1 %v7061_v34  ;;  %v7084_v10 = vld [vmem:[%s9392_s9 + $0x530] ss:$36 sps:$4 sm:$0xff]  }
 0x4f3   :  { %4752 = vmatprep.subr.bf16.mxu0 %v7064_v57  ;;  %v7085_v34 = vld [vmem:[%s9392_s9 + $0xb0] ss:$36 sps:$4 sm:$0xff]   ;;  %v7086_v57 = vld [vmem:[%s9392_s9 + $0x338] ss:$36 sps:$4 sm:$0xff]  }
 0x4f5   :  { %4647 = vmatpush1.bf16.msra.mxu1 %v7059_v53  ;;  %v7087_v53 = vld [vmem:[%s9392_s9 + $0x578] ss:$36 sps:$4 sm:$0xff]  }
 0x4f6   :  { %4753 = vmatpush1.bf16.msra.mxu0 %v7062_v3  ;;  %4648 = vmatprep.subr.bf16.mxu1 %v7067_v8  ;;  %v7088_v3 = vld [vmem:[%s9392_s9 + $0xf8] ss:$36 sps:$4 sm:$0xff]   ;;  %v7089_v8 = vld [vmem:[%s9392_s9 + $0x380] ss:$36 sps:$4 sm:$0xff]  }
 0x4f7   :  { %4754 = vmatprep.subr.bf16.mxu0 %v7070_v9  ;;  %v7090_v9 = vld [vmem:[%s9392_s9 + $0x5c0] ss:$36 sps:$4 sm:$0xff]  }
 0x4f9   :  { %4649 = vmatpush1.bf16.msra.mxu1 %v7065_v21  ;;  %v7091_v21 = vld [vmem:[%s9392_s9 + $0x140] ss:$36 sps:$4 sm:$0xff]  }
 0x4fa   :  { %4755 = vmatpush1.bf16.msra.mxu0 %v7068_v6  ;;  %4650 = vmatprep.subr.bf16.mxu1 %v7073_v28  ;;  %v7094_v6 = vld [vmem:[%s9392_s9 + $0x188] ss:$36 sps:$4 sm:$0xff]   ;;  %v7095_v28 = vld [vmem:[%s9392_s9 + $0x410] ss:$36 sps:$4 sm:$0xff]  }
 0x4fb   :  { %4756 = vmatprep.subr.bf16.mxu0 %v7076_v39  ;;  %v7096_v39 = vld [vmem:[%s9392_s9 + $0x650] ss:$36 sps:$4 sm:$0xff]  }
 0x4fd   :  { %4651 = vmatpush1.bf16.msra.mxu1 %v7071_v40  ;;  %v7097_v40 = vld [vmem:[%s9392_s9 + $0x1d0] ss:$36 sps:$4 sm:$0xff]  }
 0x4fe   :  { %4757 = vmatpush1.bf16.msra.mxu0 %v7074_v24  ;;  %6200 = vmatprep.subr.bf16.mxu1 %v7077_v26  ;;  %v7098_v24 = vld [vmem:[%s9392_s9 + $0x458] ss:$36 sps:$4 sm:$0xff]  }
 0x4ff   :  { %6310 = vmatprep.subr.bf16.mxu0 %v7078_v30  ;;  %v7099_v26 = vld [vmem:[%s9392_s9 + $0x698] ss:$36 sps:$4 sm:$0xff]  }
 0x500   :  { %4669 = vmatmul.mubr.bf16.vlgmr.msra.gmra.mrb[32].mxu1 %v8757_v19 }
 0x501   :  { %4775 = vmatmul.mubr.bf16.vlgmr.msra.gmra.mrb[88].mxu0 %v8757_v19  ;;  %6201 = vmatpush3.bf16.msra.mxu1 %v7079_v60  ;;  %v9146_v60 = vld [vmem:[%s9395_s10] sm:$0xff] }
 0x502   :  { %6311 = vmatpush3.bf16.msra.mxu0 %v7078_v30  ;;  %6202 = vmatprep.subr.bf16.mxu1 %v7080_v42  ;;  %v7100_v30 = vld [vmem:[%s9392_s9 + $0x218] ss:$36 sps:$4 sm:$0xff]   ;;  %v3236_v42 = vsub.s32 3, %v8271_v29 }
 0x503   :  { %6312 = vmatprep.subr.bf16.mxu0 %v7081_v4  ;;  %4678 = vmatprep.mubr.bf16.mxu1 %v9406_v47 }
 0x504   :  { %4784 = vmatprep.mubr.bf16.mxu0 %v9406_v47 }
 0x505   :  { %6203 = vmatpush3.bf16.msra.mxu1 %v7082_v51 }
 0x506   :  { %6313 = vmatpush3.bf16.msra.mxu0 %v7081_v4  ;;  %6204 = vmatprep.subr.bf16.mxu1 %v7083_v1 }
 0x507   :  { %6314 = vmatprep.subr.bf16.mxu0 %v7084_v10 }
 0x508   :  { %4679 = vmatmul.mubr.bf16.gmra.mrb[36].mxu1 %v8755_v20 }
 0x509   :  { %4785 = vmatmul.mubr.bf16.gmra.mrb[92].mxu0 %v8755_v20  ;;  %6205 = vmatpush3.bf16.msra.mxu1 %v7085_v34 }
 0x50a   :  { %4827 = vmatprep.mubr.bf16.mxu1 %v8641_v50  ;;  %6315 = vmatpush3.bf16.msra.mxu0 %v7084_v10  ;;  %v7092_v50 = vld [vmem:[%s9392_s9 + $0x3c8] ss:$36 sps:$4 sm:$0xff]  }
 0x50b   :  { %6326 = vmatprep.mubr.bf16.mxu0 %v8757_v19  ;;  %6206 = vmatprep.subr.bf16.mxu1 %v7086_v57  ;;  %v7093_v19 = vld [vmem:[%s9392_s9 + $0x608] ss:$36 sps:$4 sm:$0xff]  }
 0x50c   :  { %6316 = vmatprep.subr.bf16.mxu0 %v7087_v53 }
 0x50d   :  { %6207 = vmatpush3.bf16.msra.mxu1 %v7088_v3 }
 0x50e   :  { %6317 = vmatpush3.bf16.msra.mxu0 %v7087_v53  ;;  %6208 = vmatprep.subr.bf16.mxu1 %v7089_v8 }
 0x50f   :  { %6318 = vmatprep.subr.bf16.mxu0 %v7090_v9 }
 0x511   :  { %6209 = vmatpush3.bf16.msra.mxu1 %v7091_v21 }
 0x512   :  { %6319 = vmatpush3.bf16.msra.mxu0 %v7090_v9  ;;  %6210 = vmatprep.subr.bf16.mxu1 %v7092_v50 }
 0x513   :  { %6320 = vmatprep.subr.bf16.mxu0 %v7093_v19 }
 0x515   :  { %6211 = vmatpush3.bf16.msra.mxu1 %v7094_v6 }
 0x516   :  { %6321 = vmatpush3.bf16.msra.mxu0 %v7093_v19  ;;  %6212 = vmatprep.subr.bf16.mxu1 %v7095_v28 }
 0x517   :  { %6322 = vmatprep.subr.bf16.mxu0 %v7096_v39 }
 0x519   :  { %6213 = vmatpush3.bf16.msra.mxu1 %v7097_v40 }
 0x51a   :  { %6323 = vmatpush3.bf16.msra.mxu0 %v7096_v39  ;;  %6214 = vmatprep.subr.bf16.mxu1 %v7098_v24 }
 0x51b   :  { %6324 = vmatprep.subr.bf16.mxu0 %v7099_v26 }
 0x51d   :  { %6215 = vmatpush3.bf16.msra.mxu1 %v7100_v30 }
 0x51e   :  { %6325 = vmatpush3.bf16.msra.mxu0 %v7099_v26 }
 0x520   :  { %4828 = vmatmul.mubr.bf16.vlgmr.msra.gmra.mrb[40].mxu1 %v8639_v14  ;;  %v3225_v14 = vrot.slane %v9146_v60, %v8321_v35 }
 0x521   :  { %6327 = vmatmul.mubr.bf16.vlgmr.msra.gmra.mrb[96].mxu0 %v8755_v20  ;;  %4835 = vmatprep.mubr.bf16.mxu1 %v8673_v27  ;;  %v9153_v20 = vrot.slane %v9146_v60, %v8283_v16  ;;  %v9157_v27 = vrot.slane %v9146_v60, %v8324_v37 }
 0x522   :  { %5268 = vmatprep.mubr.bf16.mxu0 %v9406_v47 }
 0x528   :  { %4836 = vmatmul.mubr.bf16.gmra.mrb[44].mxu1 %v8671_v52  ;;  %v9160_v52 = vrot.slane %v9146_v60, %v3236_v42 }
 0x529   :  { %5215 = vmatprep.mubr.bf16.mxu1 %v9406_v47 }
 0x572   :  { %v4458_v4 = vpop.f32.mrb[24].mxu1  ;;  %v4564_v51 = vpop.f32.mrb[80].mxu0 }
 0x573   :  { %v6346_v1 = vadd.f32 %v4458_v4, %v3225_v14  ;;  %v6354_v10 = vadd.f32 %v4564_v51, %v9153_v20  ;;  %v4460_v34 = vpop.f32.mrb[25].mxu1  ;;  %v4566_v57 = vpop.f32.mrb[81].mxu0 }
 0x574   :  { %v6347_v35 = vadd.f32 %v4460_v34, %v9157_v27  ;;  %v6355_v53 = vadd.f32 %v4566_v57, %v9160_v52  ;;  %v4462_v16 = vpop.f32.mrb[26].mxu1  ;;  %v4568_v3 = vpop.f32.mrb[82].mxu0 }
 0x575   :  { %v5978_v8 = vmul.f32 -1.442695, %v6346_v1  ;;  %v5980_v9 = vmul.f32 -1.442695, %v6354_v10  ;;  %v6348_v37 = vadd.f32 %v4462_v16, %v3225_v14  ;;  %v6356_v21 = vadd.f32 %v4568_v3, %v9153_v20  ;;  %v4464_v50 = vpop.f32.mrb[27].mxu1  ;;  %v4570_v19 = vpop.f32.mrb[83].mxu0 }
 0x576   :  { %v5979_v6 = vmul.f32 -1.442695, %v6347_v35  ;;  %v5981_v28 = vmul.f32 -1.442695, %v6355_v53  ;;  %v6349_v39 = vadd.f32 %v4464_v50, %v9157_v27  ;;  %v6357_v40 = vadd.f32 %v4570_v19, %v9160_v52 }
 0x577   :  { %7103 = vpow2.f32 %v5978_v8  ;;  %v5987_v24 = vmul.f32 -1.442695, %v6348_v37  ;;  %v5989_v26 = vmul.f32 -1.442695, %v6356_v21 }
 0x578   :  { %7105 = vpow2.f32 %v5980_v9  ;;  %v5988_v30 = vmul.f32 -1.442695, %v6349_v39  ;;  %v5990_v42 = vmul.f32 -1.442695, %v6357_v40 }
 0x579   :  { %7107 = vpow2.f32 %v5979_v6 }
 0x57a   :  { %7109 = vpow2.f32 %v5981_v28  ;;  %v4468_v4 = vpop.f32.mrb[28].mxu1  ;;  %v4574_v51 = vpop.f32.mrb[84].mxu0 }
 0x57b   :  { %7111 = vpow2.f32 %v5987_v24  ;;  %v6350_v1 = vadd.f32 %v4468_v4, %v3225_v14  ;;  %v6358_v10 = vadd.f32 %v4574_v51, %v9153_v20  ;;  %v4470_v34 = vpop.f32.mrb[29].mxu1  ;;  %v4576_v57 = vpop.f32.mrb[85].mxu0 }
 0x57c   :  { %7113 = vpow2.f32 %v5989_v26  ;;  %v6351_v35 = vadd.f32 %v4470_v34, %v9157_v27  ;;  %v6359_v53 = vadd.f32 %v4576_v57, %v9160_v52  ;;  %v4472_v16 = vpop.f32.mrb[30].mxu1  ;;  %v4578_v3 = vpop.f32.mrb[86].mxu0 }
 0x57d   :  { %7115 = vpow2.f32 %v5988_v30  ;;  %v5996_v8 = vmul.f32 -1.442695, %v6350_v1  ;;  %v5998_v9 = vmul.f32 -1.442695, %v6358_v10  ;;  %v6352_v37 = vadd.f32 %v4472_v16, %v3225_v14  ;;  %v4474_v21 = vpop.f32.mrb[31].mxu1  ;;  %v4580_v50 = vpop.f32.mrb[87].mxu0 }
 0x57e   :  { %7117 = vpow2.f32 %v5990_v42  ;;  %v5997_v19 = vmul.f32 -1.442695, %v6351_v35  ;;  %v5999_v6 = vmul.f32 -1.442695, %v6359_v53 }
 0x57f   :  { %7119 = vpow2.f32 %v5996_v8  ;;  %v6005_v28 = vmul.f32 -1.442695, %v6352_v37 }
 0x580   :  { %7121 = vpow2.f32 %v5998_v9  ;;  %v6360_v9 = vadd.f32 %v4578_v3, %v9153_v20 }
 0x581   :  { %v7104_v39 = vpop.eup %7103  ;;  %7123 = vpow2.f32 %v5997_v19 }
 0x582   :  { %v7106_v40 = vpop.eup %7105  ;;  %v5001_v24 = vadd.f32 1.0, %v7104_v39  ;;  %7125 = vpow2.f32 %v5999_v6  ;;  %v6353_v6 = vadd.f32 %v4474_v21, %v9157_v27 }
 0x583   :  { %v7108_v26 = vpop.eup %7107  ;;  %v5003_v4 = vadd.f32 1.0, %v7106_v40  ;;  %7127 = vpow2.f32 %v6005_v28  ;;  %v6361_v40 = vadd.f32 %v4580_v50, %v9160_v52 }
 0x584   :  { %v7110_v30 = vpop.eup %7109  ;;  %7129 = vrcp.f32 %v5001_v24  ;;  %v5002_v51 = vadd.f32 1.0, %v7108_v26  ;;  %v6006_v3 = vmul.f32 -1.442695, %v6353_v6 }
 0x585   :  { %v7112_v14 = vpop.eup %7111  ;;  %7131 = vrcp.f32 %v5003_v4  ;;  %v5004_v1 = vadd.f32 1.0, %v7110_v30 }
 0x586   :  { %v7114_v42 = vpop.eup %7113  ;;  %7133 = vrcp.f32 %v5002_v51  ;;  %v5010_v10 = vadd.f32 1.0, %v7112_v14  ;;  %v6007_v51 = vmul.f32 -1.442695, %v6360_v9 }
 0x587   :  { %v7116_v34 = vpop.eup %7115  ;;  %7135 = vrcp.f32 %v5004_v1  ;;  %v5012_v57 = vadd.f32 1.0, %v7114_v42  ;;  %v6008_v42 = vmul.f32 -1.442695, %v6361_v40 }
 0x588   :  { %v7118_v35 = vpop.eup %7117  ;;  %7137 = vrcp.f32 %v5010_v10  ;;  %v5011_v53 = vadd.f32 1.0, %v7116_v34 }
 0x589   :  { %v7120_v16 = vpop.eup %7119  ;;  %7139 = vrcp.f32 %v5012_v57  ;;  %v5013_v8 = vadd.f32 1.0, %v7118_v35 }
 0x58a   :  { %v7122_v37 = vpop.eup %7121  ;;  %7141 = vrcp.f32 %v5011_v53  ;;  %v5019_v19 = vadd.f32 1.0, %v7120_v16 }
 0x58b   :  { %v7124_v28 = vpop.eup %7123  ;;  %7143 = vrcp.f32 %v5013_v8  ;;  %v5021_v39 = vadd.f32 1.0, %v7122_v37 }
 0x58c   :  { %v7126_v24 = vpop.eup %7125  ;;  %7145 = vrcp.f32 %v5019_v19  ;;  %v5020_v26 = vadd.f32 1.0, %v7124_v28 }
 0x58d   :  { %v7128_v4 = vpop.eup %7127  ;;  %7147 = vrcp.f32 %v5021_v39  ;;  %v5022_v30 = vadd.f32 1.0, %v7126_v24 }
 0x58e   :  { %v7130_v14 = vpop.eup %7129  ;;  %7149 = vrcp.f32 %v5020_v26  ;;  %v5028_v20 = vadd.f32 1.0, %v7128_v4 }
 0x58f   :  { %v7132_v1 = vpop.eup %7131  ;;  %7151 = vrcp.f32 %v5022_v30  ;;  %v5109_v27 = vmul.f32 %v7130_v14, %v7597_v44 }
 0x590   :  { %v7134_v21 = vpop.eup %7133  ;;  %7153 = vrcp.f32 %v5028_v20  ;;  %v5111_v52 = vmul.f32 %v7132_v1, %v7621_v54 }
 0x591   :  { %v7136_v50 = vpop.eup %7135  ;;  %7155 = vpow2.f32 %v6007_v51  ;;  %v5110_v10 = vmul.f32 %v7134_v21, %v7599_v45 }
 0x592   :  { %v7138_v34 = vpop.eup %7137  ;;  %7157 = vpow2.f32 %v6006_v3  ;;  %v5112_v57 = vmul.f32 %v7136_v50, %v7623_v55  ;;  %v9193_v50 = vld [vmem:[%s9396_s2] sm:$0xff]  }
 0x593   :  { %v7140_v35 = vpop.eup %7139  ;;  %7159 = vpow2.f32 %v6008_v42  ;;  %v5118_v53 = vmul.f32 %v7138_v34, %v7601_v46  ;;  %v3252_v34 = vsub.s32 7, %v8271_v29 }
 0x594   :  { %v7142_v16 = vpop.eup %7141  ;;  %v5120_v8 = vmul.f32 %v7140_v35, %v7625_v56 }
 0x595   :  { %v7144_v44 = vpop.eup %7143  ;;  %v5119_v9 = vmul.f32 %v7142_v16, %v7605_v48  ;;  %v5145_v37 = vpack.c.bf16 %v5118_v53, %v5109_v27  ;;  %v9224_v16 = vrot.slane %v9146_v60, %v3252_v34 }
 0x596   :  { %v7146_v54 = vpop.eup %7145  ;;  %v5121_v19 = vmul.f32 %v7144_v44, %v7639_v61  ;;  %v5147_v6 = vpack.c.bf16 %v5120_v8, %v5111_v52 }
 0x597   :  { %v7148_v45 = vpop.eup %7147  ;;  %v5146_v28 = vpack.c.bf16 %v5119_v9, %v5110_v10  ;;  %v5127_v39 = vmul.f32 %v7146_v54, %v7633_v59  ;;  %v3244_v10 = vsub.s32 5, %v8271_v29 }
 0x598   :  { %v7150_v55 = vpop.eup %7149  ;;  %v5148_v40 = vpack.c.bf16 %v5121_v19, %v5112_v57  ;;  %v5129_v24 = vmul.f32 %v7148_v45, %v7671_v11 }
 0x599   :  { %v7152_v46 = vpop.eup %7151  ;;  %5183 = vmatprep.subr.bf16.mxu1 %v5146_v28  ;;  %v5128_v56 = vmul.f32 %v7150_v55, %v7647_v0  ;;  %v9221_v53 = vrot.slane %v9146_v60, %v3244_v10 }
 0x59a   :  { %v7154_v26 = vpop.eup %7153  ;;  %5236 = vmatprep.subr.bf16.mxu0 %v5148_v40  ;;  %5184 = vmatpush1.bf16.msra.mxu1 %v5145_v37  ;;  %v5130_v48 = vmul.f32 %v7152_v46, %v7673_v12 }
 0x59b   :  { %v7156_v4 = vpop.eup %7155  ;;  %5237 = vmatpush1.bf16.msra.mxu0 %v5147_v6  ;;  %v5136_v61 = vmul.f32 %v7154_v26, %v7651_v2 }
 0x59c   :  { %v7158_v30 = vpop.eup %7157  ;;  %v5030_v51 = vadd.f32 1.0, %v7156_v4 }
 0x59d   :  { %v7160_v59 = vpop.eup %7159  ;;  %v5029_v14 = vadd.f32 1.0, %v7158_v30  ;;  %v5154_v20 = vpack.c.bf16 %v5136_v61, %v5127_v39 }
 0x59e   :  { %7161 = vrcp.f32 %v5030_v51  ;;  %v5031_v11 = vadd.f32 1.0, %v7160_v59 }
 0x59f   :  { %7163 = vrcp.f32 %v5029_v14 }
 0x5a0   :  { %7165 = vrcp.f32 %v5031_v11 }
 0x5a8   :  { %v7162_v3 = vpop.eup %7161 }
 0x5a9   :  { %v7164_v0 = vpop.eup %7163  ;;  %v5138_v1 = vmul.f32 %v7162_v3, %v7675_v13  ;;  %v3240_v13 = vsub.s32 4, %v8271_v29 }
 0x5aa   :  { %v7166_v42 = vpop.eup %7165  ;;  %v5137_v12 = vmul.f32 %v7164_v0, %v7655_v5  ;;  %v9204_v5 = vld [vmem:[%s9396_s2 + $0x8] sm:$0xff]  }
 0x5ab   :  { %v5139_v27 = vmul.f32 %v7166_v42, %v7687_v17  ;;  %v5156_v21 = vpack.c.bf16 %v5138_v1, %v5129_v24  ;;  %v3248_v17 = vsub.s32 6, %v8271_v29  ;;  %v3241_v57 = vrot.slane %v9146_v60, %v3240_v13 }
 0x5ac   :  { %v5155_v2 = vpack.c.bf16 %v5137_v12, %v5128_v56 }
 0x5ad   :  { %v5157_v52 = vpack.c.bf16 %v5139_v27, %v5130_v48  ;;  %v9218_v35 = vrot.slane %v9146_v60, %v3248_v17 }
 0x5ae   :  { %5185 = vmatprep.subr.bf16.mxu1 %v5155_v2 }
 0x5af   :  { %5238 = vmatprep.subr.bf16.mxu0 %v5157_v52  ;;  %5186 = vmatpush1.bf16.msra.mxu1 %v5154_v20 }
 0x5b0   :  { %5239 = vmatpush1.bf16.msra.mxu0 %v5156_v21 }
 0x5b2   :  { %6016 = vmatmul.mubr.msk.bf16.vlgmr.msra.gmra.mrb[48].mxu1 %vm107_vm0, %v9193_v50 }
 0x5b3   :  { %6018 = vmatmul.mubr.msk.bf16.vlgmr.msra.gmra.mrb[100].mxu0 %vm107_vm0, %v9193_v50  ;;  %5225 = vmatprep.mubr.bf16.mxu1 %v9406_v47 }
 0x5b4   :  { %5278 = vmatprep.mubr.bf16.mxu0 %v9406_v47 }
 0x5ba   :  { %6017 = vmatmul.mubr.msk.bf16.gmra.mrb[52].mxu1 %vm107_vm0, %v9204_v5 }
 0x5bb   :  { %5321 = vmatprep.mubr.bf16.mxu1 %v9406_v47  ;;  %6019 = vmatmul.mubr.msk.bf16.gmra.mrb[104].mxu0 %vm107_vm0, %v9204_v5 }
 0x5bc   :  { %5374 = vmatprep.mubr.bf16.mxu0 %v9406_v47 }
 0x5d3   :  { %v4670_v8 = vpop.f32.mrb[32].mxu1 }
 0x5d4   :  { %v6362_v44 = vadd.f32 %v4670_v8, %v3241_v57  ;;  %v4776_v9 = vpop.f32.mrb[88].mxu0  ;;  %v4672_v37 = vpop.f32.mrb[33].mxu1 }
 0x5d5   :  { %v6370_v54 = vadd.f32 %v4776_v9, %v9218_v35  ;;  %v6363_v19 = vadd.f32 %v4672_v37, %v9221_v53  ;;  %v4778_v29 = vpop.f32.mrb[89].mxu0  ;;  %v4674_v6 = vpop.f32.mrb[34].mxu1 }
 0x5d6   :  { %v5982_v45 = vmul.f32 -1.442695, %v6362_v44  ;;  %v6371_v28 = vadd.f32 %v4778_v29, %v9224_v16  ;;  %v6364_v39 = vadd.f32 %v4674_v6, %v3241_v57  ;;  %v4780_v55 = vpop.f32.mrb[90].mxu0  ;;  %v4676_v40 = vpop.f32.mrb[35].mxu1 }
 0x5d7   :  { %v5984_v24 = vmul.f32 -1.442695, %v6370_v54  ;;  %v5983_v46 = vmul.f32 -1.442695, %v6363_v19  ;;  %v6372_v60 = vadd.f32 %v4780_v55, %v9218_v35  ;;  %v6365_v56 = vadd.f32 %v4676_v40, %v9221_v53  ;;  %v4782_v26 = vpop.f32.mrb[91].mxu0 }
 0x5d8   :  { %7167 = vpow2.f32 %v5982_v45  ;;  %v5985_v48 = vmul.f32 -1.442695, %v6371_v28  ;;  %v5991_v4 = vmul.f32 -1.442695, %v6364_v39  ;;  %v6373_v61 = vadd.f32 %v4782_v26, %v9224_v16 }
 0x5d9   :  { %7169 = vpow2.f32 %v5984_v24  ;;  %v5993_v30 = vmul.f32 -1.442695, %v6372_v60  ;;  %v5992_v51 = vmul.f32 -1.442695, %v6365_v56 }
 0x5da   :  { %7171 = vpow2.f32 %v5983_v46  ;;  %v5994_v59 = vmul.f32 -1.442695, %v6373_v61 }
 0x5db   :  { %7173 = vpow2.f32 %v5985_v48  ;;  %v4680_v14 = vpop.f32.mrb[36].mxu1 }
 0x5dc   :  { %7175 = vpow2.f32 %v5991_v4  ;;  %v6366_v20 = vadd.f32 %v4680_v14, %v3241_v57  ;;  %v4786_v11 = vpop.f32.mrb[92].mxu0  ;;  %v4682_v3 = vpop.f32.mrb[37].mxu1 }
 0x5dd   :  { %7177 = vpow2.f32 %v5993_v30  ;;  %v6374_v0 = vadd.f32 %v4786_v11, %v9218_v35  ;;  %v6367_v1 = vadd.f32 %v4682_v3, %v9221_v53  ;;  %v4788_v42 = vpop.f32.mrb[93].mxu0  ;;  %v4684_v12 = vpop.f32.mrb[38].mxu1 }
 0x5de   :  { %7179 = vpow2.f32 %v5992_v51  ;;  %v6000_v27 = vmul.f32 -1.442695, %v6366_v20  ;;  %v6375_v21 = vadd.f32 %v4788_v42, %v9224_v16  ;;  %v6368_v2 = vadd.f32 %v4684_v12, %v3241_v57  ;;  %v4790_v52 = vpop.f32.mrb[94].mxu0  ;;  %v4686_v13 = vpop.f32.mrb[39].mxu1 }
 0x5df   :  { %7181 = vpow2.f32 %v5994_v59  ;;  %v6002_v17 = vmul.f32 -1.442695, %v6374_v0  ;;  %v6001_v10 = vmul.f32 -1.442695, %v6367_v1  ;;  %v4792_v34 = vpop.f32.mrb[95].mxu0  ;;  %v6376_v48 = vadd.f32 %v4790_v52, %v9218_v35 }
 0x5e0   :  { %7183 = vpow2.f32 %v6000_v27  ;;  %v6003_v8 = vmul.f32 -1.442695, %v6375_v21  ;;  %v6009_v44 = vmul.f32 -1.442695, %v6368_v2  ;;  %v6369_v30 = vadd.f32 %v4686_v13, %v9221_v53 }
 0x5e1   :  { %7185 = vpow2.f32 %v6002_v17  ;;  %v6377_v14 = vadd.f32 %v4792_v34, %v9224_v16  ;;  %v6011_v1 = vmul.f32 -1.442695, %v6376_v48 }
 0x5e2   :  { %v7168_v9 = vpop.eup %7167  ;;  %7187 = vpow2.f32 %v6001_v10  ;;  %v6010_v12 = vmul.f32 -1.442695, %v6369_v30 }
 0x5e3   :  { %v7170_v37 = vpop.eup %7169  ;;  %v5005_v54 = vadd.f32 1.0, %v7168_v9  ;;  %7189 = vpow2.f32 %v6003_v8  ;;  %v6012_v21 = vmul.f32 -1.442695, %v6377_v14 }
 0x5e4   :  { %v7172_v19 = vpop.eup %7171  ;;  %v5007_v29 = vadd.f32 1.0, %v7170_v37  ;;  %7191 = vpow2.f32 %v6009_v44 }
 0x5e5   :  { %v7174_v6 = vpop.eup %7173  ;;  %7193 = vrcp.f32 %v5005_v54  ;;  %v5006_v57 = vadd.f32 1.0, %v7172_v19 }
 0x5e6   :  { %v7176_v45 = vpop.eup %7175  ;;  %7195 = vrcp.f32 %v5007_v29  ;;  %v5008_v28 = vadd.f32 1.0, %v7174_v6 }
 0x5e7   :  { %v7178_v39 = vpop.eup %7177  ;;  %7197 = vrcp.f32 %v5006_v57  ;;  %v5014_v55 = vadd.f32 1.0, %v7176_v45 }
 0x5e8   :  { %v7180_v40 = vpop.eup %7179  ;;  %7199 = vrcp.f32 %v5008_v28  ;;  %v5016_v24 = vadd.f32 1.0, %v7178_v39 }
 0x5e9   :  { %v7182_v46 = vpop.eup %7181  ;;  %7201 = vrcp.f32 %v5014_v55  ;;  %v5015_v60 = vadd.f32 1.0, %v7180_v40 }
 0x5ea   :  { %v7184_v56 = vpop.eup %7183  ;;  %7203 = vrcp.f32 %v5016_v24  ;;  %v5017_v26 = vadd.f32 1.0, %v7182_v46 }
 0x5eb   :  { %v7186_v4 = vpop.eup %7185  ;;  %7205 = vrcp.f32 %v5015_v60  ;;  %v5023_v61 = vadd.f32 1.0, %v7184_v56 }
 0x5ec   :  { %v7188_v51 = vpop.eup %7187  ;;  %7207 = vrcp.f32 %v5017_v26  ;;  %v5025_v59 = vadd.f32 1.0, %v7186_v4 }
 0x5ed   :  { %v7190_v20 = vpop.eup %7189  ;;  %7209 = vrcp.f32 %v5023_v61  ;;  %v5024_v11 = vadd.f32 1.0, %v7188_v51 }
 0x5ee   :  { %v7192_v3 = vpop.eup %7191  ;;  %7211 = vrcp.f32 %v5025_v59  ;;  %v5026_v0 = vadd.f32 1.0, %v7190_v20 }
 0x5ef   :  { %v7194_v42 = vpop.eup %7193  ;;  %7213 = vrcp.f32 %v5024_v11  ;;  %v5032_v35 = vadd.f32 1.0, %v7192_v3 }
 0x5f0   :  { %v7196_v27 = vpop.eup %7195  ;;  %7215 = vrcp.f32 %v5026_v0  ;;  %v5113_v53 = vmul.f32 %v7194_v42, %v7689_v18  ;;  %v5761_v18 = vld [vmem:[%s9395_s10 + $0x8] ss:$0 sm:$0xff] }
 0x5f1   :  { %v7198_v2 = vpop.eup %7197  ;;  %7217 = vrcp.f32 %v5032_v35  ;;  %v5115_v16 = vmul.f32 %v7196_v27, %v7727_v31 }
 0x5f2   :  { %v7200_v52 = vpop.eup %7199  ;;  %7219 = vpow2.f32 %v6011_v1  ;;  %v5114_v13 = vmul.f32 %v7198_v2, %v7701_v22 }
 0x5f3   :  { %v7202_v17 = vpop.eup %7201  ;;  %7221 = vpow2.f32 %v6010_v12  ;;  %v6216_v10 = vpop.f32.mrb[40].mxu1  ;;  %v5116_v34 = vmul.f32 %v7200_v52, %v7729_v32 }
 0x5f4   :  { %v7204_v8 = vpop.eup %7203  ;;  %7223 = vpow2.f32 %v6012_v21  ;;  %v6328_v44 = vpop.f32.mrb[96].mxu0  ;;  %v5122_v37 = vmul.f32 %v7202_v17, %v7703_v23 }
 0x5f5   :  { %v6217_v9 = vpop.f32.mrb[41].mxu1  ;;  %v7206_v31 = vpop.eup %7205  ;;  %v5124_v22 = vmul.f32 %v7204_v8, %v7731_v33 }
 0x5f6   :  { %v6218_v54 = vadd.f32 %v6217_v9, %v6216_v10  ;;  %v4878_v19 = vpop.f32.mrb[97].mxu0  ;;  %v6219_v29 = vpop.f32.mrb[42].mxu1  ;;  %v5123_v32 = vmul.f32 %v7206_v31, %v7709_v25  ;;  %v5149_v28 = vpack.c.bf16 %v5122_v37, %v5113_v53 }
 0x5f7   :  { %v7208_v6 = vpop.eup %7207  ;;  %v6329_v57 = vpop.f32.mrb[98].mxu0  ;;  %v5151_v60 = vpack.c.bf16 %v5124_v22, %v5115_v16 }
 0x5f8   :  { %v6220_v45 = vpop.f32.mrb[43].mxu1  ;;  %v7210_v39 = vpop.eup %7209  ;;  %v4830_v55 = vadd.f32 %v6218_v54, %v5761_v18  ;;  %v5125_v46 = vmul.f32 %v7208_v6, %v7745_v38  ;;  %v5150_v56 = vpack.c.bf16 %v5123_v32, %v5114_v13 }
 0x5f9   :  { %v6221_v40 = vadd.f32 %v6220_v45, %v6219_v29  ;;  %v4881_v24 = vpop.f32.mrb[99].mxu0  ;;  %v7212_v23 = vpop.eup %7211  ;;  %v9250_v26 = vmul.f32 %v7210_v39, %v7739_v36 }
 0x5fa   :  { %v7214_v48 = vpop.eup %7213  ;;  %v4879_v33 = vadd.f32 %v4878_v19, %v4830_v55  ;;  %v5152_v61 = vpack.c.bf16 %v5125_v46, %v5116_v34  ;;  %v5133_v30 = vmul.f32 %v7212_v23, %v7783_v58  ;;  %5289 = vmatprep.subr.bf16.mxu1 %v5150_v56  ;;  %v9407_v55 = vld [vmem:[#allocation4_spill] sm:$0xff] }
 0x5fb   :  { %v4833_v4 = vadd.f32 %v6221_v40, %v5761_v18  ;;  %v7216_v25 = vpop.eup %7215  ;;  %v5132_v51 = vmul.f32 %v7214_v48, %v7753_v41  ;;  %5290 = vmatpush1.bf16.msra.mxu1 %v5149_v28  ;;  %v6222_v38 = vpop.f32.mrb[44].mxu1 }
 0x5fc   :  { %v7218_v59 = vpop.eup %7217  ;;  %v5986_v14 = vmul.f32 -1.442695, %v4879_v33  ;;  %5342 = vmatprep.subr.bf16.mxu0 %v5152_v61  ;;  %v5134_v11 = vmul.f32 %v7216_v25, %v7785_v62  ;;  %v6223_v3 = vpop.f32.mrb[45].mxu1 }
 0x5fd   :  { %v4882_v20 = vadd.f32 %v4881_v24, %v4833_v4  ;;  %v7220_v36 = vpop.eup %7219  ;;  %5343 = vmatpush1.bf16.msra.mxu0 %v5151_v60  ;;  %v5140_v0 = vmul.f32 %v7218_v59, %v7759_v43  ;;  %v6224_v58 = vadd.f32 %v6223_v3, %v6222_v38  ;;  %v6225_v35 = vpop.f32.mrb[46].mxu1  ;;  %v9408_v60 = vld [vmem:[#allocation2_spill] sm:$0xff] }
 0x5fe   :  { %v7222_v1 = vpop.eup %7221  ;;  %v5034_v42 = vadd.f32 1.0, %v7220_v36  ;;  %7225 = vpow2.f32 %v5986_v14  ;;  %v6226_v21 = vpop.f32.mrb[47].mxu1 }
 0x5ff   :  { %v7224_v12 = vpop.eup %7223  ;;  %v5033_v41 = vadd.f32 1.0, %v7222_v1  ;;  %v5995_v27 = vmul.f32 -1.442695, %v4882_v20  ;;  %v5158_v53 = vpack.c.bf16 %v5140_v0, %v9250_v26  ;;  %v4838_v16 = vadd.f32 %v6224_v58, %v5761_v18 }
 0x600   :  { %7227 = vrcp.f32 %v5034_v42  ;;  %v5035_v2 = vadd.f32 1.0, %v7224_v12  ;;  %v6227_v62 = vadd.f32 %v6226_v21, %v6225_v35 }
 0x601   :  { %7229 = vrcp.f32 %v5033_v41  ;;  %v4887_v52 = vadd.f32 %v6328_v44, %v4838_v16 }
 0x602   :  { %7231 = vrcp.f32 %v5035_v2  ;;  %v4841_v13 = vadd.f32 %v6227_v62, %v5761_v18 }
 0x603   :  { %7233 = vpow2.f32 %v5995_v27  ;;  %v6004_v43 = vmul.f32 -1.442695, %v4887_v52 }
 0x604   :  { %v4890_v17 = vadd.f32 %v6329_v57, %v4841_v13 }
 0x605   :  { %7235 = vpow2.f32 %v6004_v43 }
 0x606   :  { %v6013_v10 = vmul.f32 -1.442695, %v4890_v17 }
 0x608   :  { %v7226_v34 = vpop.eup %7225  ;;  %7237 = vpow2.f32 %v6013_v10 }
 0x609   :  { %v5009_v8 = vadd.f32 1.0, %v7226_v34 }
 0x60a   :  { %v7228_v9 = vpop.eup %7227 }
 0x60b   :  { %v7230_v37 = vpop.eup %7229  ;;  %7239 = vrcp.f32 %v5009_v8  ;;  %v5142_v31 = vmul.f32 %v7228_v9, %v7787_v63 }
 0x60c   :  { %v7232_v54 = vpop.eup %7231  ;;  %v5141_v19 = vmul.f32 %v7230_v37, %v7765_v49 }
 0x60d   :  { %v7234_v29 = vpop.eup %7233  ;;  %v5143_v44 = vmul.f32 %v7232_v54, %v7799_v7  ;;  %v5160_v18 = vpack.c.bf16 %v5142_v31, %v5133_v30 }
 0x60e   :  { %v5018_v22 = vadd.f32 1.0, %v7234_v29  ;;  %v5159_v6 = vpack.c.bf16 %v5141_v19, %v5132_v51 }
 0x60f   :  { %v5161_v57 = vpack.c.bf16 %v5143_v44, %v5134_v11  ;;  %v7236_v45 = vpop.eup %7235 }
 0x610   :  { %7241 = vrcp.f32 %v5018_v22  ;;  %5291 = vmatprep.subr.bf16.mxu1 %v5159_v6  ;;  %v5027_v32 = vadd.f32 1.0, %v7236_v45 }
 0x611   :  { %5344 = vmatprep.subr.bf16.mxu0 %v5161_v57  ;;  %5292 = vmatpush1.bf16.msra.mxu1 %v5158_v53 }
 0x612   :  { %v7238_v28 = vpop.eup %7237  ;;  %5345 = vmatpush1.bf16.msra.mxu0 %v5160_v18  ;;  %7243 = vrcp.f32 %v5027_v32 }
 0x613   :  { %v5036_v63 = vadd.f32 1.0, %v7238_v28 }
 0x614   :  { %6020 = vmatmul.mubr.msk.bf16.vlgmr.msra.gmra.mrb[56].mxu1 %vm107_vm0, %v9193_v50 }
 0x615   :  { %v7240_v49 = vpop.eup %7239  ;;  %7245 = vrcp.f32 %v5036_v63  ;;  %5331 = vmatprep.mubr.bf16.mxu1 %v9406_v47  ;;  %6022 = vmatmul.mubr.msk.bf16.vlgmr.msra.gmra.mrb[108].mxu0 %vm107_vm0, %v9193_v50 }
 0x616   :  { %v5117_v7 = vmul.f32 %v7240_v49, %v7813_v15  ;;  %5384 = vmatprep.mubr.bf16.mxu0 %v9406_v47  ;;  %v9409_v15 = vld [vmem:[#allocation3_spill] sm:$0xff] }
 0x61a   :  { %v7242_v39 = vpop.eup %7241 }
 0x61b   :  { %v5126_v40 = vmul.f32 %v7242_v39, %v9407_v55 }
 0x61c   :  { %6021 = vmatmul.mubr.msk.bf16.gmra.mrb[60].mxu1 %vm107_vm0, %v9204_v5  ;;  %v7244_v24 = vpop.eup %7243 }
 0x61d   :  { %v5153_v46 = vpack.c.bf16 %v5126_v40, %v5117_v7  ;;  %6334 = vmatprep.mubr.msk.bf16.mxu1 %vm107_vm0, %v9193_v50  ;;  %6023 = vmatmul.mubr.msk.bf16.gmra.mrb[112].mxu0 %vm107_vm0, %v9204_v5  ;;  %v5135_v23 = vmul.f32 %v7244_v24, %v9408_v60 }
 0x61f   :  { %v7246_v56 = vpop.eup %7245  ;;  %6330 = vmatprep.subr.bf16.mxu1 %v5153_v46 }
 0x620   :  { %6331 = vmatpush3.bf16.msra.mxu1 %v5153_v46  ;;  %v5144_v47 = vmul.f32 %v7246_v56, %v9409_v15 }
 0x622   :  { %v5162_v26 = vpack.c.bf16 %v5144_v47, %v5135_v23 }
 0x624   :  { %6332 = vmatprep.subr.bf16.mxu1 %v5162_v26 }
 0x625   :  { %6333 = vmatpush3.bf16.msra.mxu1 %v5162_v26 }
 0x628   :  { %6335 = vmatmul.mubr.msk.bf16.vlgmr.msra.gmra.mrb[64].mxu1 %vm107_vm0, %v9204_v5 }
 0x685   :  { %v5217_v48 = vpop.f32.mrb[48].mxu1 }
 0x686   :  { %5444 = vst [vmem:[%s9397_s11] sm:$0xff] %v5217_v48  ;;  %v5219_v50 = vpop.f32.mrb[49].mxu1  ;;  %v5270_v33 = vpop.f32.mrb[100].mxu0 }
 0x687   :  { %5445 = vst [vmem:[%s9397_s11 + $0x8] sm:$0xff] %v5219_v50  ;;  %v5221_v4 = vpop.f32.mrb[50].mxu1  ;;  %5446 = vst [vmem:[%s9397_s11 + $0x10] sm:$0xff] %v5270_v33  ;;  %v5272_v61 = vpop.f32.mrb[101].mxu0 }
 0x688   :  { %5453 = vst [vmem:[%s9397_s11 + $0x48] sm:$0xff] %v5221_v4  ;;  %v5223_v5 = vpop.f32.mrb[51].mxu1  ;;  %5447 = vst [vmem:[%s9397_s11 + $0x18] sm:$0xff] %v5272_v61  ;;  %v5274_v30 = vpop.f32.mrb[102].mxu0 }
 0x689   :  { %5454 = vst [vmem:[%s9397_s11 + $0x50] sm:$0xff] %v5223_v5  ;;  %5455 = vst [vmem:[%s9397_s11 + $0x58] sm:$0xff] %v5274_v30  ;;  %v5276_v25 = vpop.f32.mrb[103].mxu0 }
 0x68a   :  { %5456 = vst [vmem:[%s9397_s11 + $0x60] sm:$0xff] %v5276_v25 }
 0x68d   :  { %v5227_v51 = vpop.f32.mrb[52].mxu1 }
 0x68e   :  { %5462 = vst [vmem:[%s9397_s11 + $0x90] sm:$0xff] %v5227_v51  ;;  %v5229_v59 = vpop.f32.mrb[53].mxu1  ;;  %v5280_v14 = vpop.f32.mrb[104].mxu0 }
 0x68f   :  { %5463 = vst [vmem:[%s9397_s11 + $0x98] sm:$0xff] %v5229_v59  ;;  %v5231_v20 = vpop.f32.mrb[54].mxu1  ;;  %5464 = vst [vmem:[%s9397_s11 + $0xa0] sm:$0xff] %v5280_v14  ;;  %v5282_v38 = vpop.f32.mrb[105].mxu0 }
 0x690   :  { %5471 = vst [vmem:[%s9397_s11 + $0xd8] sm:$0xff] %v5231_v20  ;;  %v5233_v11 = vpop.f32.mrb[55].mxu1  ;;  %5465 = vst [vmem:[%s9397_s11 + $0xa8] sm:$0xff] %v5282_v38  ;;  %v5284_v36 = vpop.f32.mrb[106].mxu0 }
 0x691   :  { %5472 = vst [vmem:[%s9397_s11 + $0xe0] sm:$0xff] %v5233_v11  ;;  %5473 = vst [vmem:[%s9397_s11 + $0xe8] sm:$0xff] %v5284_v36  ;;  %v5286_v3 = vpop.f32.mrb[107].mxu0 }
 0x692   :  { %5474 = vst [vmem:[%s9397_s11 + $0xf0] sm:$0xff] %v5286_v3 }
 0x6e7   :  { %v5323_v0 = vpop.f32.mrb[56].mxu1 }
 0x6e8   :  { %5448 = vst [vmem:[%s9397_s11 + $0x20] sm:$0xff] %v5323_v0  ;;  %v5325_v1 = vpop.f32.mrb[57].mxu1  ;;  %v5376_v42 = vpop.f32.mrb[108].mxu0 }
 0x6e9   :  { %5449 = vst [vmem:[%s9397_s11 + $0x28] sm:$0xff] %v5325_v1  ;;  %v5327_v58 = vpop.f32.mrb[58].mxu1  ;;  %5450 = vst [vmem:[%s9397_s11 + $0x30] sm:$0xff] %v5376_v42  ;;  %v5378_v35 = vpop.f32.mrb[109].mxu0 }
 0x6ea   :  { %5457 = vst [vmem:[%s9397_s11 + $0x68] sm:$0xff] %v5327_v58  ;;  %v5329_v12 = vpop.f32.mrb[59].mxu1  ;;  %5451 = vst [vmem:[%s9397_s11 + $0x38] sm:$0xff] %v5378_v35  ;;  %v5380_v41 = vpop.f32.mrb[110].mxu0 }
 0x6eb   :  { %5458 = vst [vmem:[%s9397_s11 + $0x70] sm:$0xff] %v5329_v12  ;;  %5459 = vst [vmem:[%s9397_s11 + $0x78] sm:$0xff] %v5380_v41  ;;  %v5382_v27 = vpop.f32.mrb[111].mxu0 }
 0x6ec   :  { %5460 = vst [vmem:[%s9397_s11 + $0x80] sm:$0xff] %v5382_v27 }
 0x6ef   :  { %v5333_v21 = vpop.f32.mrb[60].mxu1 }
 0x6f0   :  { %5466 = vst [vmem:[%s9397_s11 + $0xb0] sm:$0xff] %v5333_v21  ;;  %v5335_v53 = vpop.f32.mrb[61].mxu1  ;;  %v5386_v2 = vpop.f32.mrb[112].mxu0 }
 0x6f1   :  { %5467 = vst [vmem:[%s9397_s11 + $0xb8] sm:$0xff] %v5335_v53  ;;  %v5337_v16 = vpop.f32.mrb[62].mxu1  ;;  %5468 = vst [vmem:[%s9397_s11 + $0xc0] sm:$0xff] %v5386_v2  ;;  %v5388_v62 = vpop.f32.mrb[113].mxu0 }
 0x6f2   :  { %5475 = vst [vmem:[%s9397_s11 + $0xf8] sm:$0xff] %v5337_v16  ;;  %v5339_v52 = vpop.f32.mrb[63].mxu1  ;;  %5469 = vst [vmem:[%s9397_s11 + $0xc8] sm:$0xff] %v5388_v62  ;;  %v5390_v13 = vpop.f32.mrb[114].mxu0 }
 0x6f3   :  { %5476 = vst [vmem:[%s9397_s11 + $0x100] sm:$0xff] %v5339_v52  ;;  %5477 = vst [vmem:[%s9397_s11 + $0x108] sm:$0xff] %v5390_v13  ;;  %v5392_v43 = vpop.f32.mrb[115].mxu0 }
 0x6f4   :  { %5478 = vst [vmem:[%s9397_s11 + $0x110] sm:$0xff] %v5392_v43 }
 0x6fb   :  { %v6336_v17 = vpop.f32.mrb[64].mxu1 }
 0x6fc   :  { %5470 = vst [vmem:[%s9397_s11 + $0xd0] sm:$0xff] %v6336_v17  ;;  %v5429_v10 = vpop.f32.mrb[65].mxu1 }
 0x6fd   :  { %5452 = vst [vmem:[%s9397_s11 + $0x40] sm:$0xff] %v5429_v10  ;;  %v6337_v34 = vpop.f32.mrb[66].mxu1 }
 0x6fe   :  { %5479 = vst [vmem:[%s9397_s11 + $0x118] sm:$0xff] %v6337_v34  ;;  %v5432_v8 = vpop.f32.mrb[67].mxu1 }
 0x6ff   :  { %5461 = vst [vmem:[%s9397_s11 + $0x88] sm:$0xff] %v5432_v8 }

</bundles_post_ra>
